<compile_context>
chip_gen: v7x
topology: tpu7x:2x2x1
jax: 0.10.0
libtpu: 0.0.40
codegen_flags: <defaults>
</compile_context>

<pallas_src>
import functools

import jax
import jax.numpy as jnp
import numpy as np
from jax.experimental import pallas as pl
from jax.experimental.pallas import tpu as pltpu

BN_EPS = 1e-5


def _round_up(x, m):
    return (x + m - 1) // m * m


def _pad_to(arr, shape):
    pads = [(0, t - s) for s, t in zip(arr.shape, shape)]
    if all(p == (0, 0) for p in pads):
        return arr
    return jnp.pad(arr, pads)


def gin_forward_kernel(a_ref, x_ref, w10_ref, w20_ref, w11_ref, w21_ref,
                       bnh_ref, bno_ref, pool_ref, xout_ref,
                       *, n_real, compute_dtype):
    gb, np_, _ = a_ref.shape
    a_hat = a_ref[...]                       # (Gb, Np, Np): I + row-normalized A
    inv_n = 1.0 / n_real

    # Validity mask for padded node rows (Np >= n_real).  Small (Gb, Np, 1)
    # mask, broadcast along lanes inside bn_relu.
    node_id = jax.lax.broadcasted_iota(jnp.int32, (gb, np_, 1), 1)
    valid = node_id < n_real

    def bn_relu(h, gamma, beta):
        # Training-mode BatchNorm1d, per-graph biased one-pass stats in f32,
        # folded into one multiply-add; rsqrt rides the EUP slot.  Padded rows
        # are zero on input (contribute nothing to the sums) and are re-zeroed
        # on output so they never contaminate later stats or the mean pool.
        mean = jnp.sum(h, axis=1, keepdims=True) * inv_n          # (Gb, 1, F)
        ex2 = jnp.sum(h * h, axis=1, keepdims=True) * inv_n
        var = jnp.maximum(ex2 - mean * mean, 0.0)
        scale = gamma * jax.lax.rsqrt(var + BN_EPS)               # (Gb, 1, F)
        shift = beta - mean * scale
        h = jnp.maximum(h * scale + shift, 0.0)
        return jnp.where(valid, h, 0.0)

    def gin_layer(h, w1, w2, g1, be1, ga, ba):
        # GINConv (mean aggregator, eps=0): feat + mean(neighbors) == A_hat @ feat.
        h = h.astype(compute_dtype)
        h = jnp.einsum('gnm,gmf->gnf', a_hat, h,
                       preferred_element_type=jnp.float32)
        # MLP: Linear -> BN -> ReLU -> Linear.  Linear biases omitted: a
        # constant per-feature bias is exactly cancelled by the training-mode
        # BN mean subtraction that follows.  Node axis is flattened so the
        # shared-weight matmuls see Gb*Np rows (full MXU M fill).
        hs = h.astype(compute_dtype).reshape(gb * np_, h.shape[-1])
        hs = jnp.dot(hs, w1, preferred_element_type=jnp.float32)
        h = bn_relu(hs.reshape(gb, np_, w1.shape[-1]), g1, be1)
        hs = h.astype(compute_dtype).reshape(gb * np_, w1.shape[-1])
        hs = jnp.dot(hs, w2, preferred_element_type=jnp.float32)
        # ApplyNodeFunc: BN -> ReLU (outer forward ReLU is idempotent here).
        return bn_relu(hs.reshape(gb, np_, w2.shape[-1]), ga, ba)

    # Layer 0: BN params rows 0..3 of bnh (all hidden width).
    h = gin_layer(x_ref[...], w10_ref[...], w20_ref[...],
                  bnh_ref[0:1, :], bnh_ref[1:2, :],
                  bnh_ref[2:3, :], bnh_ref[3:4, :])
    # Layer 1: MLP BN params rows 4..5 of bnh (hidden width); ApplyNodeFunc BN
    # params rows 0..1 of bno (output width).
    h = gin_layer(h, w11_ref[...], w21_ref[...],
                  bnh_ref[4:5, :], bnh_ref[5:6, :],
                  bno_ref[0:1, :], bno_ref[1:2, :])

    xout_ref[...] = h.astype(xout_ref.dtype)
    # AvgPooling over the real nodes of each graph (padded rows are zero).
    pool_ref[...] = (jnp.sum(h, axis=1, keepdims=True) * inv_n
                     ).astype(pool_ref.dtype)


def unsupervised_gin_forward(a_norm, x, params, *, compute_dtype=jnp.float32,
                             graphs_per_step=None):
    """Batched UnsupervisedGIN forward as one fused Pallas kernel.

    a_norm: (G, N, N) dense row-normalized adjacency (one graph per slice)
    x:      (G, N, Fin) node features
    Returns (pool_x (G, out), x_out (G, N, out)), both float32.
    """
    G, N, Fin = x.shape
    H = params["w1_0"].shape[1]
    O = params["w2_1"].shape[1]

    # Lane-dense padding (multiples of 128) for the node and feature dims.
    Np = _round_up(N, 128)
    Finp = _round_up(Fin, 128)
    Hp = _round_up(H, 128)
    Op = _round_up(O, 128)

    # Graphs per grid step: fill >= ~512 MXU rows when possible, keep a
    # parallel grid axis for v7x megacore.
    if graphs_per_step is None:
        cap = max(1, 512 // Np)
        graphs_per_step = max(d for d in range(1, G + 1)
                              if G % d == 0 and d <= cap)
    Gb = graphs_per_step
    assert G % Gb == 0, "graphs_per_step must divide the number of graphs"
    num_steps = G // Gb

    # A_hat = I + row-normalized A folds the GIN self term into the matmul.
    a_hat = a_norm + jnp.eye(N, dtype=a_norm.dtype)[None]
    a_hat = _pad_to(a_hat, (G, Np, Np)).astype(compute_dtype)
    x_p = _pad_to(x, (G, Np, Finp)).astype(compute_dtype)

    w1_0 = _pad_to(params["w1_0"], (Finp, Hp)).astype(compute_dtype)
    w2_0 = _pad_to(params["w2_0"], (Hp, Hp)).astype(compute_dtype)
    w1_1 = _pad_to(params["w1_1"], (Hp, Hp)).astype(compute_dtype)
    w2_1 = _pad_to(params["w2_1"], (Hp, Op)).astype(compute_dtype)

    # BN gamma/beta packed by width (f32 so stats/scale math stays f32).
    zh = jnp.zeros((1, Hp), jnp.float32)
    zo = jnp.zeros((1, Op), jnp.float32)
    bnh = jnp.concatenate([
        _pad_to(params["g1_0"], (1, Hp)), _pad_to(params["be1_0"], (1, Hp)),
        _pad_to(params["ga_0"], (1, Hp)), _pad_to(params["ba_0"], (1, Hp)),
        _pad_to(params["g1_1"], (1, Hp)), _pad_to(params["be1_1"], (1, Hp)),
        zh, zh], axis=0).astype(jnp.float32)                     # (8, Hp)
    bno = jnp.concatenate([
        _pad_to(params["ga_1"], (1, Op)), _pad_to(params["ba_1"], (1, Op)),
        zo, zo, zo, zo, zo, zo], axis=0).astype(jnp.float32)     # (8, Op)

    in_specs = [
        pl.BlockSpec((Gb, Np, Np), lambda g: (g, 0, 0)),
        pl.BlockSpec((Gb, Np, Finp), lambda g: (g, 0, 0)),
        # Grid-invariant operands (constant index_map => fetched once).
        pl.BlockSpec((Finp, Hp), lambda g: (0, 0)),
        pl.BlockSpec((Hp, Hp), lambda g: (0, 0)),
        pl.BlockSpec((Hp, Hp), lambda g: (0, 0)),
        pl.BlockSpec((Hp, Op), lambda g: (0, 0)),
        pl.BlockSpec((8, Hp), lambda g: (0, 0)),
        pl.BlockSpec((8, Op), lambda g: (0, 0)),
    ]
    out_specs = (
        pl.BlockSpec((Gb, 1, Op), lambda g: (g, 0, 0)),
        pl.BlockSpec((Gb, Np, Op), lambda g: (g, 0, 0)),
    )
    out_shape = (
        jax.ShapeDtypeStruct((G, 1, Op), jnp.float32),
        jax.ShapeDtypeStruct((G, Np, Op), jnp.float32),
    )

    # Derived VMEM budget: double-buffered per-step blocks + weights + live
    # intermediates, with headroom, capped at 48 MiB (v7x has 64 MiB per TC).
    csize = jnp.dtype(compute_dtype).itemsize
    io_bytes = 2 * (Gb * Np * Np * csize + Gb * Np * Finp * csize
                    + Gb * Np * Op * 4 + Gb * Op * 4)
    w_bytes = 2 * csize * (Finp * Hp + 2 * Hp * Hp + Hp * Op) \
        + 2 * 4 * 8 * (Hp + Op)
    live_bytes = 6 * Gb * Np * max(Finp, Hp, Op) * 4
    vmem_limit = int(min(max(2 * (io_bytes + w_bytes) + live_bytes, 16 << 20),
                         48 << 20))

    flops_per_graph = 2 * Np * (Np * Finp + Finp * Hp + Hp * Hp
                                + Np * Hp + Hp * Hp + Hp * Op)
    bytes_in = (int(a_hat.size) + int(x_p.size)
                + int(w1_0.size) + int(w2_0.size) + int(w1_1.size)
                + int(w2_1.size)) * csize + (int(bnh.size) + int(bno.size)) * 4
    bytes_out = (G * Op + G * Np * Op) * 4
    cost = pl.CostEstimate(flops=int(G * flops_per_graph),
                           transcendentals=int(G * (3 * Hp + Op)),
                           bytes_accessed=int(bytes_in + bytes_out))

    kernel = functools.partial(gin_forward_kernel, n_real=N,
                               compute_dtype=compute_dtype)

    pool_p, xout_p = pl.pallas_call(
        kernel,
        grid=(num_steps,),
        in_specs=in_specs,
        out_specs=out_specs,
        out_shape=out_shape,
        compiler_params=pltpu.CompilerParams(
            dimension_semantics=("parallel",),
            vmem_limit_bytes=vmem_limit,
        ),
        cost_estimate=cost,
    )(a_hat, x_p, w1_0, w2_0, w1_1, w2_1, bnh, bno)

    pool_x = pool_p[:, 0, :O]
    x_out = xout_p[:, :N, :O]
    return pool_x, x_out


def _reference_forward(a_norm, x, params):
    """Pure-JAX f32 reference (PyTorch semantics incl. biases, two-pass BN)."""
    def bn(h, g, b):
        m = jnp.mean(h, axis=0, keepdims=True)
        v = jnp.mean((h - m) ** 2, axis=0, keepdims=True)
        return (h - m) / jnp.sqrt(v + BN_EPS) * g + b

    def layer(a, h, w1, b1, g1, be1, w2, b2, ga, ba):
        h = h + a @ h
        h = jnp.maximum(bn(h @ w1 + b1, g1, be1), 0.0)
        h = jnp.maximum(bn(h @ w2 + b2, ga, ba), 0.0)
        return h

    def one_graph(a, h):
        h = layer(a, h, params["w1_0"], params["b1_0"], params["g1_0"],
                  params["be1_0"], params["w2_0"], params["b2_0"],
                  params["ga_0"], params["ba_0"])
        h = layer(a, h, params["w1_1"], params["b1_1"], params["g1_1"],
                  params["be1_1"], params["w2_1"], params["b2_1"],
                  params["ga_1"], params["ba_1"])
        return jnp.mean(h, axis=0), h

    pool, xs = jax.vmap(one_graph)(a_norm, x)
    return pool, xs


def _make_params(key, in_size, hidden_size, out_size):
    ks = iter(jax.random.split(key, 32))

    def lin(fan_in, fan_out):
        bound = 1.0 / np.sqrt(fan_in)
        w = jax.random.uniform(next(ks), (fan_in, fan_out), jnp.float32,
                               -bound, bound)
        b = jax.random.uniform(next(ks), (1, fan_out), jnp.float32,
                               -bound, bound)
        return w, b

    def bn(dim):
        g = 1.0 + 0.05 * jax.random.normal(next(ks), (1, dim), jnp.float32)
        b = 0.05 * jax.random.normal(next(ks), (1, dim), jnp.float32)
        return g, b

    params = {}
    # GIN layer 0: MLP(in -> hidden -> hidden); BN(hidden) x2
    params["w1_0"], params["b1_0"] = lin(in_size, hidden_size)
    params["g1_0"], params["be1_0"] = bn(hidden_size)
    params["w2_0"], params["b2_0"] = lin(hidden_size, hidden_size)
    params["ga_0"], params["ba_0"] = bn(hidden_size)
    # GIN layer 1: MLP(hidden -> hidden -> out); BN(hidden), BN(out)
    params["w1_1"], params["b1_1"] = lin(hidden_size, hidden_size)
    params["g1_1"], params["be1_1"] = bn(hidden_size)
    params["w2_1"], params["b2_1"] = lin(hidden_size, out_size)
    params["ga_1"], params["ba_1"] = bn(out_size)
    return params


if __name__ == "__main__":
    # Small shapes consistent with the module (module defaults 64/512/512);
    # 8 graphs of 32 nodes -> 4 graphs per grid step, 2 parallel grid steps.
    G, N_NODES, IN_SIZE, HIDDEN_SIZE, OUT_SIZE = 8, 32, 64, 128, 128

    key = jax.random.PRNGKey(0)
    k_adj, k_feat, k_par = jax.random.split(key, 3)

    # Random directed graphs -> dense row-normalized adjacency (mean agg).
    adj = (jax.random.uniform(k_adj, (G, N_NODES, N_NODES)) < 0.3
           ).astype(jnp.float32)
    adj = adj * (1.0 - jnp.eye(N_NODES, dtype=jnp.float32))[None]  # no self loops
    deg = jnp.sum(adj, axis=2, keepdims=True)
    a_norm = adj / jnp.maximum(deg, 1.0)   # zero rows for isolated nodes (DGL mean)

    features = jax.random.normal(k_feat, (G, N_NODES, IN_SIZE), jnp.float32)
    params = _make_params(k_par, IN_SIZE, HIDDEN_SIZE, OUT_SIZE)

    ref_pool, ref_x = _reference_forward(a_norm, features, params)

    # f32 path (tight check) and bf16-storage / f32-accumulation path (perf
    # path recommended for v5e/v6e/v7x, looser tolerance).
    for cdt, tol in ((jnp.float32, 1e-3), (jnp.bfloat16, 5e-2)):
        pool_x, x_out = unsupervised_gin_forward(a_norm, features, params,
                                                 compute_dtype=cdt)
        jax.block_until_ready((pool_x, x_out))
        np.testing.assert_allclose(np.asarray(pool_x), np.asarray(ref_pool),
                                   rtol=tol, atol=tol)
        np.testing.assert_allclose(np.asarray(x_out), np.asarray(ref_x),
                                   rtol=tol, atol=tol)
        assert pool_x.shape == (G, OUT_SIZE)
        assert x_out.shape == (G, N_NODES, OUT_SIZE)

    print("KERNEL_OK")
</pallas_src>

<mosaic_0001>
module attributes {stable_mosaic.version = 11 : i64} {
  func.func @gin_forward_kernel(%arg0: i32, %arg1: memref<4x128x128xf32, #tpu.memory_space<vmem>>, %arg2: memref<4x128x128xf32, #tpu.memory_space<vmem>>, %arg3: memref<128x128xf32, #tpu.memory_space<vmem>>, %arg4: memref<128x128xf32, #tpu.memory_space<vmem>>, %arg5: memref<128x128xf32, #tpu.memory_space<vmem>>, %arg6: memref<128x128xf32, #tpu.memory_space<vmem>>, %arg7: memref<8x128xf32, #tpu.memory_space<vmem>>, %arg8: memref<8x128xf32, #tpu.memory_space<vmem>>, %arg9: memref<4x1x128xf32, #tpu.memory_space<vmem>>, %arg10: memref<4x128x128xf32, #tpu.memory_space<vmem>>) attributes {dimension_semantics = [#tpu.dimension_semantics<parallel>], iteration_bounds = array<i64: 2>, scalar_prefetch = 0 : i64, scratch_operands = 0 : i64, tpu.core_type = #tpu.core_type<tc>, window_params = [{transform_indices = @transform_0, window_bounds = array<i64: 4, 128, 128>}, {transform_indices = @transform_1, window_bounds = array<i64: 4, 128, 128>}, {pipeline_mode = #tpu.pipeline_mode<synchronous>, transform_indices = @transform_2, window_bounds = array<i64: 128, 128>}, {pipeline_mode = #tpu.pipeline_mode<synchronous>, transform_indices = @transform_3, window_bounds = array<i64: 128, 128>}, {pipeline_mode = #tpu.pipeline_mode<synchronous>, transform_indices = @transform_4, window_bounds = array<i64: 128, 128>}, {pipeline_mode = #tpu.pipeline_mode<synchronous>, transform_indices = @transform_5, window_bounds = array<i64: 128, 128>}, {pipeline_mode = #tpu.pipeline_mode<synchronous>, transform_indices = @transform_6, window_bounds = array<i64: 8, 128>}, {pipeline_mode = #tpu.pipeline_mode<synchronous>, transform_indices = @transform_7, window_bounds = array<i64: 8, 128>}, {transform_indices = @transform_8, window_bounds = array<i64: 4, 1, 128>}, {transform_indices = @transform_9, window_bounds = array<i64: 4, 128, 128>}]} {
    %c0 = arith.constant 0 : index
    %c0_0 = arith.constant 0 : index
    %c0_1 = arith.constant 0 : index
    %0 = vector.load %arg1[%c0, %c0_0, %c0_1] : memref<4x128x128xf32, #tpu.memory_space<vmem>>, vector<4x128x128xf32>
    %1 = tpu.iota {dimensions = array<i32: 1>} : vector<4x128x1xi32>
    %c32_i32 = arith.constant 32 : i32
    %2 = vector.broadcast %c32_i32 : i32 to vector<4x128x1xi32>
    %3 = arith.cmpi slt, %1, %2 : vector<4x128x1xi32>
    %c0_2 = arith.constant 0 : index
    %c0_3 = arith.constant 0 : index
    %c0_4 = arith.constant 0 : index
    %4 = vector.load %arg2[%c0_2, %c0_3, %c0_4] : memref<4x128x128xf32, #tpu.memory_space<vmem>>, vector<4x128x128xf32>
    %c0_5 = arith.constant 0 : index
    %c0_6 = arith.constant 0 : index
    %5 = vector.load %arg3[%c0_5, %c0_6] : memref<128x128xf32, #tpu.memory_space<vmem>>, vector<128x128xf32>
    %c0_7 = arith.constant 0 : index
    %c0_8 = arith.constant 0 : index
    %6 = vector.load %arg4[%c0_7, %c0_8] : memref<128x128xf32, #tpu.memory_space<vmem>>, vector<128x128xf32>
    %c0_9 = arith.constant 0 : index
    %c0_10 = arith.constant 0 : index
    %7 = vector.load %arg7[%c0_9, %c0_10] : memref<8x128xf32, #tpu.memory_space<vmem>>, vector<1x128xf32>
    %c1 = arith.constant 1 : index
    %c0_11 = arith.constant 0 : index
    %8 = vector.load %arg7[%c1, %c0_11] : memref<8x128xf32, #tpu.memory_space<vmem>>, vector<1x128xf32>
    %c2 = arith.constant 2 : index
    %c0_12 = arith.constant 0 : index
    %9 = vector.load %arg7[%c2, %c0_12] : memref<8x128xf32, #tpu.memory_space<vmem>>, vector<1x128xf32>
    %c3 = arith.constant 3 : index
    %c0_13 = arith.constant 0 : index
    %10 = vector.load %arg7[%c3, %c0_13] : memref<8x128xf32, #tpu.memory_space<vmem>>, vector<1x128xf32>
    "tpu.trace_start"() <{level = 10 : i32, message = "gnm,gmf->gnf"}> : () -> ()
    %cst = arith.constant dense<0.000000e+00> : vector<4x128x128xf32>
    %11 = tpu.matmul %0, %4, %cst {dimension_numbers = #tpu.dot_dimension_numbers<[2], [1], [1], [2], [0, 0, 0, 1, 1, 2], [0], [0]>} : vector<4x128x128xf32>, vector<4x128x128xf32>, vector<4x128x128xf32> -> vector<4x128x128xf32>
    "tpu.trace_stop"() : () -> ()
    %12 = vector.shape_cast %11 : vector<4x128x128xf32> to vector<512x128xf32>
    %cst_14 = arith.constant dense<0.000000e+00> : vector<512x128xf32>
    %13 = tpu.matmul %12, %5, %cst_14 {dimension_numbers = #tpu.dot_dimension_numbers<[1], [0], [0], [1], [0, 0, 1, 1], [], []>} : vector<512x128xf32>, vector<128x128xf32>, vector<512x128xf32> -> vector<512x128xf32>
    %14 = vector.shape_cast %13 : vector<512x128xf32> to vector<4x128x128xf32>
    %cst_15 = arith.constant dense<0.000000e+00> : vector<4x128xf32>
    %15 = vector.multi_reduction <add>, %14, %cst_15 [1] : vector<4x128x128xf32> to vector<4x128xf32>
    %16 = vector.shape_cast %15 : vector<4x128xf32> to vector<4x1x128xf32>
    %cst_16 = arith.constant 3.125000e-02 : f32
    %17 = vector.broadcast %cst_16 : f32 to vector<4x1x128xf32>
    %18 = arith.mulf %16, %17 : vector<4x1x128xf32>
    %19 = arith.mulf %14, %14 : vector<4x128x128xf32>
    %cst_17 = arith.constant dense<0.000000e+00> : vector<4x128xf32>
    %20 = vector.multi_reduction <add>, %19, %cst_17 [1] : vector<4x128x128xf32> to vector<4x128xf32>
    %21 = vector.shape_cast %20 : vector<4x128xf32> to vector<4x1x128xf32>
    %cst_18 = arith.constant 3.125000e-02 : f32
    %22 = vector.broadcast %cst_18 : f32 to vector<4x1x128xf32>
    %23 = arith.mulf %21, %22 : vector<4x1x128xf32>
    %24 = arith.mulf %18, %18 : vector<4x1x128xf32>
    %25 = arith.subf %23, %24 : vector<4x1x128xf32>
    %cst_19 = arith.constant 0.000000e+00 : f32
    %26 = vector.broadcast %cst_19 : f32 to vector<4x1x128xf32>
    %27 = arith.maximumf %25, %26 : vector<4x1x128xf32>
    %cst_20 = arith.constant 9.99999974E-6 : f32
    %28 = vector.broadcast %cst_20 : f32 to vector<4x1x128xf32>
    %29 = arith.addf %27, %28 : vector<4x1x128xf32>
    %30 = math.rsqrt %29 : vector<4x1x128xf32>
    %31 = vector.shape_cast %7 : vector<1x128xf32> to vector<1x1x128xf32>
    %32 = vector.broadcast %31 : vector<1x1x128xf32> to vector<4x1x128xf32>
    %33 = arith.mulf %32, %30 : vector<4x1x128xf32>
    %34 = arith.mulf %18, %33 : vector<4x1x128xf32>
    %35 = vector.shape_cast %8 : vector<1x128xf32> to vector<1x1x128xf32>
    %36 = vector.broadcast %35 : vector<1x1x128xf32> to vector<4x1x128xf32>
    %37 = arith.subf %36, %34 : vector<4x1x128xf32>
    %38 = vector.broadcast %33 : vector<4x1x128xf32> to vector<4x128x128xf32>
    %39 = arith.mulf %14, %38 : vector<4x128x128xf32>
    %40 = vector.broadcast %37 : vector<4x1x128xf32> to vector<4x128x128xf32>
    %41 = arith.addf %39, %40 : vector<4x128x128xf32>
    %cst_21 = arith.constant 0.000000e+00 : f32
    %42 = vector.broadcast %cst_21 : f32 to vector<4x128x128xf32>
    %43 = arith.maximumf %41, %42 : vector<4x128x128xf32>
    %cst_22 = arith.constant 0.000000e+00 : f32
    %44 = vector.shape_cast %3 : vector<4x128x1xi1> to vector<4x128x1xi1>
    %45 = vector.broadcast %44 : vector<4x128x1xi1> to vector<4x128x128xi1>
    %46 = vector.broadcast %cst_22 : f32 to vector<4x128x128xf32>
    %47 = arith.select %45, %43, %46 : vector<4x128x128xi1>, vector<4x128x128xf32>
    %48 = vector.shape_cast %47 : vector<4x128x128xf32> to vector<512x128xf32>
    %cst_23 = arith.constant dense<0.000000e+00> : vector<512x128xf32>
    %49 = tpu.matmul %48, %6, %cst_23 {dimension_numbers = #tpu.dot_dimension_numbers<[1], [0], [0], [1], [0, 0, 1, 1], [], []>} : vector<512x128xf32>, vector<128x128xf32>, vector<512x128xf32> -> vector<512x128xf32>
    %50 = vector.shape_cast %49 : vector<512x128xf32> to vector<4x128x128xf32>
    %cst_24 = arith.constant dense<0.000000e+00> : vector<4x128xf32>
    %51 = vector.multi_reduction <add>, %50, %cst_24 [1] : vector<4x128x128xf32> to vector<4x128xf32>
    %52 = vector.shape_cast %51 : vector<4x128xf32> to vector<4x1x128xf32>
    %cst_25 = arith.constant 3.125000e-02 : f32
    %53 = vector.broadcast %cst_25 : f32 to vector<4x1x128xf32>
    %54 = arith.mulf %52, %53 : vector<4x1x128xf32>
    %55 = arith.mulf %50, %50 : vector<4x128x128xf32>
    %cst_26 = arith.constant dense<0.000000e+00> : vector<4x128xf32>
    %56 = vector.multi_reduction <add>, %55, %cst_26 [1] : vector<4x128x128xf32> to vector<4x128xf32>
    %57 = vector.shape_cast %56 : vector<4x128xf32> to vector<4x1x128xf32>
    %cst_27 = arith.constant 3.125000e-02 : f32
    %58 = vector.broadcast %cst_27 : f32 to vector<4x1x128xf32>
    %59 = arith.mulf %57, %58 : vector<4x1x128xf32>
    %60 = arith.mulf %54, %54 : vector<4x1x128xf32>
    %61 = arith.subf %59, %60 : vector<4x1x128xf32>
    %cst_28 = arith.constant 0.000000e+00 : f32
    %62 = vector.broadcast %cst_28 : f32 to vector<4x1x128xf32>
    %63 = arith.maximumf %61, %62 : vector<4x1x128xf32>
    %cst_29 = arith.constant 9.99999974E-6 : f32
    %64 = vector.broadcast %cst_29 : f32 to vector<4x1x128xf32>
    %65 = arith.addf %63, %64 : vector<4x1x128xf32>
    %66 = math.rsqrt %65 : vector<4x1x128xf32>
    %67 = vector.shape_cast %9 : vector<1x128xf32> to vector<1x1x128xf32>
    %68 = vector.broadcast %67 : vector<1x1x128xf32> to vector<4x1x128xf32>
    %69 = arith.mulf %68, %66 : vector<4x1x128xf32>
    %70 = arith.mulf %54, %69 : vector<4x1x128xf32>
    %71 = vector.shape_cast %10 : vector<1x128xf32> to vector<1x1x128xf32>
    %72 = vector.broadcast %71 : vector<1x1x128xf32> to vector<4x1x128xf32>
    %73 = arith.subf %72, %70 : vector<4x1x128xf32>
    %74 = vector.broadcast %69 : vector<4x1x128xf32> to vector<4x128x128xf32>
    %75 = arith.mulf %50, %74 : vector<4x128x128xf32>
    %76 = vector.broadcast %73 : vector<4x1x128xf32> to vector<4x128x128xf32>
    %77 = arith.addf %75, %76 : vector<4x128x128xf32>
    %cst_30 = arith.constant 0.000000e+00 : f32
    %78 = vector.broadcast %cst_30 : f32 to vector<4x128x128xf32>
    %79 = arith.maximumf %77, %78 : vector<4x128x128xf32>
    %cst_31 = arith.constant 0.000000e+00 : f32
    %80 = vector.shape_cast %3 : vector<4x128x1xi1> to vector<4x128x1xi1>
    %81 = vector.broadcast %80 : vector<4x128x1xi1> to vector<4x128x128xi1>
    %82 = vector.broadcast %cst_31 : f32 to vector<4x128x128xf32>
    %83 = arith.select %81, %79, %82 : vector<4x128x128xi1>, vector<4x128x128xf32>
    %c0_32 = arith.constant 0 : index
    %c0_33 = arith.constant 0 : index
    %84 = vector.load %arg5[%c0_32, %c0_33] : memref<128x128xf32, #tpu.memory_space<vmem>>, vector<128x128xf32>
    %c0_34 = arith.constant 0 : index
    %c0_35 = arith.constant 0 : index
    %85 = vector.load %arg6[%c0_34, %c0_35] : memref<128x128xf32, #tpu.memory_space<vmem>>, vector<128x128xf32>
    %c4 = arith.constant 4 : index
    %c0_36 = arith.constant 0 : index
    %86 = vector.load %arg7[%c4, %c0_36] : memref<8x128xf32, #tpu.memory_space<vmem>>, vector<1x128xf32>
    %c5 = arith.constant 5 : index
    %c0_37 = arith.constant 0 : index
    %87 = vector.load %arg7[%c5, %c0_37] : memref<8x128xf32, #tpu.memory_space<vmem>>, vector<1x128xf32>
    %c0_38 = arith.constant 0 : index
    %c0_39 = arith.constant 0 : index
    %88 = vector.load %arg8[%c0_38, %c0_39] : memref<8x128xf32, #tpu.memory_space<vmem>>, vector<1x128xf32>
    %c1_40 = arith.constant 1 : index
    %c0_41 = arith.constant 0 : index
    %89 = vector.load %arg8[%c1_40, %c0_41] : memref<8x128xf32, #tpu.memory_space<vmem>>, vector<1x128xf32>
    "tpu.trace_start"() <{level = 10 : i32, message = "gnm,gmf->gnf"}> : () -> ()
    %cst_42 = arith.constant dense<0.000000e+00> : vector<4x128x128xf32>
    %90 = tpu.matmul %0, %83, %cst_42 {dimension_numbers = #tpu.dot_dimension_numbers<[2], [1], [1], [2], [0, 0, 0, 1, 1, 2], [0], [0]>} : vector<4x128x128xf32>, vector<4x128x128xf32>, vector<4x128x128xf32> -> vector<4x128x128xf32>
    "tpu.trace_stop"() : () -> ()
    %91 = vector.shape_cast %90 : vector<4x128x128xf32> to vector<512x128xf32>
    %cst_43 = arith.constant dense<0.000000e+00> : vector<512x128xf32>
    %92 = tpu.matmul %91, %84, %cst_43 {dimension_numbers = #tpu.dot_dimension_numbers<[1], [0], [0], [1], [0, 0, 1, 1], [], []>} : vector<512x128xf32>, vector<128x128xf32>, vector<512x128xf32> -> vector<512x128xf32>
    %93 = vector.shape_cast %92 : vector<512x128xf32> to vector<4x128x128xf32>
    %cst_44 = arith.constant dense<0.000000e+00> : vector<4x128xf32>
    %94 = vector.multi_reduction <add>, %93, %cst_44 [1] : vector<4x128x128xf32> to vector<4x128xf32>
    %95 = vector.shape_cast %94 : vector<4x128xf32> to vector<4x1x128xf32>
    %cst_45 = arith.constant 3.125000e-02 : f32
    %96 = vector.broadcast %cst_45 : f32 to vector<4x1x128xf32>
    %97 = arith.mulf %95, %96 : vector<4x1x128xf32>
    %98 = arith.mulf %93, %93 : vector<4x128x128xf32>
    %cst_46 = arith.constant dense<0.000000e+00> : vector<4x128xf32>
    %99 = vector.multi_reduction <add>, %98, %cst_46 [1] : vector<4x128x128xf32> to vector<4x128xf32>
    %100 = vector.shape_cast %99 : vector<4x128xf32> to vector<4x1x128xf32>
    %cst_47 = arith.constant 3.125000e-02 : f32
    %101 = vector.broadcast %cst_47 : f32 to vector<4x1x128xf32>
    %102 = arith.mulf %100, %101 : vector<4x1x128xf32>
    %103 = arith.mulf %97, %97 : vector<4x1x128xf32>
    %104 = arith.subf %102, %103 : vector<4x1x128xf32>
    %cst_48 = arith.constant 0.000000e+00 : f32
    %105 = vector.broadcast %cst_48 : f32 to vector<4x1x128xf32>
    %106 = arith.maximumf %104, %105 : vector<4x1x128xf32>
    %cst_49 = arith.constant 9.99999974E-6 : f32
    %107 = vector.broadcast %cst_49 : f32 to vector<4x1x128xf32>
    %108 = arith.addf %106, %107 : vector<4x1x128xf32>
    %109 = math.rsqrt %108 : vector<4x1x128xf32>
    %110 = vector.shape_cast %86 : vector<1x128xf32> to vector<1x1x128xf32>
    %111 = vector.broadcast %110 : vector<1x1x128xf32> to vector<4x1x128xf32>
    %112 = arith.mulf %111, %109 : vector<4x1x128xf32>
    %113 = arith.mulf %97, %112 : vector<4x1x128xf32>
    %114 = vector.shape_cast %87 : vector<1x128xf32> to vector<1x1x128xf32>
    %115 = vector.broadcast %114 : vector<1x1x128xf32> to vector<4x1x128xf32>
    %116 = arith.subf %115, %113 : vector<4x1x128xf32>
    %117 = vector.broadcast %112 : vector<4x1x128xf32> to vector<4x128x128xf32>
    %118 = arith.mulf %93, %117 : vector<4x128x128xf32>
    %119 = vector.broadcast %116 : vector<4x1x128xf32> to vector<4x128x128xf32>
    %120 = arith.addf %118, %119 : vector<4x128x128xf32>
    %cst_50 = arith.constant 0.000000e+00 : f32
    %121 = vector.broadcast %cst_50 : f32 to vector<4x128x128xf32>
    %122 = arith.maximumf %120, %121 : vector<4x128x128xf32>
    %cst_51 = arith.constant 0.000000e+00 : f32
    %123 = vector.shape_cast %3 : vector<4x128x1xi1> to vector<4x128x1xi1>
    %124 = vector.broadcast %123 : vector<4x128x1xi1> to vector<4x128x128xi1>
    %125 = vector.broadcast %cst_51 : f32 to vector<4x128x128xf32>
    %126 = arith.select %124, %122, %125 : vector<4x128x128xi1>, vector<4x128x128xf32>
    %127 = vector.shape_cast %126 : vector<4x128x128xf32> to vector<512x128xf32>
    %cst_52 = arith.constant dense<0.000000e+00> : vector<512x128xf32>
    %128 = tpu.matmul %127, %85, %cst_52 {dimension_numbers = #tpu.dot_dimension_numbers<[1], [0], [0], [1], [0, 0, 1, 1], [], []>} : vector<512x128xf32>, vector<128x128xf32>, vector<512x128xf32> -> vector<512x128xf32>
    %129 = vector.shape_cast %128 : vector<512x128xf32> to vector<4x128x128xf32>
    %cst_53 = arith.constant dense<0.000000e+00> : vector<4x128xf32>
    %130 = vector.multi_reduction <add>, %129, %cst_53 [1] : vector<4x128x128xf32> to vector<4x128xf32>
    %131 = vector.shape_cast %130 : vector<4x128xf32> to vector<4x1x128xf32>
    %cst_54 = arith.constant 3.125000e-02 : f32
    %132 = vector.broadcast %cst_54 : f32 to vector<4x1x128xf32>
    %133 = arith.mulf %131, %132 : vector<4x1x128xf32>
    %134 = arith.mulf %129, %129 : vector<4x128x128xf32>
    %cst_55 = arith.constant dense<0.000000e+00> : vector<4x128xf32>
    %135 = vector.multi_reduction <add>, %134, %cst_55 [1] : vector<4x128x128xf32> to vector<4x128xf32>
    %136 = vector.shape_cast %135 : vector<4x128xf32> to vector<4x1x128xf32>
    %cst_56 = arith.constant 3.125000e-02 : f32
    %137 = vector.broadcast %cst_56 : f32 to vector<4x1x128xf32>
    %138 = arith.mulf %136, %137 : vector<4x1x128xf32>
    %139 = arith.mulf %133, %133 : vector<4x1x128xf32>
    %140 = arith.subf %138, %139 : vector<4x1x128xf32>
    %cst_57 = arith.constant 0.000000e+00 : f32
    %141 = vector.broadcast %cst_57 : f32 to vector<4x1x128xf32>
    %142 = arith.maximumf %140, %141 : vector<4x1x128xf32>
    %cst_58 = arith.constant 9.99999974E-6 : f32
    %143 = vector.broadcast %cst_58 : f32 to vector<4x1x128xf32>
    %144 = arith.addf %142, %143 : vector<4x1x128xf32>
    %145 = math.rsqrt %144 : vector<4x1x128xf32>
    %146 = vector.shape_cast %88 : vector<1x128xf32> to vector<1x1x128xf32>
    %147 = vector.broadcast %146 : vector<1x1x128xf32> to vector<4x1x128xf32>
    %148 = arith.mulf %147, %145 : vector<4x1x128xf32>
    %149 = arith.mulf %133, %148 : vector<4x1x128xf32>
    %150 = vector.shape_cast %89 : vector<1x128xf32> to vector<1x1x128xf32>
    %151 = vector.broadcast %150 : vector<1x1x128xf32> to vector<4x1x128xf32>
    %152 = arith.subf %151, %149 : vector<4x1x128xf32>
    %153 = vector.broadcast %148 : vector<4x1x128xf32> to vector<4x128x128xf32>
    %154 = arith.mulf %129, %153 : vector<4x128x128xf32>
    %155 = vector.broadcast %152 : vector<4x1x128xf32> to vector<4x128x128xf32>
    %156 = arith.addf %154, %155 : vector<4x128x128xf32>
    %cst_59 = arith.constant 0.000000e+00 : f32
    %157 = vector.broadcast %cst_59 : f32 to vector<4x128x128xf32>
    %158 = arith.maximumf %156, %157 : vector<4x128x128xf32>
    %cst_60 = arith.constant 0.000000e+00 : f32
    %159 = vector.shape_cast %3 : vector<4x128x1xi1> to vector<4x128x1xi1>
    %160 = vector.broadcast %159 : vector<4x128x1xi1> to vector<4x128x128xi1>
    %161 = vector.broadcast %cst_60 : f32 to vector<4x128x128xf32>
    %162 = arith.select %160, %158, %161 : vector<4x128x128xi1>, vector<4x128x128xf32>
    %c0_61 = arith.constant 0 : index
    %c0_62 = arith.constant 0 : index
    %c0_63 = arith.constant 0 : index
    %163 = vector.load %arg10[%c0_61, %c0_62, %c0_63] : memref<4x128x128xf32, #tpu.memory_space<vmem>>, vector<4x128x128xf32>
    tpu.vector_store %arg10[%c0_61, %c0_62, %c0_63], %162 {strides = array<i32>} : memref<4x128x128xf32, #tpu.memory_space<vmem>>, vector<4x128x128xf32>,
    %cst_64 = arith.constant dense<0.000000e+00> : vector<4x128xf32>
    %164 = vector.multi_reduction <add>, %162, %cst_64 [1] : vector<4x128x128xf32> to vector<4x128xf32>
    %165 = vector.shape_cast %164 : vector<4x128xf32> to vector<4x1x128xf32>
    %cst_65 = arith.constant 3.125000e-02 : f32
    %166 = vector.broadcast %cst_65 : f32 to vector<4x1x128xf32>
    %167 = arith.mulf %165, %166 : vector<4x1x128xf32>
    %c0_66 = arith.constant 0 : index
    %c0_67 = arith.constant 0 : index
    %c0_68 = arith.constant 0 : index
    %168 = vector.load %arg9[%c0_66, %c0_67, %c0_68] : memref<4x1x128xf32, #tpu.memory_space<vmem>>, vector<4x1x128xf32>
    tpu.vector_store %arg9[%c0_66, %c0_67, %c0_68], %167 {strides = array<i32>} : memref<4x1x128xf32, #tpu.memory_space<vmem>>, vector<4x1x128xf32>,
    return
  }
  func.func @transform_0(%arg0: i32) -> (i32, i32, i32) {
    %c0_i32 = arith.constant 0 : i32
    %c0_i32_0 = arith.constant 0 : i32
    %c0_i32_1 = arith.constant 0 : i32
    return %arg0, %c0_i32, %c0_i32_0 : i32, i32, i32
  }
  func.func @transform_1(%arg0: i32) -> (i32, i32, i32) {
    %c0_i32 = arith.constant 0 : i32
    %c0_i32_0 = arith.constant 0 : i32
    %c0_i32_1 = arith.constant 0 : i32
    return %arg0, %c0_i32, %c0_i32_0 : i32, i32, i32
  }
  func.func @transform_2(%arg0: i32) -> (i32, i32) {
    %c0_i32 = arith.constant 0 : i32
    %c0_i32_0 = arith.constant 0 : i32
    %c0_i32_1 = arith.constant 0 : i32
    return %c0_i32, %c0_i32_0 : i32, i32
  }
  func.func @transform_3(%arg0: i32) -> (i32, i32) {
    %c0_i32 = arith.constant 0 : i32
    %c0_i32_0 = arith.constant 0 : i32
    %c0_i32_1 = arith.constant 0 : i32
    return %c0_i32, %c0_i32_0 : i32, i32
  }
  func.func @transform_4(%arg0: i32) -> (i32, i32) {
    %c0_i32 = arith.constant 0 : i32
    %c0_i32_0 = arith.constant 0 : i32
    %c0_i32_1 = arith.constant 0 : i32
    return %c0_i32, %c0_i32_0 : i32, i32
  }
  func.func @transform_5(%arg0: i32) -> (i32, i32) {
    %c0_i32 = arith.constant 0 : i32
    %c0_i32_0 = arith.constant 0 : i32
    %c0_i32_1 = arith.constant 0 : i32
    return %c0_i32, %c0_i32_0 : i32, i32
  }
  func.func @transform_6(%arg0: i32) -> (i32, i32) {
    %c0_i32 = arith.constant 0 : i32
    %c0_i32_0 = arith.constant 0 : i32
    %c0_i32_1 = arith.constant 0 : i32
    return %c0_i32, %c0_i32_0 : i32, i32
  }
  func.func @transform_7(%arg0: i32) -> (i32, i32) {
    %c0_i32 = arith.constant 0 : i32
    %c0_i32_0 = arith.constant 0 : i32
    %c0_i32_1 = arith.constant 0 : i32
    return %c0_i32, %c0_i32_0 : i32, i32
  }
  func.func @transform_8(%arg0: i32) -> (i32, i32, i32) {
    %c0_i32 = arith.constant 0 : i32
    %c0_i32_0 = arith.constant 0 : i32
    %c0_i32_1 = arith.constant 0 : i32
    return %arg0, %c0_i32, %c0_i32_0 : i32, i32, i32
  }
  func.func @transform_9(%arg0: i32) -> (i32, i32, i32) {
    %c0_i32 = arith.constant 0 : i32
    %c0_i32_0 = arith.constant 0 : i32
    %c0_i32_1 = arith.constant 0 : i32
    return %arg0, %c0_i32, %c0_i32_0 : i32, i32, i32
  }
}

</mosaic_0001>

<bundles_post_ra>
// kernel: tpu_custom_call.1
= control target key start
LH: loop header
LB: loop body
LE: loop exit
PB: predicated region body
PF: predicated region fallthrough
CT: control target
= control target key end

     0   :  { %s9637_s0 = inlined_call_operand.hbm [shape: f32[8,128,128], index: 0, kind: input, shape index: {}]   ;;  %s9638_s1 = inlined_call_operand.hbm [shape: f32[8,128,128], index: 1, kind: input, shape index: {}]   ;;  %s9639_s2 = inlined_call_operand.hbm [shape: f32[128,128], index: 2, kind: input, shape index: {}]   ;;  %s9640_s3 = inlined_call_operand.hbm [shape: f32[128,128], index: 3, kind: input, shape index: {}]   ;;  %s9641_s4 = inlined_call_operand.hbm [shape: f32[128,128], index: 4, kind: input, shape index: {}]   ;;  %s9642_s5 = inlined_call_operand.hbm [shape: f32[128,128], index: 5, kind: input, shape index: {}]   ;;  %s9643_s6 = inlined_call_operand.vmem [shape: f32[8,128], index: 6, kind: input, shape index: {}]   ;;  %s9644_s7 = inlined_call_operand.vmem [shape: f32[8,128], index: 7, kind: input, shape index: {}]   ;;  %s9645_s8 = inlined_call_operand.hbm [shape: f32[8,1,128], index: 8, kind: output, shape index: {0}]   ;;  %s9646_s9 = inlined_call_operand.hbm [shape: f32[8,128,128], index: 9, kind: output, shape index: {1}]  }
   0x1   :  { %9657 = sst [smem:[#allocation25_spill]] %s9637_s0 }
   0x2   :  { %9658 = sst [smem:[#allocation26_spill]] %s9639_s2 }
   0x3   :  { %9659 = sst [smem:[#allocation27_spill]] %s9640_s3 }
   0x4   :  { %9660 = sst [smem:[#allocation28_spill]] %s9645_s8 }
   0x5   :  { %15 = vsyncpa [#allocation3], 0 }
   0x6   :  { %17 = vsyncpa [#allocation3 + $0x1], 0 }
   0x7   :  { %18 = vsyncpa [#allocation6], 0 }
   0x8   :  { %20 = vsyncpa [#allocation6 + $0x1], 0 }
   0x9   :  { %21 = vsyncpa [#allocation9], 0 }
   0xa   :  { %22 = vsyncpa [#allocation12], 0 }
   0xb   :  { %23 = vsyncpa [#allocation4], 0 }
   0xc   :  { %25 = vsyncpa [#allocation4 + $0x1], 0 }
   0xd   :  { %26 = vsyncpa [#allocation15], 0 }
   0xe   :  { %28 = vsyncpa [#allocation15 + $0x1], 0  ;;  %s8301_s30 = smov 0   ;;  %s8303_s10 = smov 0  }
   0xf   :  { %s8305_s11 = smov 0   ;;  %s8307_s12 = smov 0  }
  0x10 LB: > { %9661 = sst [smem:[#allocation23_spill]] %s8222_s30  ;;  %s8322_s13 = sadd.s32 4294967295, %s8234_s12   ;;  %s8234_s12 = sphi %s8307_s12, %s9692_s12   ;;  %s8230_s11 = sphi %s8305_s11, %s9691_s11   ;;  %s8226_s10 = sphi %s8303_s10, %s9690_s10   ;;  %s8222_s30 = sphi %s8301_s30, %s9689_s30  }
  0x11   : > { %s6029_s14 = sadd.s32 4294967294, %s8234_s12   ;;  %p54_p0 = scmp.ne.s32.totalorder %s8226_s10, %s8222_s30 }
  0x12   : > { %p9647_p1 = scmp.eq.s32.totalorder %s8322_s13, 0  ;;  %p236_p3 = scmp.eq.s32.totalorder %s6029_s14, 1 }
  0x13   : > { %p6030_p5 = scmp.ge.s32.totalorder %s8234_s12, 1  ;;  %p269_p7 = scmp.lt.s32.totalorder %s8234_s12, 3 }
  0x14   : > { %p8331_p4 = por %p9647_p1, %p54_p0  ;;  %p8336_p6 = por %p236_p3, %p54_p0 }
  0x15   : > { %p8341_p8 = pnand %p6030_p5, %p269_p7  ;;  %s8236_s18 = smov [#allocation7]  }
  0x16   : > { %s9662_s15 = scalar_select %p8331_p4, 1, 0 }
  0x17   : > { %s9663_s16 = scalar_select %p8336_p6, 1, 0 }
  0x18   : > { %s9665_s17 = scalar_select %p8341_p8, 1, 0 }
  0x19   : > { %9664 = sst [smem:[#allocation24_spill]] %s9663_s16  ;;  %s281_s19 = sshll.u32 %s8236_s18, 4  ;;  %s8345_s19 = int_to_ptr.vmem [resolvable:$true] %s281_s19 }
  0x1a   : > { %p7773_p9 = pneg %p8341_p8  ;;  %s8237_s21 = smov [#allocation8]  }
  0x1b   : > { %s294_s22 = sshll.u32 %s8237_s21, 4  ;;  %s8238_s23 = smov [#allocation10]   ;;  %s8356_s22 = int_to_ptr.vmem [resolvable:$true] %s294_s22 }
  0x1c   : > { %p8352_p11 = pnand %p7773_p9, %p9647_p1  ;;  %s8358_s24 = sshll.u32 %s8238_s23, 4  ;;  %s308_s24 = int_to_ptr.vmem [resolvable:$true] %s8358_s24 }
  0x1d   : > { %s9667_s2 = sld [smem:[#allocation26_spill]] }
  0x1e   : > { %p8368_p13 = pneg %p8352_p11 }
  0x23   : > { %s7948_s27 = scalar_lea.hbm %s9667_s2, 2048 }
  0x24   : > { %p7949_p12 = scmp.ne.s32.totalorder %s9667_s2, %s7948_s27  ;;  %p7955_p5 = scmp.lt.u32.totalorder %s7948_s27, %s9667_s2 }
  0x26   : > { %p7951_p0 = pnand %p8368_p13, %p7949_p12 }
  0x28   : > { %p7952_p3 = pneg %p7951_p0 }
  0x2a   : > { %p7957_p7 = pnand %p7955_p5, %p7952_p3 }
  0x2c   : > { %7960 = shalt.err (!%p7957_p7)
}
  0x2d   : > { %s7961_s23 = scalar_lea.vmem %s8345_s19, 2048  ;;  %p7969_p2 = scmp.lt.s32.totalorder %s8345_s19, %s8345_s19 }
  0x2e   : > { %p7962_p9 = scmp.ne.s32.totalorder %s8345_s19, %s7961_s23  ;;  %p7970_p6 = scmp.lt.s32.totalorder %s7961_s23, %s7961_s23 }
  0x30   : > { %p7964_p10 = pnand %p7962_p9, %p8368_p13  ;;  %p7971_p12 = por %p7970_p6, %p7969_p2 }
  0x32   : > { %p7965_p1 = pneg %p7964_p10 }
  0x34   : > { %p7972_p0 = pnand %p7971_p12, %p7965_p1 }
  0x36   : > { %7975 = shalt.err (!%p7972_p0)
}
  0x37   : > { %s9653_s25 = smov 128   ;;  %s9655_s26 = smov 8  }
  0x38   : > { %7776 = dma.hbm_to_vmem [thread:$0]  (!%p8352_p11), %s9667_s2, 2048, %s8345_s19, [#allocation6], %s9653_s25, %s9653_s25, %s9655_s26  }
  0x39   : > { %s9669_s3 = sld [smem:[#allocation27_spill]] }
  0x3f   : > { %s7976_s21 = scalar_lea.hbm %s9669_s3, 2048 }
  0x40   : > { %p7977_p1 = scmp.ne.s32.totalorder %s9669_s3, %s7976_s21  ;;  %p7983_p10 = scmp.lt.u32.totalorder %s7976_s21, %s9669_s3 }
  0x42   : > { %p7979_p2 = pnand %p7977_p1, %p8368_p13 }
  0x44   : > { %p7980_p6 = pneg %p7979_p2 }
  0x46   : > { %p7985_p3 = pnand %p7983_p10, %p7980_p6 }
  0x48   : > { %7988 = shalt.err (!%p7985_p3)
}
  0x49   : > { %s7989_s19 = scalar_lea.vmem %s8356_s22, 2048  ;;  %p7997_p12 = scmp.lt.s32.totalorder %s8356_s22, %s8356_s22 }
  0x4a   : > { %p7990_p5 = scmp.ne.s32.totalorder %s8356_s22, %s7989_s19  ;;  %p7998_p0 = scmp.lt.s32.totalorder %s7989_s19, %s7989_s19 }
  0x4c   : > { %p7992_p7 = pnand %p7990_p5, %p8368_p13  ;;  %p7999_p1 = por %p7998_p0, %p7997_p12 }
  0x4e   : > { %p7993_p9 = pneg %p7992_p7 }
  0x50   : > { %p8000_p2 = pnand %p7999_p1, %p7993_p9 }
  0x52   : > { %8003 = shalt.err (!%p8000_p2)
}
  0x53   : > { %7779 = dma.hbm_to_vmem [thread:$0]  (!%p8352_p11), %s9669_s3, 2048, %s8356_s22, [#allocation9], %s9653_s25, %s9653_s25, %s9655_s26  }
  0x54   : > { %s8004_s28 = scalar_lea.hbm %s9641_s4, 2048 }
  0x55   : > { %p8005_p6 = scmp.ne.s32.totalorder %s9641_s4, %s8004_s28  ;;  %p8011_p5 = scmp.lt.u32.totalorder %s8004_s28, %s9641_s4 }
  0x57   : > { %p8007_p10 = pnand %p8005_p6, %p8368_p13 }
  0x59   : > { %p8008_p3 = pneg %p8007_p10 }
  0x5b   : > { %p8013_p7 = pnand %p8011_p5, %p8008_p3 }
  0x5d   : > { %8016 = shalt.err (!%p8013_p7)
}
  0x5e   : > { %s8017_s19 = scalar_lea.vmem %s308_s24, 2048  ;;  %p8025_p1 = scmp.lt.s32.totalorder %s308_s24, %s308_s24 }
  0x5f   : > { %p8018_p9 = scmp.ne.s32.totalorder %s308_s24, %s8017_s19  ;;  %p8026_p2 = scmp.lt.s32.totalorder %s8017_s19, %s8017_s19 }
  0x61   : > { %p8020_p12 = pnand %p8018_p9, %p8368_p13  ;;  %p8027_p4 = por %p8026_p2, %p8025_p1 }
  0x63   : > { %p8021_p0 = pneg %p8020_p12 }
  0x65   : > { %p8028_p8 = pnand %p8027_p4, %p8021_p0 }
  0x67   : > { %8031 = shalt.err (!%p8028_p8)
}
  0x68   : > { %7782 = dma.hbm_to_vmem [thread:$0]  (!%p8352_p11), %s9641_s4, 2048, %s308_s24, [#allocation9], %s9653_s25, %s9653_s25, %s9655_s26  }
  0x69   : > { %s8241_s30 = smov [#allocation11]   ;;  %s8032_s29 = scalar_lea.hbm %s9642_s5, 2048 }
  0x6a   : > { %s320_s16 = sshll.u32 %s8241_s30, 4  ;;  %p8033_p4 = scmp.ne.s32.totalorder %s9642_s5, %s8032_s29  ;;  %s321_s16 = int_to_ptr.vmem [resolvable:$true] %s320_s16 }
  0x6b   : > { %p8039_p10 = scmp.lt.u32.totalorder %s8032_s29, %s9642_s5 }
  0x6c   : > { %p8035_p8 = pnand %p8033_p4, %p8368_p13 }
  0x6e   : > { %p8036_p6 = pneg %p8035_p8 }
  0x70   : > { %p8041_p3 = pnand %p8039_p10, %p8036_p6 }
  0x72   : > { %8044 = shalt.err (!%p8041_p3)
}
  0x73   : > { %s8045_s24 = scalar_lea.vmem %s321_s16, 2048  ;;  %p8053_p12 = scmp.lt.s32.totalorder %s321_s16, %s321_s16 }
  0x74   : > { %p8046_p5 = scmp.ne.s32.totalorder %s321_s16, %s8045_s24  ;;  %p8054_p0 = scmp.lt.s32.totalorder %s8045_s24, %s8045_s24 }
  0x76   : > { %p8048_p7 = pnand %p8046_p5, %p8368_p13  ;;  %p8055_p1 = por %p8054_p0, %p8053_p12 }
  0x78   : > { %p8049_p9 = pneg %p8048_p7 }
  0x7a   : > { %p8056_p2 = pnand %p8055_p1, %p8049_p9 }
  0x7c   : > { %8059 = shalt.err (!%p8056_p2)
}
  0x7d   : > { %7785 = dma.hbm_to_vmem [thread:$0]  (!%p8352_p11), %s9642_s5, 2048, %s321_s16, [#allocation12], %s9653_s25, %s9653_s25, %s9655_s26  }
  0x7e   : > { %s8462_s14 = sadd.s32 1, %s8234_s12   ;;  %s41_s20 = sadd.s32 1, %s8230_s11 }
  0x7f   : > { %s38_s30 = ssub.s32 %s8234_s12, %s8462_s14  ;;  %p48_p13 = scmp.ne.s32.totalorder %s8230_s11, %s8226_s10 }
  0x80   : > { %p39_p4 = scmp.eq.s32.totalorder %s38_s30, 0  ;;  %p49_p8 = scmp.eq.s32.totalorder %s8234_s12, 0 }
  0x81   : > { %p9670_p6 = scmp.eq.s32.totalorder %s8322_s13, 1  ;;  %p7804_p3 = scmp.lt.s32.totalorder %s8234_s12, 2 }
  0x82   : > { %s8478_s28 = scalar_select %p39_p4, %s8230_s11, %s41_s20  }
  0x83   : > { %p8472_p10 = por %p9670_p6, %p48_p13  ;;  %p50_p5 = por %p49_p8, %p48_p13 }
  0x84   : > { %s340_s29 = sand.u32 1, %s8230_s11   ;;  %s6063_s16 = sshll.u32 %s8234_s12, 13 }
  0x85   : > { %s6036_s18 = sshll.u32 %s340_s29, 9  ;;  %s9672_s0 = sld [smem:[#allocation25_spill]] }
  0x86   : > { %s344_s24 = scalar_lea.vmem [#allocation2], %s6036_s18  ;;  %p8489_p11 = pnand %p7804_p3, %p50_p5 }
  0x87   : > { %s352_s22 = sshll.u32 %s344_s24, 4  ;;  %s8496_s21 = scalar_lea.hbm %s9638_s1, %s6063_s16  ;;  %s8487_s22 = int_to_ptr.vmem [resolvable:$true] %s352_s22 }
  0x88   : > { %s366_s23 = scalar_lea.vmem [#allocation5], %s6036_s18  ;;  %s8500_s26 = scalar_lea.sflag [#allocation3], %s340_s29 }
  0x89   : > { %s8498_s25 = sshll.u32 %s366_s23, 4  ;;  %p8062_p9 = pneg %p8489_p11  ;;  %s8532_s25 = int_to_ptr.vmem [resolvable:$true] %s8498_s25 }
  0x8b   : > { %s8485_s19 = scalar_lea.hbm %s9672_s0, %s6063_s16  ;;  %s8065_s20 = scalar_lea.hbm %s9672_s0, 16384 }
  0x8c   : > { %s8060_s24 = scalar_lea.hbm %s8485_s19, 8192  ;;  %p8066_p1 = scmp.lt.u32.totalorder %s8485_s19, %s9672_s0 }
  0x8d   : > { %p8061_p7 = scmp.ne.s32.totalorder %s8485_s19, %s8060_s24  ;;  %p8067_p2 = scmp.lt.u32.totalorder %s8065_s20, %s8060_s24 }
  0x8e   : > { %p8069_p4 = scmp.lt.u32.totalorder %s8060_s24, %s8485_s19 }
  0x8f   : > { %p8063_p12 = pnand %p8062_p9, %p8061_p7  ;;  %p8068_p13 = por %p8067_p2, %p8066_p1 }
  0x91   : > { %p8064_p0 = pneg %p8063_p12  ;;  %p8070_p8 = por %p8069_p4, %p8068_p13 }
  0x93   : > { %p8071_p6 = pnand %p8070_p8, %p8064_p0 }
  0x95   : > { %8074 = shalt.err (!%p8071_p6)
}
  0x96   : > { %s8075_s29 = scalar_lea.vmem %s8487_s22, 8192  ;;  %s8242_s2 = smov [#allocation2]  }
  0x97   : > { %p8076_p3 = scmp.ne.s32.totalorder %s8487_s22, %s8075_s29  ;;  %s8080_s3 = sshll.u32 %s8242_s2, 4  ;;  %s8081_s3 = int_to_ptr.vmem [resolvable:$false] %s8080_s3 }
  0x98   : > { %s8082_s18 = scalar_lea.vmem %s8081_s3, 16384  ;;  %p8083_p12 = scmp.lt.s32.totalorder %s8487_s22, %s8081_s3 }
  0x99   : > { %p8078_p5 = pnand %p8076_p3, %p8062_p9  ;;  %p8084_p1 = scmp.lt.s32.totalorder %s8082_s18, %s8075_s29 }
  0x9b   : > { %p8079_p7 = pneg %p8078_p5  ;;  %p8085_p2 = por %p8084_p1, %p8083_p12 }
  0x9d   : > { %p8086_p13 = pnand %p8085_p2, %p8079_p7 }
  0x9f   : > { %8089 = shalt.err (!%p8086_p13)
}
  0xa0   : > { %s9674_s23 = smov 8   ;;  %s9675_s24 = smov 128  }
  0xa1   : > { %7789 = dma.hbm_to_vmem [thread:$0]  (!%p8489_p11), %s8485_s19, 8192, %s8487_s22, %s8500_s26, %s9675_s24, %s9675_s24, %s9674_s23  }
  0xa2   : > { %s362_s20 = sand.u32 1, %s8234_s12   ;;  %s8090_s16 = scalar_lea.hbm %s8496_s21, 8192 }
  0xa3   : > { %s8535_s30 = scalar_lea.sflag [#allocation6], %s362_s20  ;;  %p8091_p0 = scmp.ne.s32.totalorder %s8496_s21, %s8090_s16 }
  0xa4   : > { %s8095_s3 = scalar_lea.hbm %s9638_s1, 16384  ;;  %p8096_p6 = scmp.lt.u32.totalorder %s8496_s21, %s9638_s1 }
  0xa5   : > { %p8093_p4 = pnand %p8091_p0, %p8062_p9  ;;  %p8097_p3 = scmp.lt.u32.totalorder %s8095_s3, %s8090_s16 }
  0xa6   : > { %p8099_p7 = scmp.lt.u32.totalorder %s8090_s16, %s8496_s21 }
  0xa7   : > { %p8094_p8 = pneg %p8093_p4  ;;  %p8098_p5 = por %p8097_p3, %p8096_p6 }
  0xa9   : > { %p8100_p12 = por %p8099_p7, %p8098_p5 }
  0xab   : > { %p8101_p1 = pnand %p8100_p12, %p8094_p8 }
  0xad   : > { %8104 = shalt.err (!%p8101_p1)
}
  0xae   : > { %s8105_s26 = scalar_lea.vmem %s8532_s25, 8192  ;;  %s8243_s19 = smov [#allocation5]  }
  0xaf   : > { %p8106_p2 = scmp.ne.s32.totalorder %s8532_s25, %s8105_s26  ;;  %s8110_s22 = sshll.u32 %s8243_s19, 4  ;;  %s8111_s22 = int_to_ptr.vmem [resolvable:$false] %s8110_s22 }
  0xb0   : > { %s8112_s0 = scalar_lea.vmem %s8111_s22, 16384  ;;  %p8113_p4 = scmp.lt.s32.totalorder %s8532_s25, %s8111_s22 }
  0xb1   : > { %p8108_p13 = pnand %p8106_p2, %p8062_p9  ;;  %p8114_p6 = scmp.lt.s32.totalorder %s8112_s0, %s8105_s26 }
  0xb3   : > { %p8109_p0 = pneg %p8108_p13  ;;  %p8115_p3 = por %p8114_p6, %p8113_p4 }
  0xb5   : > { %p8116_p5 = pnand %p8115_p3, %p8109_p0 }
  0xb7   : > { %8119 = shalt.err (!%p8116_p5)
}
  0xb8   : > { %7792 = dma.hbm_to_vmem [thread:$0]  (!%p8489_p11), %s8496_s21, 8192, %s8532_s25, %s8535_s30, %s9675_s24, %s9675_s24, %s9674_s23  }
  0xb9   : > { %p9676_p9 = scmp.ne.s32.totalorder %s9665_s17, 0 }
  0xba   : > { %s8567_s20 = sand.u32 (!%p9676_p9), 1, %s8226_s10   ;;  %p9677_p8 = scmp.ne.s32.totalorder (!%p9676_p9), %s9662_s15, 0 }
  0xbb   : > { %386 = sbr.rel (%p9676_p9) target bundleno = 1996 (0x7cc), region = 52  ;;  %s8570_s16 = sshll.u32 (!%p9676_p9), %s8567_s20, 9 }
  0xbc   : > { %s389_s8 = scalar_lea.sflag (!%p9676_p9), [#allocation3], %s8567_s20  ;;  %s8574_s29 = scalar_lea.vmem (!%p9676_p9), [#allocation2], %s8570_s16 }
  0xc2   : > { %8193 = dma.done.wait (%p9677_p8), %s389_s8, 8192  }
  0xc3   : > { %8195 = vsyncadd (%p9677_p8), %s389_s8, 4294959104  ;;  %s397_s17 = sand.u32 1, %s8322_s13   ;;  %s8582_s21 = scalar_lea.vmem [#allocation5], %s8570_s16 }
  0xc4   : > { %s398_s25 = scalar_lea.sflag [#allocation6], %s397_s17 }
  0xc5   : > { %8197 = dma.done.wait (%p9677_p8), %s398_s25, 8192  }
  0xc6   : > { %8199 = vsyncadd (%p9677_p8), %s398_s25, 4294959104  ;;  %p9678_p11 = scmp.eq.s32.totalorder %s8322_s13, 0 }
  0xc8   : > { %8201 = dma.done.wait (%p9678_p11), [#allocation6], 2048   ;;  %p9679_p7 = pmov %p9678_p11 }
  0xca   : > { %8203 = vsyncadd (%p9679_p7), [#allocation6], 4294965248  ;;  %p9680_p12 = pmov %p9679_p7 }
  0xcb   : > { %p9681_p1 = pmov %p9679_p7 }
  0xcc   : > { %8205 = dma.done.wait (%p9680_p12), [#allocation9], 4096  }
  0xcd   : > { %8207 = vsyncadd (%p9681_p1), [#allocation9], 4294963200  ;;  %p9682_p2 = pmov %p9681_p1 }
  0xce   : > { %p9683_p13 = pmov %p9681_p1 }
  0xcf   : > { %8209 = dma.done.wait (%p9682_p2), [#allocation12], 2048  }
  0xd0   : > { %8211 = vsyncadd (%p9683_p13), [#allocation12], 4294965248  ;;  %v563_v0 = vld [vmem:[%s8582_s21] sm:$0xff]  ;;  %v564_v1 = vld [vmem:[%s8582_s21 + $0x8] sm:$0xff]  ;;  %s6051_s15 = sshll.u32 %s8567_s20, 2  ;;  %s6068_s24 = sshll.u32 %s8322_s13, 13 }
  0xd1   : > { %v565_v2 = vld [vmem:[%s8582_s21 + $0x10] sm:$0xff]  ;;  %v7461_v3 = vpack.c.bf16 %v564_v1, %v563_v0  ;;  %v566_v4 = vld [vmem:[%s8582_s21 + $0x18] sm:$0xff]  ;;  %v567_v6 = vld [vmem:[%s8582_s21 + $0x20] sm:$0xff]  ;;  %s9485_s23 = scalar_lea.vmem [#allocation13], %s6051_s15  ;;  %s9553_s18 = scalar_lea.hbm %s9646_s9, %s6068_s24 }
  0xd2   : > { %v7465_v5 = vpack.c.bf16 %v566_v4, %v565_v2  ;;  %v568_v7 = vld [vmem:[%s8582_s21 + $0x28] sm:$0xff]  ;;  %v8607_v9 = vld [vmem:[%s8574_s29] sm:$0xff]  ;;  %v569_v11 = vld [vmem:[%s8582_s21 + $0x30] sm:$0xff]  ;;  %s5833_s26 = scalar_lea.sflag [#allocation15], %s8567_s20  ;;  %s8245_s22 = smov [#allocation14]  }
  0xd3   : > { %7462 = vmatprep.subr.bf16.mxu0 %v7461_v3  ;;  %v7469_v8 = vpack.c.bf16 %v568_v7, %v567_v6  ;;  %v579_v10 = vld [vmem:[%s8582_s21 + $0x80] sm:$0xff]  ;;  %v570_v12 = vld [vmem:[%s8582_s21 + $0x38] sm:$0xff]  ;;  %6629 = vmatprep.mubr.f32.mxu0 %v8607_v9  ;;  %v580_v13 = vld [vmem:[%s8582_s21 + $0x88] sm:$0xff]  ;;  %s8124_s0 = sshll.u32 %s8245_s22, 4  ;;  %s8125_s0 = int_to_ptr.vmem [resolvable:$false] %s8124_s0 }
  0xd4   : > { %7464 = vmatpush3.bf16.msra.mxu0 %v7461_v3  ;;  %v7493_v14 = vpack.c.bf16 %v580_v13, %v579_v10  ;;  %v581_v15 = vld [vmem:[%s8582_s21 + $0x90] sm:$0xff]  ;;  %v582_v16 = vld [vmem:[%s8582_s21 + $0x98] sm:$0xff]  ;;  %v583_v18 = vld [vmem:[%s8582_s21 + $0xa0] sm:$0xff]  ;;  %v7473_v20 = vpack.c.bf16 %v570_v12, %v569_v11  ;;  %s8126_s8 = scalar_lea.vmem %s8125_s0, 16384 }
  0xd5   : > { %7466 = vmatprep.subr.bf16.mxu0 %v7465_v5  ;;  %v7497_v17 = vpack.c.bf16 %v582_v16, %v581_v15  ;;  %v584_v19 = vld [vmem:[%s8582_s21 + $0xa8] sm:$0xff]  ;;  %v571_v21 = vld [vmem:[%s8582_s21 + $0x40] sm:$0xff]  ;;  %v585_v24 = vld [vmem:[%s8582_s21 + $0xb0] sm:$0xff] }
  0xd6   : > { %7494 = vmatprep.subr.bf16.mxu1 %v7493_v14  ;;  %v572_v22 = vld [vmem:[%s8582_s21 + $0x48] sm:$0xff]  ;;  %v7501_v23 = vpack.c.bf16 %v584_v19, %v583_v18  ;;  %v586_v25 = vld [vmem:[%s8582_s21 + $0xb8] sm:$0xff]  ;;  %v573_v27 = vld [vmem:[%s8582_s21 + $0x50] sm:$0xff] }
  0xd7   : > { %7496 = vmatpush3.bf16.msra.mxu1 %v7493_v14  ;;  %v7477_v26 = vpack.c.bf16 %v572_v22, %v571_v21  ;;  %v574_v28 = vld [vmem:[%s8582_s21 + $0x58] sm:$0xff]  ;;  %v7505_v29 = vpack.c.bf16 %v586_v25, %v585_v24  ;;  %v587_v30 = vld [vmem:[%s8582_s21 + $0xc0] sm:$0xff]  ;;  %v588_v31 = vld [vmem:[%s8582_s21 + $0xc8] sm:$0xff] }
  0xd8   : > { %7468 = vmatpush3.bf16.msra.mxu0 %v7465_v5  ;;  %7498 = vmatprep.subr.bf16.mxu1 %v7497_v17  ;;  %v482_v32 = vld [vmem:[%s8574_s29 + $0x80] sm:$0xff]  ;;  %v7481_v33 = vpack.c.bf16 %v574_v28, %v573_v27  ;;  %v576_v35 = vld [vmem:[%s8582_s21 + $0x68] sm:$0xff]  ;;  %v7509_v36 = vpack.c.bf16 %v588_v31, %v587_v30  ;;  %v589_v37 = vld [vmem:[%s8582_s21 + $0xd0] sm:$0xff] }
  0xd9   : > { %7470 = vmatprep.subr.bf16.mxu0 %v7469_v8  ;;  %6685 = vmatprep.mubr.f32.mxu1 %v482_v32  ;;  %v575_v34 = vld [vmem:[%s8582_s21 + $0x60] sm:$0xff]  ;;  %v590_v38 = vld [vmem:[%s8582_s21 + $0xd8] sm:$0xff]  ;;  %v577_v40 = vld [vmem:[%s8582_s21 + $0x70] sm:$0xff] }
  0xda   : > { %v7485_v39 = vpack.c.bf16 %v576_v35, %v575_v34  ;;  %v578_v41 = vld [vmem:[%s8582_s21 + $0x78] sm:$0xff]  ;;  %v7513_v42 = vpack.c.bf16 %v590_v38, %v589_v37  ;;  %v591_v43 = vld [vmem:[%s8582_s21 + $0xe0] sm:$0xff]  ;;  %v592_v44 = vld [vmem:[%s8582_s21 + $0xe8] sm:$0xff] }
  0xdb   : > { %7500 = vmatpush3.bf16.msra.mxu1 %v7497_v17  ;;  %v7489_v45 = vpack.c.bf16 %v578_v41, %v577_v40  ;;  %v595_v46 = vld [vmem:[%s8582_s21 + $0x100] sm:$0xff]  ;;  %v596_v47 = vld [vmem:[%s8582_s21 + $0x108] sm:$0xff]  ;;  %v7517_v48 = vpack.c.bf16 %v592_v44, %v591_v43  ;;  %v593_v49 = vld [vmem:[%s8582_s21 + $0xf0] sm:$0xff] }
  0xdc   : > { %7472 = vmatpush3.bf16.msra.mxu0 %v7469_v8  ;;  %7502 = vmatprep.subr.bf16.mxu1 %v7501_v23  ;;  %v594_v50 = vld [vmem:[%s8582_s21 + $0xf8] sm:$0xff]  ;;  %v7525_v51 = vpack.c.bf16 %v596_v47, %v595_v46  ;;  %v597_v52 = vld [vmem:[%s8582_s21 + $0x110] sm:$0xff]  ;;  %v467_v55 = vld [vmem:[%s8574_s29 + $0x8] sm:$0xff] }
  0xdd   : > { %7474 = vmatprep.subr.bf16.mxu0 %v7473_v20  ;;  %v598_v53 = vld [vmem:[%s8582_s21 + $0x118] sm:$0xff]  ;;  %v7521_v54 = vpack.c.bf16 %v594_v50, %v593_v49  ;;  %v611_v56 = vld [vmem:[%s8582_s21 + $0x180] sm:$0xff]  ;;  %v612_v57 = vld [vmem:[%s8582_s21 + $0x188] sm:$0xff] }
  0xde   : > { %v468_v58 = vld [vmem:[%s8574_s29 + $0x10] sm:$0xff]  ;;  %v7529_v59 = vpack.c.bf16 %v598_v53, %v597_v52  ;;  %v599_v60 = vld [vmem:[%s8582_s21 + $0x120] sm:$0xff]  ;;  %v600_v61 = vld [vmem:[%s8582_s21 + $0x128] sm:$0xff]  ;;  %v7557_v62 = vpack.c.bf16 %v612_v57, %v611_v56 }
  0xdf   : > { %7504 = vmatpush3.bf16.msra.mxu1 %v7501_v23  ;;  %v469_v63 = vld [vmem:[%s8574_s29 + $0x18] sm:$0xff]  ;;  %v613_v0 = vld [vmem:[%s8582_s21 + $0x190] sm:$0xff]  ;;  %v470_v2 = vld [vmem:[%s8574_s29 + $0x20] sm:$0xff]  ;;  %v7533_v3 = vpack.c.bf16 %v600_v61, %v599_v60 }
  0xe0   : > { %7476 = vmatpush3.bf16.msra.mxu0 %v7473_v20  ;;  %7506 = vmatprep.subr.bf16.mxu1 %v7505_v29  ;;  %v614_v1 = vld [vmem:[%s8582_s21 + $0x198] sm:$0xff]  ;;  %v483_v4 = vld [vmem:[%s8574_s29 + $0x88] sm:$0xff]  ;;  %v601_v5 = vld [vmem:[%s8582_s21 + $0x130] sm:$0xff] }
  0xe1   : > { %7478 = vmatprep.subr.bf16.mxu0 %v7477_v26  ;;  %v602_v6 = vld [vmem:[%s8582_s21 + $0x138] sm:$0xff]  ;;  %v484_v7 = vld [vmem:[%s8574_s29 + $0x90] sm:$0xff]  ;;  %v7561_v8 = vpack.c.bf16 %v614_v1, %v613_v0  ;;  %v471_v10 = vld [vmem:[%s8574_s29 + $0x28] sm:$0xff] }
  0xe2   : > { %v615_v11 = vld [vmem:[%s8582_s21 + $0x1a0] sm:$0xff]  ;;  %v616_v12 = vld [vmem:[%s8582_s21 + $0x1a8] sm:$0xff]  ;;  %v472_v13 = vld [vmem:[%s8574_s29 + $0x30] sm:$0xff]  ;;  %v7537_v14 = vpack.c.bf16 %v602_v6, %v601_v5 }
  0xe3   : > { %7508 = vmatpush3.bf16.msra.mxu1 %v7505_v29  ;;  %v485_v15 = vld [vmem:[%s8574_s29 + $0x98] sm:$0xff]  ;;  %v603_v16 = vld [vmem:[%s8582_s21 + $0x140] sm:$0xff]  ;;  %v604_v17 = vld [vmem:[%s8582_s21 + $0x148] sm:$0xff]  ;;  %v7565_v19 = vpack.c.bf16 %v616_v12, %v615_v11 }
  0xe4   : > { %7480 = vmatpush3.bf16.msra.mxu0 %v7477_v26  ;;  %7510 = vmatprep.subr.bf16.mxu1 %v7509_v36  ;;  %v486_v18 = vld [vmem:[%s8574_s29 + $0xa0] sm:$0xff]  ;;  %v473_v20 = vld [vmem:[%s8574_s29 + $0x38] sm:$0xff]  ;;  %v617_v21 = vld [vmem:[%s8582_s21 + $0x1b0] sm:$0xff]  ;;  %v7541_v24 = vpack.c.bf16 %v604_v17, %v603_v16 }
  0xe5   : > { %7482 = vmatprep.subr.bf16.mxu0 %v7481_v33  ;;  %v618_v22 = vld [vmem:[%s8582_s21 + $0x1b8] sm:$0xff]  ;;  %v474_v23 = vld [vmem:[%s8574_s29 + $0x40] sm:$0xff]  ;;  %v487_v25 = vld [vmem:[%s8574_s29 + $0xa8] sm:$0xff] }
  0xe6   : > { %v605_v26 = vld [vmem:[%s8582_s21 + $0x150] sm:$0xff]  ;;  %v606_v27 = vld [vmem:[%s8582_s21 + $0x158] sm:$0xff]  ;;  %v7569_v29 = vpack.c.bf16 %v618_v22, %v617_v21  ;;  %v475_v30 = vld [vmem:[%s8574_s29 + $0x48] sm:$0xff] }
  0xe7   : > { %7512 = vmatpush3.bf16.msra.mxu1 %v7509_v36  ;;  %v488_v28 = vld [vmem:[%s8574_s29 + $0xb0] sm:$0xff]  ;;  %v619_v31 = vld [vmem:[%s8582_s21 + $0x1c0] sm:$0xff]  ;;  %v620_v32 = vld [vmem:[%s8582_s21 + $0x1c8] sm:$0xff]  ;;  %v7545_v34 = vpack.c.bf16 %v606_v27, %v605_v26 }
  0xe8   : > { %7484 = vmatpush3.bf16.msra.mxu0 %v7481_v33  ;;  %7514 = vmatprep.subr.bf16.mxu1 %v7513_v42  ;;  %v476_v33 = vld [vmem:[%s8574_s29 + $0x50] sm:$0xff]  ;;  %v489_v35 = vld [vmem:[%s8574_s29 + $0xb8] sm:$0xff]  ;;  %v607_v36 = vld [vmem:[%s8582_s21 + $0x160] sm:$0xff] }
  0xe9   : > { %7486 = vmatprep.subr.bf16.mxu0 %v7485_v39  ;;  %v608_v37 = vld [vmem:[%s8582_s21 + $0x168] sm:$0xff]  ;;  %v490_v38 = vld [vmem:[%s8574_s29 + $0xc0] sm:$0xff]  ;;  %v477_v40 = vld [vmem:[%s8574_s29 + $0x58] sm:$0xff] }
  0xea   : > { %v621_v41 = vld [vmem:[%s8582_s21 + $0x1d0] sm:$0xff]  ;;  %v478_v43 = vld [vmem:[%s8574_s29 + $0x60] sm:$0xff]  ;;  %v7549_v44 = vpack.c.bf16 %v608_v37, %v607_v36  ;;  %v610_v47 = vld [vmem:[%s8582_s21 + $0x178] sm:$0xff] }
  0xeb   : > { %7516 = vmatpush3.bf16.msra.mxu1 %v7513_v42  ;;  %v622_v42 = vld [vmem:[%s8582_s21 + $0x1d8] sm:$0xff]  ;;  %v609_v46 = vld [vmem:[%s8582_s21 + $0x170] sm:$0xff]  ;;  %v479_v50 = vld [vmem:[%s8574_s29 + $0x68] sm:$0xff] }
  0xec   : > { %7488 = vmatpush3.bf16.msra.mxu0 %v7485_v39  ;;  %7518 = vmatprep.subr.bf16.mxu1 %v7517_v48  ;;  %v7573_v39 = vpack.c.bf16 %v620_v32, %v619_v31  ;;  %v7577_v49 = vpack.c.bf16 %v622_v42, %v621_v41  ;;  %v624_v52 = vld [vmem:[%s8582_s21 + $0x1e8] sm:$0xff]  ;;  %v480_v53 = vld [vmem:[%s8574_s29 + $0x70] sm:$0xff]  ;;  %v627_v56 = vld [vmem:[#allocation7] sm:$0xff] }
  0xed   : > { %7490 = vmatprep.subr.bf16.mxu0 %v7489_v45  ;;  %v628_v57 = vld [vmem:[#allocation7 + $0x8] sm:$0xff]  ;;  %v481_v60 = vld [vmem:[%s8574_s29 + $0x78] sm:$0xff]  ;;  %v625_v61 = vld [vmem:[%s8582_s21 + $0x1f0] sm:$0xff] }
  0xee   : > { %v7589_v0 = vpack.c.bf16 %v628_v57, %v627_v56  ;;  %v495_v1 = vld [vmem:[%s8574_s29 + $0xe8] sm:$0xff]  ;;  %v631_v11 = vld [vmem:[#allocation7 + $0x20] sm:$0xff]  ;;  %v504_v22 = vld [vmem:[%s8574_s29 + $0x130] sm:$0xff] }
  0xef   : > { %7520 = vmatpush3.bf16.msra.mxu1 %v7517_v48  ;;  %v492_v48 = vld [vmem:[%s8574_s29 + $0xd0] sm:$0xff]  ;;  %v499_v6 = vld [vmem:[%s8574_s29 + $0x108] sm:$0xff]  ;;  %v518_v27 = vld [vmem:[%s8574_s29 + $0x1a0] sm:$0xff] }
  0xf0   : > { %7492 = vmatpush3.bf16.msra.mxu0 %v7489_v45  ;;  %7522 = vmatprep.subr.bf16.mxu1 %v7521_v54  ;;  %v491_v45 = vld [vmem:[%s8574_s29 + $0xc8] sm:$0xff]  ;;  %v637_v32 = vld [vmem:[#allocation7 + $0x50] sm:$0xff]  ;;  %v522_v41 = vld [vmem:[%s8574_s29 + $0x1c0] sm:$0xff] }
  0xf1   : > { %7526 = vmatprep.subr.bf16.mxu0 %v7525_v51  ;;  %v632_v12 = vld [vmem:[#allocation7 + $0x28] sm:$0xff]  ;;  %v508_v36 = vld [vmem:[%s8574_s29 + $0x150] sm:$0xff]  ;;  %v509_v42 = vld [vmem:[%s8574_s29 + $0x158] sm:$0xff] }
  0xf2   : > { %v7597_v16 = vpack.c.bf16 %v632_v12, %v631_v11  ;;  %v515_v17 = vld [vmem:[%s8574_s29 + $0x188] sm:$0xff]  ;;  %v528_v56 = vld [vmem:[%s8574_s29 + $0x1f0] sm:$0xff]  ;;  %v529_v57 = vld [vmem:[%s8574_s29 + $0x1f8] sm:$0xff] }
  0xf3   : > { %6630 = vmatmul.mubr.f32.vlgmr.msra.gmra.mrb[0].mxu0 %v467_v55  ;;  %7524 = vmatpush3.bf16.msra.mxu1 %v7521_v54  ;;  %v7553_v54 = vpack.c.bf16 %v610_v47, %v609_v46  ;;  %v493_v55 = vld [vmem:[%s8574_s29 + $0xd8] sm:$0xff]  ;;  %v503_v21 = vld [vmem:[%s8574_s29 + $0x128] sm:$0xff]  ;;  %v641_v46 = vld [vmem:[#allocation7 + $0x70] sm:$0xff] }
  0xf4   : > { %6632 = vmatprep.mubr.f32.mxu0 %v468_v58  ;;  %7528 = vmatpush3.bf16.msra.mxu0 %v7525_v51  ;;  %v623_v51 = vld [vmem:[%s8582_s21 + $0x1e0] sm:$0xff]  ;;  %v636_v26 = vld [vmem:[#allocation7 + $0x48] sm:$0xff]  ;;  %v642_v47 = vld [vmem:[#allocation7 + $0x78] sm:$0xff] }
  0xf5   : > { %7530 = vmatprep.subr.bf16.mxu0 %v7529_v59  ;;  %7558 = vmatprep.subr.bf16.mxu1 %v7557_v62  ;;  %v494_v58 = vld [vmem:[%s8574_s29 + $0xe0] sm:$0xff]  ;;  %v519_v31 = vld [vmem:[%s8574_s29 + $0x1a8] sm:$0xff] }
  0xf6   : > { %6686 = vmatmul.mubr.f32.vlgmr.msra.gmra.mrb[0].mxu1 %v483_v4  ;;  %v496_v4 = vld [vmem:[%s8574_s29 + $0xf0] sm:$0xff] }
  0xf7   : > { %6633 = vmatmul.mubr.f32.gmra.mrb[2].mxu0 %v469_v63  ;;  %6688 = vmatprep.mubr.f32.mxu1 %v484_v7  ;;  %v498_v63 = vld [vmem:[%s8574_s29 + $0x100] sm:$0xff]  ;;  %v500_v7 = vld [vmem:[%s8574_s29 + $0x110] sm:$0xff] }
  0xf8   : > { %6635 = vmatprep.mubr.f32.mxu0 %v470_v2  ;;  %7532 = vmatpush3.bf16.msra.mxu0 %v7529_v59  ;;  %v7581_v59 = vpack.c.bf16 %v624_v52, %v623_v51  ;;  %v629_v2 = vld [vmem:[#allocation7 + $0x10] sm:$0xff]  ;;  %v7617_v51 = vpack.c.bf16 %v642_v47, %v641_v46  ;;  %v525_v52 = vld [vmem:[%s8574_s29 + $0x1d8] sm:$0xff] }
  0xf9   : > { %7534 = vmatprep.subr.bf16.mxu0 %v7533_v3  ;;  %7560 = vmatpush3.bf16.msra.mxu1 %v7557_v62  ;;  %v626_v62 = vld [vmem:[%s8582_s21 + $0x1f8] sm:$0xff] }
  0xfa   : > { %7562 = vmatprep.subr.bf16.mxu1 %v7561_v8  ;;  %6689 = vmatmul.mubr.f32.gmra.mrb[2].mxu1 %v485_v15  ;;  %v7585_v5 = vpack.c.bf16 %v626_v62, %v625_v61  ;;  %v502_v15 = vld [vmem:[%s8574_s29 + $0x120] sm:$0xff] }
  0xfb   : > { %6636 = vmatmul.mubr.f32.gmra.mrb[4].mxu0 %v471_v10  ;;  %6691 = vmatprep.mubr.f32.mxu1 %v486_v18  ;;  %v497_v10 = vld [vmem:[%s8574_s29 + $0xf8] sm:$0xff]  ;;  %v633_v18 = vld [vmem:[#allocation7 + $0x30] sm:$0xff] }
  0xfc   : > { %6638 = vmatprep.mubr.f32.mxu0 %v472_v13  ;;  %7536 = vmatpush3.bf16.msra.mxu0 %v7533_v3  ;;  %v630_v3 = vld [vmem:[#allocation7 + $0x18] sm:$0xff]  ;;  %v514_v13 = vld [vmem:[%s8574_s29 + $0x180] sm:$0xff] }
  0xfd   : > { %7538 = vmatprep.subr.bf16.mxu0 %v7537_v14  ;;  %7564 = vmatpush3.bf16.msra.mxu1 %v7561_v8  ;;  %v7593_v8 = vpack.c.bf16 %v630_v3, %v629_v2 }
  0xfe   : > { %7566 = vmatprep.subr.bf16.mxu1 %v7565_v19  ;;  %6692 = vmatmul.mubr.f32.gmra.mrb[4].mxu1 %v487_v25  ;;  %v635_v25 = vld [vmem:[#allocation7 + $0x40] sm:$0xff] }
  0xff   : > { %6639 = vmatmul.mubr.f32.gmra.mrb[6].mxu0 %v473_v20  ;;  %6694 = vmatprep.mubr.f32.mxu1 %v488_v28  ;;  %v516_v20 = vld [vmem:[%s8574_s29 + $0x190] sm:$0xff]  ;;  %v505_v28 = vld [vmem:[%s8574_s29 + $0x138] sm:$0xff] }
 0x100   : > { %6641 = vmatprep.mubr.f32.mxu0 %v474_v23  ;;  %7540 = vmatpush3.bf16.msra.mxu0 %v7537_v14  ;;  %v501_v14 = vld [vmem:[%s8574_s29 + $0x118] sm:$0xff] }
 0x101   : > { %7542 = vmatprep.subr.bf16.mxu0 %v7541_v24  ;;  %7568 = vmatpush3.bf16.msra.mxu1 %v7565_v19  ;;  %v634_v19 = vld [vmem:[#allocation7 + $0x38] sm:$0xff] }
 0x102   : > { %7570 = vmatprep.subr.bf16.mxu1 %v7569_v29  ;;  %6695 = vmatmul.mubr.f32.gmra.mrb[6].mxu1 %v489_v35  ;;  %v7601_v23 = vpack.c.bf16 %v634_v19, %v633_v18  ;;  %v507_v35 = vld [vmem:[%s8574_s29 + $0x148] sm:$0xff] }
 0x103   : > { %6642 = vmatmul.mubr.f32.gmra.mrb[8].mxu0 %v475_v30  ;;  %6697 = vmatprep.mubr.f32.mxu1 %v490_v38  ;;  %v7605_v30 = vpack.c.bf16 %v636_v26, %v635_v25  ;;  %v521_v38 = vld [vmem:[%s8574_s29 + $0x1b8] sm:$0xff] }
 0x104   : > { %6644 = vmatprep.mubr.f32.mxu0 %v476_v33  ;;  %7544 = vmatpush3.bf16.msra.mxu0 %v7541_v24  ;;  %v517_v24 = vld [vmem:[%s8574_s29 + $0x198] sm:$0xff] }
 0x105   : > { %7546 = vmatprep.subr.bf16.mxu0 %v7545_v34  ;;  %7572 = vmatpush3.bf16.msra.mxu1 %v7569_v29  ;;  %v506_v29 = vld [vmem:[%s8574_s29 + $0x140] sm:$0xff]  ;;  %v638_v33 = vld [vmem:[#allocation7 + $0x58] sm:$0xff] }
 0x106   : > { %7574 = vmatprep.subr.bf16.mxu1 %v7573_v39  ;;  %6698 = vmatmul.mubr.f32.gmra.mrb[8].mxu1 %v491_v45  ;;  %v7609_v37 = vpack.c.bf16 %v638_v33, %v637_v32  ;;  %v523_v45 = vld [vmem:[%s8574_s29 + $0x1c8] sm:$0xff] }
 0x107   : > { %6645 = vmatmul.mubr.f32.gmra.mrb[10].mxu0 %v477_v40  ;;  %6700 = vmatprep.mubr.f32.mxu1 %v492_v48  ;;  %v640_v40 = vld [vmem:[#allocation7 + $0x68] sm:$0xff]  ;;  %v524_v48 = vld [vmem:[%s8574_s29 + $0x1d0] sm:$0xff] }
 0x108   : > { %6647 = vmatprep.mubr.f32.mxu0 %v478_v43  ;;  %7548 = vmatpush3.bf16.msra.mxu0 %v7545_v34  ;;  %v520_v34 = vld [vmem:[%s8574_s29 + $0x1b0] sm:$0xff]  ;;  %v510_v43 = vld [vmem:[%s8574_s29 + $0x160] sm:$0xff] }
 0x109   : > { %7550 = vmatprep.subr.bf16.mxu0 %v7549_v44  ;;  %7576 = vmatpush3.bf16.msra.mxu1 %v7573_v39  ;;  %v639_v39 = vld [vmem:[#allocation7 + $0x60] sm:$0xff] }
 0x10a   : > { %7578 = vmatprep.subr.bf16.mxu1 %v7577_v49  ;;  %6701 = vmatmul.mubr.f32.gmra.mrb[10].mxu1 %v493_v55  ;;  %v527_v55 = vld [vmem:[%s8574_s29 + $0x1e8] sm:$0xff] }
 0x10b   : > { %6648 = vmatmul.mubr.f32.gmra.mrb[12].mxu0 %v479_v50  ;;  %6703 = vmatprep.mubr.f32.mxu1 %v494_v58  ;;  %v512_v50 = vld [vmem:[%s8574_s29 + $0x170] sm:$0xff] }
 0x10c   : > { %6650 = vmatprep.mubr.f32.mxu0 %v480_v53  ;;  %7552 = vmatpush3.bf16.msra.mxu0 %v7549_v44  ;;  %v7613_v44 = vpack.c.bf16 %v640_v40, %v639_v39  ;;  %v526_v53 = vld [vmem:[%s8574_s29 + $0x1e0] sm:$0xff] }
 0x10d   : > { %7554 = vmatprep.subr.bf16.mxu0 %v7553_v54  ;;  %7580 = vmatpush3.bf16.msra.mxu1 %v7577_v49  ;;  %v511_v49 = vld [vmem:[%s8574_s29 + $0x168] sm:$0xff] }
 0x10e   : > { %7582 = vmatprep.subr.bf16.mxu1 %v7581_v59  ;;  %6704 = vmatmul.mubr.f32.gmra.mrb[12].mxu1 %v495_v1 }
 0x10f   : > { %6651 = vmatmul.mubr.f32.gmra.mrb[14].mxu0 %v481_v60  ;;  %6706 = vmatprep.mubr.f32.mxu1 %v496_v4 }
 0x110   : > { %7556 = vmatpush3.bf16.msra.mxu0 %v7553_v54  ;;  %6741 = vmatprep.mubr.f32.mxu0 %v498_v63  ;;  %v513_v54 = vld [vmem:[%s8574_s29 + $0x178] sm:$0xff] }
 0x111   : > { %7590 = vmatprep.subr.bf16.mxu0 %v7589_v0  ;;  %7584 = vmatpush3.bf16.msra.mxu1 %v7581_v59 }
 0x112   : > { %7586 = vmatprep.subr.bf16.mxu1 %v7585_v5  ;;  %6707 = vmatmul.mubr.f32.gmra.mrb[14].mxu1 %v497_v10 }
 0x113   : > { %6742 = vmatmul.mubr.f32.vlgmr.msra.gmra.mrb[16].mxu0 %v499_v6  ;;  %6797 = vmatprep.mubr.f32.mxu1 %v514_v13 }
 0x114   : > { %6744 = vmatprep.mubr.f32.mxu0 %v500_v7  ;;  %7592 = vmatpush3.bf16.msra.mxu0 %v7589_v0 }
 0x115   : > { %7594 = vmatprep.subr.bf16.mxu0 %v7593_v8  ;;  %7588 = vmatpush3.bf16.msra.mxu1 %v7585_v5 }
 0x117   : > { %6745 = vmatmul.mubr.f32.gmra.mrb[18].mxu0 %v501_v14 }
 0x118   : > { %6747 = vmatprep.mubr.f32.mxu0 %v502_v15  ;;  %7596 = vmatpush3.bf16.msra.mxu0 %v7593_v8 }
 0x119   : > { %6798 = vmatmul.mubr.f32.vlgmr.msra.gmra.mrb[16].mxu1 %v515_v17  ;;  %7598 = vmatprep.subr.bf16.mxu0 %v7597_v16 }
 0x11a   : > { %6800 = vmatprep.mubr.f32.mxu1 %v516_v20 }
 0x11b   : > { %6748 = vmatmul.mubr.f32.gmra.mrb[20].mxu0 %v503_v21 }
 0x11c   : > { %6750 = vmatprep.mubr.f32.mxu0 %v504_v22  ;;  %7600 = vmatpush3.bf16.msra.mxu0 %v7597_v16 }
 0x11d   : > { %6801 = vmatmul.mubr.f32.gmra.mrb[18].mxu1 %v517_v24  ;;  %7602 = vmatprep.subr.bf16.mxu0 %v7601_v23 }
 0x11e   : > { %6803 = vmatprep.mubr.f32.mxu1 %v518_v27 }
 0x11f   : > { %6751 = vmatmul.mubr.f32.gmra.mrb[22].mxu0 %v505_v28 }
 0x120   : > { %6753 = vmatprep.mubr.f32.mxu0 %v506_v29  ;;  %7604 = vmatpush3.bf16.msra.mxu0 %v7601_v23 }
 0x121   : > { %6804 = vmatmul.mubr.f32.gmra.mrb[20].mxu1 %v519_v31  ;;  %7606 = vmatprep.subr.bf16.mxu0 %v7605_v30 }
 0x122   : > { %6806 = vmatprep.mubr.f32.mxu1 %v520_v34 }
 0x123   : > { %6754 = vmatmul.mubr.f32.gmra.mrb[24].mxu0 %v507_v35 }
 0x124   : > { %6756 = vmatprep.mubr.f32.mxu0 %v508_v36  ;;  %7608 = vmatpush3.bf16.msra.mxu0 %v7605_v30 }
 0x125   : > { %6807 = vmatmul.mubr.f32.gmra.mrb[22].mxu1 %v521_v38  ;;  %7610 = vmatprep.subr.bf16.mxu0 %v7609_v37 }
 0x126   : > { %6809 = vmatprep.mubr.f32.mxu1 %v522_v41 }
 0x127   : > { %6757 = vmatmul.mubr.f32.gmra.mrb[26].mxu0 %v509_v42 }
 0x128   : > { %6759 = vmatprep.mubr.f32.mxu0 %v510_v43  ;;  %7612 = vmatpush3.bf16.msra.mxu0 %v7609_v37 }
 0x129   : > { %6810 = vmatmul.mubr.f32.gmra.mrb[24].mxu1 %v523_v45  ;;  %7614 = vmatprep.subr.bf16.mxu0 %v7613_v44 }
 0x12a   : > { %6812 = vmatprep.mubr.f32.mxu1 %v524_v48 }
 0x12b   : > { %6760 = vmatmul.mubr.f32.gmra.mrb[28].mxu0 %v511_v49 }
 0x12c   : > { %6762 = vmatprep.mubr.f32.mxu0 %v512_v50  ;;  %7616 = vmatpush3.bf16.msra.mxu0 %v7613_v44 }
 0x12d   : > { %6813 = vmatmul.mubr.f32.gmra.mrb[26].mxu1 %v525_v52  ;;  %7618 = vmatprep.subr.bf16.mxu0 %v7617_v51 }
 0x12e   : > { %6815 = vmatprep.mubr.f32.mxu1 %v526_v53 }
 0x12f   : > { %6763 = vmatmul.mubr.f32.gmra.mrb[30].mxu0 %v513_v54 }
 0x130   : > { %7620 = vmatpush3.bf16.msra.mxu0 %v7617_v51 }
 0x131   : > { %6816 = vmatmul.mubr.f32.gmra.mrb[28].mxu1 %v527_v55 }
 0x132   : > { %6818 = vmatprep.mubr.f32.mxu1 %v528_v56 }
 0x135   : > { %6819 = vmatmul.mubr.f32.gmra.mrb[30].mxu1 %v529_v57 }
 0x1c6   : > { %v6631_v58 = vpop.f32.mrb[0].mxu0 }
 0x1c7   : > { %v729_v59 = vpop.f32.mrb[1].mxu0 }
 0x1c8   : > { %6853 = vmatprep.mubr.f32.mxu0 %v729_v59  ;;  %v643_v59 = vld [vmem:[#allocation8] sm:$0xff] }
 0x1c9   : > { %6854 = vmatmul.mubr.f32.vlgmr.msra.gmra.mrb[32].mxu0 %v6631_v58  ;;  %v6687_v62 = vpop.f32.mrb[0].mxu1 }
 0x1ca   : > { %v6634_v60 = vpop.f32.mrb[2].mxu0  ;;  %v874_v63 = vpop.f32.mrb[1].mxu1 }
 0x1cb   : > { %v739_v61 = vpop.f32.mrb[3].mxu0 }
 0x1cc   : > { %6856 = vmatprep.mubr.f32.mxu0 %v739_v61 }
 0x1cd   : > { %6857 = vmatmul.mubr.f32.gmra.mrb[34].mxu0 %v6634_v60  ;;  %v6690_v2 = vpop.f32.mrb[2].mxu1  ;;  %v644_v60 = vld [vmem:[#allocation8 + $0x8] sm:$0xff] }
 0x1ce   : > { %v6637_v0 = vpop.f32.mrb[4].mxu0  ;;  %v884_v3 = vpop.f32.mrb[3].mxu1  ;;  %v7621_v61 = vpack.c.bf16 %v644_v60, %v643_v59 }
 0x1cf   : > { %v749_v1 = vpop.f32.mrb[5].mxu0 }
 0x1d0   : > { %6859 = vmatprep.mubr.f32.mxu0 %v749_v1  ;;  %7622 = vmatprep.subr.bf16.mxu1 %v7621_v61  ;;  %v647_v1 = vld [vmem:[#allocation8 + $0x20] sm:$0xff] }
 0x1d1   : > { %6860 = vmatmul.mubr.f32.gmra.mrb[36].mxu0 %v6637_v0  ;;  %v6693_v6 = vpop.f32.mrb[4].mxu1  ;;  %7624 = vmatpush3.bf16.msra.mxu1 %v7621_v61 }
 0x1d2   : > { %v6640_v4 = vpop.f32.mrb[6].mxu0  ;;  %v894_v7 = vpop.f32.mrb[5].mxu1 }
 0x1d3   : > { %v759_v5 = vpop.f32.mrb[7].mxu0 }
 0x1d4   : > { %6862 = vmatprep.mubr.f32.mxu0 %v759_v5  ;;  %v650_v5 = vld [vmem:[#allocation8 + $0x38] sm:$0xff] }
 0x1d5   : > { %6863 = vmatmul.mubr.f32.gmra.mrb[38].mxu0 %v6640_v4  ;;  %v6696_v11 = vpop.f32.mrb[6].mxu1  ;;  %v649_v4 = vld [vmem:[#allocation8 + $0x30] sm:$0xff] }
 0x1d6   : > { %v6643_v8 = vpop.f32.mrb[8].mxu0  ;;  %v904_v12 = vpop.f32.mrb[7].mxu1 }
 0x1d7   : > { %v769_v10 = vpop.f32.mrb[9].mxu0 }
 0x1d8   : > { %6865 = vmatprep.mubr.f32.mxu0 %v769_v10  ;;  %v653_v10 = vld [vmem:[#allocation8 + $0x50] sm:$0xff] }
 0x1d9   : > { %6866 = vmatmul.mubr.f32.gmra.mrb[40].mxu0 %v6643_v8  ;;  %v6699_v15 = vpop.f32.mrb[8].mxu1 }
 0x1da   : > { %v6646_v13 = vpop.f32.mrb[10].mxu0  ;;  %v914_v16 = vpop.f32.mrb[9].mxu1 }
 0x1db   : > { %v779_v14 = vpop.f32.mrb[11].mxu0 }
 0x1dc   : > { %6868 = vmatprep.mubr.f32.mxu0 %v779_v14  ;;  %v656_v14 = vld [vmem:[#allocation8 + $0x68] sm:$0xff] }
 0x1dd   : > { %6869 = vmatmul.mubr.f32.gmra.mrb[42].mxu0 %v6646_v13  ;;  %v6702_v19 = vpop.f32.mrb[10].mxu1  ;;  %v655_v13 = vld [vmem:[#allocation8 + $0x60] sm:$0xff] }
 0x1de   : > { %v6649_v17 = vpop.f32.mrb[12].mxu0  ;;  %v924_v20 = vpop.f32.mrb[11].mxu1 }
 0x1df   : > { %v789_v18 = vpop.f32.mrb[13].mxu0 }
 0x1e0   : > { %6871 = vmatprep.mubr.f32.mxu0 %v789_v18 }
 0x1e1   : > { %6872 = vmatmul.mubr.f32.gmra.mrb[44].mxu0 %v6649_v17  ;;  %v6705_v23 = vpop.f32.mrb[12].mxu1  ;;  %v658_v17 = vld [vmem:[#allocation8 + $0x78] sm:$0xff] }
 0x1e2   : > { %v6652_v21 = vpop.f32.mrb[14].mxu0  ;;  %v934_v24 = vpop.f32.mrb[13].mxu1 }
 0x1e3   : > { %v799_v22 = vpop.f32.mrb[15].mxu0 }
 0x1e4   : > { %6874 = vmatprep.mubr.f32.mxu0 %v799_v22 }
 0x1e5   : > { %6875 = vmatmul.mubr.f32.gmra.mrb[46].mxu0 %v6652_v21  ;;  %v6708_v27 = vpop.f32.mrb[14].mxu1 }
 0x1e6   : > { %6877 = vmatprep.mubr.f32.mxu0 %v874_v63  ;;  %v6743_v25 = vpop.f32.mrb[16].mxu0  ;;  %v944_v28 = vpop.f32.mrb[15].mxu1  ;;  %v646_v63 = vld [vmem:[#allocation8 + $0x18] sm:$0xff] }
 0x1e7   : > { %v1019_v26 = vpop.f32.mrb[17].mxu0 }
 0x1e9   : > { %6878 = vmatmul.mubr.f32.gmra.mrb[48].mxu0 %v6687_v62  ;;  %v645_v62 = vld [vmem:[#allocation8 + $0x10] sm:$0xff] }
 0x1ea   : > { %6880 = vmatprep.mubr.f32.mxu0 %v884_v3  ;;  %v6746_v29 = vpop.f32.mrb[18].mxu0  ;;  %v7625_v0 = vpack.c.bf16 %v646_v63, %v645_v62 }
 0x1eb   : > { %v1029_v30 = vpop.f32.mrb[19].mxu0 }
 0x1ec   : > { %v6799_v31 = vpop.f32.mrb[16].mxu1  ;;  %7626 = vmatprep.subr.bf16.mxu1 %v7625_v0 }
 0x1ed   : > { %6881 = vmatmul.mubr.f32.gmra.mrb[50].mxu0 %v6690_v2  ;;  %v1164_v32 = vpop.f32.mrb[17].mxu1  ;;  %7628 = vmatpush3.bf16.msra.mxu1 %v7625_v0  ;;  %v648_v2 = vld [vmem:[#allocation8 + $0x28] sm:$0xff] }
 0x1ee   : > { %6883 = vmatprep.mubr.f32.mxu0 %v894_v7  ;;  %v6749_v33 = vpop.f32.mrb[20].mxu0  ;;  %v7629_v3 = vpack.c.bf16 %v648_v2, %v647_v1  ;;  %v652_v7 = vld [vmem:[#allocation8 + $0x48] sm:$0xff] }
 0x1ef   : > { %v1039_v34 = vpop.f32.mrb[21].mxu0 }
 0x1f0   : > { %v6802_v35 = vpop.f32.mrb[18].mxu1  ;;  %7630 = vmatprep.subr.bf16.mxu1 %v7629_v3 }
 0x1f1   : > { %6884 = vmatmul.mubr.f32.gmra.mrb[52].mxu0 %v6693_v6  ;;  %v1174_v36 = vpop.f32.mrb[19].mxu1  ;;  %7632 = vmatpush3.bf16.msra.mxu1 %v7629_v3  ;;  %v7633_v6 = vpack.c.bf16 %v650_v5, %v649_v4 }
 0x1f2   : > { %6886 = vmatprep.mubr.f32.mxu0 %v904_v12  ;;  %v6752_v37 = vpop.f32.mrb[22].mxu0 }
 0x1f3   : > { %v1049_v38 = vpop.f32.mrb[23].mxu0  ;;  %7634 = vmatprep.subr.bf16.mxu1 %v7633_v6 }
 0x1f4   : > { %v6805_v39 = vpop.f32.mrb[20].mxu1 }
 0x1f5   : > { %6887 = vmatmul.mubr.f32.gmra.mrb[54].mxu0 %v6696_v11  ;;  %v1184_v40 = vpop.f32.mrb[21].mxu1  ;;  %7636 = vmatpush3.bf16.msra.mxu1 %v7633_v6  ;;  %v654_v11 = vld [vmem:[#allocation8 + $0x58] sm:$0xff] }
 0x1f6   : > { %6889 = vmatprep.mubr.f32.mxu0 %v914_v16  ;;  %v6755_v41 = vpop.f32.mrb[24].mxu0  ;;  %v7641_v12 = vpack.c.bf16 %v654_v11, %v653_v10  ;;  %v657_v16 = vld [vmem:[#allocation8 + $0x70] sm:$0xff] }
 0x1f7   : > { %v1059_v42 = vpop.f32.mrb[25].mxu0  ;;  %v7649_v18 = vpack.c.bf16 %v658_v17, %v657_v16 }
 0x1f8   : > { %v6808_v43 = vpop.f32.mrb[22].mxu1 }
 0x1f9   : > { %6890 = vmatmul.mubr.f32.gmra.mrb[56].mxu0 %v6699_v15  ;;  %v1194_v44 = vpop.f32.mrb[23].mxu1  ;;  %v7645_v15 = vpack.c.bf16 %v656_v14, %v655_v13 }
 0x1fa   : > { %6892 = vmatprep.mubr.f32.mxu0 %v924_v20  ;;  %v6758_v45 = vpop.f32.mrb[26].mxu0 }
 0x1fb   : > { %v1069_v46 = vpop.f32.mrb[27].mxu0 }
 0x1fc   : > { %v6811_v47 = vpop.f32.mrb[24].mxu1 }
 0x1fd   : > { %6893 = vmatmul.mubr.f32.gmra.mrb[58].mxu0 %v6702_v19  ;;  %v1204_v48 = vpop.f32.mrb[25].mxu1 }
 0x1fe   : > { %6895 = vmatprep.mubr.f32.mxu0 %v934_v24  ;;  %v6761_v49 = vpop.f32.mrb[28].mxu0 }
 0x1ff   : > { %v1079_v50 = vpop.f32.mrb[29].mxu0 }
 0x200   : > { %v6814_v51 = vpop.f32.mrb[26].mxu1 }
 0x201   : > { %6896 = vmatmul.mubr.f32.gmra.mrb[60].mxu0 %v6705_v23  ;;  %v1214_v52 = vpop.f32.mrb[27].mxu1 }
 0x202   : > { %6898 = vmatprep.mubr.f32.mxu0 %v944_v28  ;;  %v6764_v53 = vpop.f32.mrb[30].mxu0 }
 0x203   : > { %v1089_v54 = vpop.f32.mrb[31].mxu0 }
 0x204   : > { %v6817_v55 = vpop.f32.mrb[28].mxu1 }
 0x205   : > { %6899 = vmatmul.mubr.f32.gmra.mrb[62].mxu0 %v6708_v27  ;;  %v1224_v56 = vpop.f32.mrb[29].mxu1 }
 0x206   : > { %6901 = vmatprep.mubr.f32.mxu0 %v1019_v26 }
 0x208   : > { %v6820_v57 = vpop.f32.mrb[30].mxu1 }
 0x209   : > { %6902 = vmatmul.mubr.f32.gmra.mrb[64].mxu0 %v6743_v25  ;;  %v1234_v58 = vpop.f32.mrb[31].mxu1 }
 0x20a   : > { %6904 = vmatprep.mubr.f32.mxu0 %v1029_v30 }
 0x20d   : > { %6905 = vmatmul.mubr.f32.gmra.mrb[66].mxu0 %v6746_v29 }
 0x20e   : > { %6907 = vmatprep.mubr.f32.mxu0 %v1039_v34 }
 0x211   : > { %6908 = vmatmul.mubr.f32.gmra.mrb[68].mxu0 %v6749_v33 }
 0x212   : > { %6910 = vmatprep.mubr.f32.mxu0 %v1049_v38 }
 0x215   : > { %6911 = vmatmul.mubr.f32.gmra.mrb[70].mxu0 %v6752_v37 }
 0x216   : > { %6913 = vmatprep.mubr.f32.mxu0 %v1059_v42 }
 0x219   : > { %6914 = vmatmul.mubr.f32.gmra.mrb[72].mxu0 %v6755_v41 }
 0x21a   : > { %6916 = vmatprep.mubr.f32.mxu0 %v1069_v46 }
 0x21d   : > { %6917 = vmatmul.mubr.f32.gmra.mrb[74].mxu0 %v6758_v45 }
 0x21e   : > { %6919 = vmatprep.mubr.f32.mxu0 %v1079_v50 }
 0x221   : > { %6920 = vmatmul.mubr.f32.gmra.mrb[76].mxu0 %v6761_v49 }
 0x222   : > { %6922 = vmatprep.mubr.f32.mxu0 %v1089_v54 }
 0x225   : > { %6923 = vmatmul.mubr.f32.gmra.mrb[78].mxu0 %v6764_v53 }
 0x226   : > { %6925 = vmatprep.mubr.f32.mxu0 %v1164_v32 }
 0x229   : > { %6926 = vmatmul.mubr.f32.gmra.mrb[80].mxu0 %v6799_v31 }
 0x22a   : > { %6928 = vmatprep.mubr.f32.mxu0 %v1174_v36 }
 0x22d   : > { %6929 = vmatmul.mubr.f32.gmra.mrb[82].mxu0 %v6802_v35 }
 0x22e   : > { %6931 = vmatprep.mubr.f32.mxu0 %v1184_v40 }
 0x231   : > { %6932 = vmatmul.mubr.f32.gmra.mrb[84].mxu0 %v6805_v39 }
 0x232   : > { %6934 = vmatprep.mubr.f32.mxu0 %v1194_v44 }
 0x235   : > { %6935 = vmatmul.mubr.f32.gmra.mrb[86].mxu0 %v6808_v43 }
 0x236   : > { %6937 = vmatprep.mubr.f32.mxu0 %v1204_v48 }
 0x239   : > { %6938 = vmatmul.mubr.f32.gmra.mrb[88].mxu0 %v6811_v47 }
 0x23a   : > { %6940 = vmatprep.mubr.f32.mxu0 %v1214_v52 }
 0x23d   : > { %6941 = vmatmul.mubr.f32.gmra.mrb[90].mxu0 %v6814_v51 }
 0x23e   : > { %6943 = vmatprep.mubr.f32.mxu0 %v1224_v56 }
 0x241   : > { %6944 = vmatmul.mubr.f32.gmra.mrb[92].mxu0 %v6817_v55 }
 0x242   : > { %6946 = vmatprep.mubr.f32.mxu0 %v1234_v58 }
 0x245   : > { %6947 = vmatmul.mubr.f32.gmra.mrb[94].mxu0 %v6820_v57 }
 0x246   : > { %7085 = vmatprep.mubr.f32.mxu0 %v8607_v9  ;;  %v651_v9 = vld [vmem:[#allocation8 + $0x40] sm:$0xff] }
 0x247   : > { %v7637_v8 = vpack.c.bf16 %v652_v7, %v651_v9 }
 0x249   : > { %7638 = vmatprep.subr.bf16.mxu1 %v7637_v8 }
 0x24a   : > { %7640 = vmatpush3.bf16.msra.mxu1 %v7637_v8 }
 0x24b   : > { %7642 = vmatprep.subr.bf16.mxu1 %v7641_v12 }
 0x24e   : > { %7644 = vmatpush3.bf16.msra.mxu1 %v7641_v12 }
 0x24f   : > { %7646 = vmatprep.subr.bf16.mxu1 %v7645_v15 }
 0x252   : > { %7648 = vmatpush3.bf16.msra.mxu1 %v7645_v15 }
 0x253   : > { %7650 = vmatprep.subr.bf16.mxu1 %v7649_v18 }
 0x256   : > { %7652 = vmatpush3.bf16.msra.mxu1 %v7649_v18 }
 0x29c   : > { %v8732_v19 = vpop.f32.mrb[32].mxu0 }
 0x29d   : > { %v1717_v20 = vmul.f32 %v8732_v19, %v8732_v19  ;;  %v8736_v21 = vpop.f32.mrb[33].mxu0 }
 0x29e   : > { %v1628_v22 = vadd.f32 %v8732_v19, %v8736_v21  ;;  %v1716_v23 = vmul.f32 %v8736_v21, %v8736_v21 }
 0x2a0   : > { %v1780_v24 = vadd.f32 %v1717_v20, %v1716_v23  ;;  %v8742_v25 = vpop.f32.mrb[34].mxu0 }
 0x2a1   : > { %v8744_v26 = vpop.f32.mrb[35].mxu0  ;;  %v1719_v29 = vmul.f32 %v8742_v25, %v8742_v25 }
 0x2a2   : > { %v1629_v27 = vadd.f32 %v1628_v22, %v8744_v26  ;;  %v1718_v28 = vmul.f32 %v8744_v26, %v8744_v26 }
 0x2a4   : > { %v1781_v30 = vadd.f32 %v1780_v24, %v1718_v28  ;;  %v6861_v31 = vpop.f32.mrb[36].mxu0  ;;  %v1630_v32 = vadd.f32 %v8742_v25, %v1629_v27 }
 0x2a5   : > { %v1329_v33 = vpop.f32.mrb[37].mxu0  ;;  %v1721_v37 = vmul.f32 %v6861_v31, %v6861_v31 }
 0x2a6   : > { %v1631_v34 = vadd.f32 %v1630_v32, %v1329_v33  ;;  %v1720_v35 = vmul.f32 %v1329_v33, %v1329_v33  ;;  %v1782_v36 = vadd.f32 %v1781_v30, %v1719_v29 }
 0x2a8   : > { %v1783_v38 = vadd.f32 %v1782_v36, %v1720_v35  ;;  %v6864_v39 = vpop.f32.mrb[38].mxu0  ;;  %v1632_v40 = vadd.f32 %v6861_v31, %v1631_v34 }
 0x2a9   : > { %v1339_v41 = vpop.f32.mrb[39].mxu0  ;;  %v1723_v45 = vmul.f32 %v6864_v39, %v6864_v39 }
 0x2aa   : > { %v1633_v42 = vadd.f32 %v1632_v40, %v1339_v41  ;;  %v1722_v43 = vmul.f32 %v1339_v41, %v1339_v41  ;;  %v1784_v44 = vadd.f32 %v1783_v38, %v1721_v37 }
 0x2ac   : > { %v1785_v46 = vadd.f32 %v1784_v44, %v1722_v43  ;;  %v6867_v47 = vpop.f32.mrb[40].mxu0  ;;  %v1634_v48 = vadd.f32 %v6864_v39, %v1633_v42 }
 0x2ad   : > { %v1349_v49 = vpop.f32.mrb[41].mxu0  ;;  %v1725_v53 = vmul.f32 %v6867_v47, %v6867_v47 }
 0x2ae   : > { %v1635_v50 = vadd.f32 %v1634_v48, %v1349_v49  ;;  %v1724_v51 = vmul.f32 %v1349_v49, %v1349_v49  ;;  %v1786_v52 = vadd.f32 %v1785_v46, %v1723_v45 }
 0x2b0   : > { %v1787_v54 = vadd.f32 %v1786_v52, %v1724_v51  ;;  %v6870_v55 = vpop.f32.mrb[42].mxu0  ;;  %v1636_v56 = vadd.f32 %v6867_v47, %v1635_v50 }
 0x2b1   : > { %v1359_v57 = vpop.f32.mrb[43].mxu0  ;;  %v1727_v61 = vmul.f32 %v6870_v55, %v6870_v55 }
 0x2b2   : > { %v1637_v58 = vadd.f32 %v1636_v56, %v1359_v57  ;;  %v1726_v59 = vmul.f32 %v1359_v57, %v1359_v57  ;;  %v1788_v60 = vadd.f32 %v1787_v54, %v1725_v53 }
 0x2b4   : > { %v1789_v62 = vadd.f32 %v1788_v60, %v1726_v59  ;;  %v6873_v63 = vpop.f32.mrb[44].mxu0  ;;  %v1638_v0 = vadd.f32 %v6870_v55, %v1637_v58 }
 0x2b5   : > { %v1369_v1 = vpop.f32.mrb[45].mxu0  ;;  %v1729_v5 = vmul.f32 %v6873_v63, %v6873_v63 }
 0x2b6   : > { %v1639_v2 = vadd.f32 %v1638_v0, %v1369_v1  ;;  %v1728_v3 = vmul.f32 %v1369_v1, %v1369_v1  ;;  %v1790_v4 = vadd.f32 %v1789_v62, %v1727_v61 }
 0x2b8   : > { %v1791_v6 = vadd.f32 %v1790_v4, %v1728_v3  ;;  %v6876_v9 = vpop.f32.mrb[46].mxu0  ;;  %v1640_v7 = vadd.f32 %v6873_v63, %v1639_v2 }
 0x2b9   : > { %v1379_v8 = vpop.f32.mrb[47].mxu0  ;;  %v1731_v13 = vmul.f32 %v6876_v9, %v6876_v9 }
 0x2ba   : > { %v1641_v10 = vadd.f32 %v1640_v7, %v1379_v8  ;;  %v1730_v11 = vmul.f32 %v1379_v8, %v1379_v8  ;;  %v1792_v12 = vadd.f32 %v1791_v6, %v1729_v5 }
 0x2bc   : > { %v1642_v14 = vadd.f32 %v6876_v9, %v1641_v10  ;;  %v1793_v15 = vadd.f32 %v1792_v12, %v1730_v11  ;;  %v8752_v16 = vpop.f32.mrb[48].mxu0 }
 0x2bd   : > { %v1733_v17 = vmul.f32 %v8752_v16, %v8752_v16  ;;  %v8756_v18 = vpop.f32.mrb[49].mxu0 }
 0x2be   : > { %v1643_v20 = vrot.slane %v1642_v14, 4  ;;  %v1794_v22 = vadd.f32 %v1793_v15, %v1731_v13  ;;  %v1649_v23 = vadd.f32 %v8752_v16, %v8756_v18  ;;  %v1732_v24 = vmul.f32 %v8756_v18, %v8756_v18 }
 0x2c0   : > { %v1644_v27 = vadd.f32 %v1643_v20, %v1642_v14  ;;  %v1795_v28 = vrot.slane %v1794_v22, 4  ;;  %v1801_v29 = vadd.f32 %v1733_v17, %v1732_v24  ;;  %v8762_v30 = vpop.f32.mrb[50].mxu0 }
 0x2c1   : > { %v8764_v31 = vpop.f32.mrb[51].mxu0  ;;  %v1735_v41 = vmul.f32 %v8762_v30, %v8762_v30 }
 0x2c2   : > { %v1645_v32 = vrot.slane %v1644_v27, 2  ;;  %v1796_v33 = vadd.f32 %v1795_v28, %v1794_v22  ;;  %v1650_v34 = vadd.f32 %v1649_v23, %v8764_v31  ;;  %v1734_v35 = vmul.f32 %v8764_v31, %v8764_v31 }
 0x2c3   : > { %v1900_v28 = vlaneseq }
 0x2c4   : > { %v1646_v36 = vadd.f32 %v1645_v32, %v1644_v27  ;;  %v1797_v37 = vrot.slane %v1796_v33, 2  ;;  %v1802_v38 = vadd.f32 %v1801_v29, %v1734_v35  ;;  %v6885_v39 = vpop.f32.mrb[52].mxu0  ;;  %v1651_v40 = vadd.f32 %v8762_v30, %v1650_v34 }
 0x2c5   : > { %v1409_v42 = vpop.f32.mrb[53].mxu0  ;;  %v1737_v52 = vmul.f32 %v6885_v39, %v6885_v39 }
 0x2c6   : > { %v1647_v43 = vrot.slane %v1646_v36, 1  ;;  %v1798_v44 = vadd.f32 %v1797_v37, %v1796_v33  ;;  %v1652_v45 = vadd.f32 %v1651_v40, %v1409_v42  ;;  %v1736_v46 = vmul.f32 %v1409_v42, %v1409_v42 }
 0x2c7   : > { %v1803_v47 = vadd.f32 %v1802_v38, %v1735_v41 }
 0x2c8   : > { %v1648_v48 = vadd.f32 %v1647_v43, %v1646_v36  ;;  %v1799_v49 = vrot.slane %v1798_v44, 1  ;;  %v6888_v50 = vpop.f32.mrb[54].mxu0  ;;  %v1653_v51 = vadd.f32 %v6885_v39, %v1652_v45  ;;  %v1901_v39 = vshrl.u32 %v1900_v28, 7  ;;  %v8779_v43 = vld [vmem:[%s9643_s6] sm:$0x1] }
 0x2c9   : > { %v1804_v53 = vadd.f32 %v1803_v47, %v1736_v46  ;;  %v1419_v54 = vpop.f32.mrb[55].mxu0  ;;  %v1739_v0 = vmul.f32 %v6888_v50, %v6888_v50 }
 0x2ca   : > { %v8772_v55 = vmul.f32 0.03125, %v1648_v48  ;;  %v1800_v56 = vadd.f32 %v1799_v49, %v1798_v44  ;;  %v1654_v57 = vadd.f32 %v1653_v51, %v1419_v54  ;;  %v1738_v58 = vmul.f32 %v1419_v54, %v1419_v54 }
 0x2cb   : > { %v1805_v59 = vadd.f32 %v1804_v53, %v1737_v52 }
 0x2cc   : > { %v1864_v60 = vmul.f32 0.03125, %v1800_v56  ;;  %v1868_v61 = vmul.f32 %v8772_v55, %v8772_v55  ;;  %v6891_v62 = vpop.f32.mrb[56].mxu0  ;;  %v1655_v63 = vadd.f32 %v6888_v50, %v1654_v57  ;;  %v8787_v50 = vsub.s32 0, %v1901_v39 }
 0x2cd   : > { %v1806_v1 = vadd.f32 %v1805_v59, %v1738_v58  ;;  %v1429_v2 = vpop.f32.mrb[57].mxu0  ;;  %v1741_v10 = vmul.f32 %v6891_v62, %v6891_v62  ;;  %v8797_v58 = vld [vmem:[%s9643_s6 + $0x1] sm:$0x1] }
 0x2ce   : > { %v1872_v3 = vsub.f32 %v1864_v60, %v1868_v61  ;;  %v1656_v4 = vadd.f32 %v1655_v63, %v1429_v2  ;;  %v1740_v5 = vmul.f32 %v1429_v2, %v1429_v2 }
 0x2cf   : > { %v1807_v6 = vadd.f32 %v1806_v1, %v1739_v0 }
 0x2d0   : > { %v1876_v9 = vmax.f32 %v1872_v3, 0.0  ;;  %v6894_v7 = vpop.f32.mrb[58].mxu0  ;;  %v1657_v8 = vadd.f32 %v6891_v62, %v1656_v4 }
 0x2d1   : > { %v1808_v11 = vadd.f32 %v1807_v6, %v1740_v5  ;;  %v1439_v12 = vpop.f32.mrb[59].mxu0  ;;  %v1743_v23 = vmul.f32 %v6894_v7, %v6894_v7 }
 0x2d2   : > { %v1880_v13 = vadd.f32 1e-05, %v1876_v9  ;;  %v1658_v14 = vadd.f32 %v1657_v8, %v1439_v12  ;;  %v1742_v15 = vmul.f32 %v1439_v12, %v1439_v12 }
 0x2d3   : > { %v1809_v17 = vadd.f32 %v1808_v11, %v1741_v10 }
 0x2d4   : > { %7853 = vrsqrt.f32 %v1880_v13  ;;  %v6897_v20 = vpop.f32.mrb[60].mxu0  ;;  %v1659_v22 = vadd.f32 %v6894_v7, %v1658_v14 }
 0x2d5   : > { %v1810_v24 = vadd.f32 %v1809_v17, %v1742_v15  ;;  %v1449_v27 = vpop.f32.mrb[61].mxu0  ;;  %v1745_v36 = vmul.f32 %v6897_v20, %v6897_v20 }
 0x2d6   : > { %v1660_v29 = vadd.f32 %v1659_v22, %v1449_v27  ;;  %v1744_v32 = vmul.f32 %v1449_v27, %v1449_v27 }
 0x2d7   : > { %v1811_v33 = vadd.f32 %v1810_v24, %v1743_v23 }
 0x2d8   : > { %v6900_v34 = vpop.f32.mrb[62].mxu0  ;;  %v1661_v35 = vadd.f32 %v6897_v20, %v1660_v29 }
 0x2d9   : > { %v1812_v37 = vadd.f32 %v1811_v33, %v1744_v32  ;;  %v1459_v38 = vpop.f32.mrb[63].mxu0  ;;  %v1747_v46 = vmul.f32 %v6900_v34, %v6900_v34 }
 0x2da   : > { %v1662_v40 = vadd.f32 %v1661_v35, %v1459_v38  ;;  %v1746_v41 = vmul.f32 %v1459_v38, %v1459_v38 }
 0x2db   : > { %v1813_v42 = vadd.f32 %v1812_v37, %v1745_v36 }
 0x2dc   : > { %v1663_v44 = vadd.f32 %v6900_v34, %v1662_v40  ;;  %v8781_v45 = vpop.f32.mrb[64].mxu0 }
 0x2dd   : > { %v1814_v47 = vadd.f32 %v1813_v42, %v1746_v41  ;;  %v1749_v48 = vmul.f32 %v8781_v45, %v8781_v45  ;;  %v8785_v49 = vpop.f32.mrb[65].mxu0 }
 0x2de   : > { %v7854_v51 = vpop.eup %7853  ;;  %v1664_v52 = vrot.slane %v1663_v44, 4  ;;  %v1670_v53 = vadd.f32 %v8781_v45, %v8785_v49  ;;  %v1748_v54 = vmul.f32 %v8785_v49, %v8785_v49 }
 0x2df   : > { %v1888_v56 = vmul.f32 %v7854_v51, %v8779_v43  ;;  %v1815_v57 = vadd.f32 %v1814_v47, %v1747_v46 }
 0x2e0   : > { %v1665_v59 = vadd.f32 %v1664_v52, %v1663_v44  ;;  %v1822_v60 = vadd.f32 %v1749_v48, %v1748_v54  ;;  %v8799_v61 = vpop.f32.mrb[66].mxu0 }
 0x2e1   : > { %v1892_v62 = vmul.f32 %v1888_v56, %v8772_v55  ;;  %v1816_v63 = vrot.slane %v1815_v57, 4  ;;  %v8802_v0 = vpop.f32.mrb[67].mxu0  ;;  %v1903_v1 = vrot.slane %v1888_v56, %v8787_v50  ;;  %v1751_v3 = vmul.f32 %v8799_v61, %v8799_v61 }
 0x2e2   : > { %v1666_v2 = vrot.slane %v1665_v59, 2  ;;  %v1671_v4 = vadd.f32 %v1670_v53, %v8802_v0  ;;  %v1750_v5 = vmul.f32 %v8802_v0, %v8802_v0 }
 0x2e3   : > { %v1896_v6 = vsub.f32 %v8797_v58, %v1892_v62  ;;  %v1817_v9 = vadd.f32 %v1816_v63, %v1815_v57  ;;  %v1916_v7 = vmul.f32 %v1903_v1, %v8736_v21  ;;  %v1917_v55 = vmul.f32 %v8732_v19, %v1903_v1 }
 0x2e4   : > { %v1667_v8 = vadd.f32 %v1666_v2, %v1665_v59  ;;  %v1823_v10 = vadd.f32 %v1822_v60, %v1750_v5  ;;  %v6909_v11 = vpop.f32.mrb[68].mxu0  ;;  %v1672_v12 = vadd.f32 %v8799_v61, %v1671_v4  ;;  %v1918_v13 = vmul.f32 %v1903_v1, %v8744_v26 }
 0x2e5   : > { %v1818_v14 = vrot.slane %v1817_v9, 2  ;;  %v1753_v15 = vmul.f32 %v6909_v11, %v6909_v11  ;;  %v1489_v17 = vpop.f32.mrb[69].mxu0  ;;  %v1983_v20 = vrot.slane %v1896_v6, %v8787_v50  ;;  %v1919_v22 = vmul.f32 %v8742_v25, %v1903_v1 }
 0x2e6   : > { %v1668_v23 = vrot.slane %v1667_v8, 1  ;;  %v1673_v24 = vadd.f32 %v1672_v12, %v1489_v17  ;;  %v1752_v27 = vmul.f32 %v1489_v17, %v1489_v17  ;;  %v1824_v21 = vadd.f32 %v1823_v10, %v1751_v3 }
 0x2e7   : > { %v1819_v28 = vadd.f32 %v1818_v14, %v1817_v9  ;;  %v1996_v19 = vadd.f32 %v1983_v20, %v1916_v7  ;;  %v1997_v29 = vadd.f32 %v1983_v20, %v1917_v55  ;;  %v1998_v32 = vadd.f32 %v1983_v20, %v1918_v13 }
 0x2e8   : > { %v1669_v33 = vadd.f32 %v1668_v23, %v1667_v8  ;;  %v1825_v34 = vadd.f32 %v1824_v21, %v1752_v27  ;;  %v6912_v35 = vpop.f32.mrb[70].mxu0  ;;  %v1674_v36 = vadd.f32 %v6909_v11, %v1673_v24  ;;  %v1999_v26 = vadd.f32 %v1983_v20, %v1919_v22 }
 0x2e9   : > { %v1820_v37 = vrot.slane %v1819_v28, 1  ;;  %v1499_v38 = vpop.f32.mrb[71].mxu0  ;;  %v2060_v39 = vmax.f32 %v1996_v19, 0.0  ;;  %v2061_v40 = vmax.f32 %v1997_v29, 0.0  ;;  %v2062_v47 = vmax.f32 %v1998_v32, 0.0 }
 0x2ea   : > { %v8817_v41 = vmul.f32 0.03125, %v1669_v33  ;;  %v1675_v25 = vadd.f32 %v1674_v36, %v1499_v38  ;;  %v1754_v42 = vmul.f32 %v1499_v38, %v1499_v38  ;;  %v1826_v44 = vadd.f32 %v1825_v34, %v1753_v15 }
 0x2eb   : > { %v1821_v46 = vadd.f32 %v1820_v37, %v1819_v28  ;;  %6981 = vmatprep.mubr.f32.mxu1 %v2060_v39  ;;  %v1755_v51 = vmul.f32 %v6912_v35, %v6912_v35  ;;  %v2063_v63 = vmax.f32 %v1999_v26, 0.0  ;;  %v8244_v7 = vmov 0.0  }
 0x2ec   : > { %v1869_v48 = vmul.f32 %v8817_v41, %v8817_v41  ;;  %v1827_v52 = vadd.f32 %v1826_v44, %v1754_v42  ;;  %v6915_v53 = vpop.f32.mrb[72].mxu0  ;;  %6982 = vmatmul.mubr.f32.vlgmr.msra.gmra.mrb[32].mxu1 %v2061_v40  ;;  %v1676_v54 = vadd.f32 %v6912_v35, %v1675_v25 }
 0x2ed   : > { %v1865_v56 = vmul.f32 0.03125, %v1821_v46  ;;  %v1509_v57 = vpop.f32.mrb[73].mxu0  ;;  %6984 = vmatprep.mubr.f32.mxu1 %v2062_v47  ;;  %v1757_v2 = vmul.f32 %v6915_v53, %v6915_v53 }
 0x2ee   : > { %v1677_v59 = vadd.f32 %v1676_v54, %v1509_v57  ;;  %v1756_v60 = vmul.f32 %v1509_v57, %v1509_v57  ;;  %v1828_v62 = vadd.f32 %v1827_v52, %v1755_v51 }
 0x2ef   : > { %v1873_v1 = vsub.f32 %v1865_v56, %v1869_v48 }
 0x2f0   : > { %v1829_v3 = vadd.f32 %v1828_v62, %v1756_v60  ;;  %v6918_v4 = vpop.f32.mrb[74].mxu0  ;;  %6985 = vmatmul.mubr.f32.gmra.mrb[34].mxu1 %v2063_v63  ;;  %v1678_v5 = vadd.f32 %v6915_v53, %v1677_v59 }
 0x2f1   : > { %v1877_v6 = vmax.f32 %v1873_v1, 0.0  ;;  %v1519_v9 = vpop.f32.mrb[75].mxu0  ;;  %6987 = vmatprep.mubr.f32.mxu1 %v8244_v7  ;;  %v1759_v12 = vmul.f32 %v6918_v4, %v6918_v4 }
 0x2f2   : > { %v1679_v55 = vadd.f32 %v1678_v5, %v1519_v9  ;;  %v1758_v8 = vmul.f32 %v1519_v9, %v1519_v9  ;;  %v1830_v10 = vadd.f32 %v1829_v3, %v1757_v2 }
 0x2f3   : > { %v1881_v11 = vadd.f32 1e-05, %v1877_v6 }
 0x2f4   : > { %v1831_v13 = vadd.f32 %v1830_v10, %v1758_v8  ;;  %v6921_v14 = vpop.f32.mrb[76].mxu0  ;;  %6988 = vmatmul.mubr.f32.gmra.mrb[36].mxu1 %v8244_v7  ;;  %v1680_v15 = vadd.f32 %v6918_v4, %v1679_v55 }
 0x2f5   : > { %7855 = vrsqrt.f32 %v1881_v11  ;;  %v1529_v17 = vpop.f32.mrb[77].mxu0  ;;  %6990 = vmatprep.mubr.f32.mxu1 %v8244_v7  ;;  %v1761_v24 = vmul.f32 %v6921_v14, %v6921_v14 }
 0x2f6   : > { %v1681_v20 = vadd.f32 %v1680_v15, %v1529_v17  ;;  %v1760_v22 = vmul.f32 %v1529_v17, %v1529_v17  ;;  %v1832_v23 = vadd.f32 %v1831_v13, %v1759_v12 }
 0x2f8   : > { %v1833_v27 = vadd.f32 %v1832_v23, %v1760_v22  ;;  %v6924_v21 = vpop.f32.mrb[78].mxu0  ;;  %6991 = vmatmul.mubr.f32.gmra.mrb[38].mxu1 %v8244_v7  ;;  %v1682_v28 = vadd.f32 %v6921_v14, %v1681_v20 }
 0x2f9   : > { %v1539_v19 = vpop.f32.mrb[79].mxu0  ;;  %6993 = vmatprep.mubr.f32.mxu1 %v8244_v7  ;;  %v1763_v34 = vmul.f32 %v6924_v21, %v6924_v21 }
 0x2fa   : > { %v1683_v29 = vadd.f32 %v1682_v28, %v1539_v19  ;;  %v1762_v32 = vmul.f32 %v1539_v19, %v1539_v19  ;;  %v1834_v33 = vadd.f32 %v1833_v27, %v1761_v24 }
 0x2fc   : > { %v1684_v35 = vadd.f32 %v6924_v21, %v1683_v29  ;;  %v1835_v36 = vadd.f32 %v1834_v33, %v1762_v32  ;;  %6994 = vmatmul.mubr.f32.gmra.mrb[40].mxu1 %v8244_v7  ;;  %v8827_v26 = vpop.f32.mrb[80].mxu0 }
 0x2fd   : > { %v1765_v37 = vmul.f32 %v8827_v26, %v8827_v26  ;;  %v8831_v38 = vpop.f32.mrb[81].mxu0  ;;  %6996 = vmatprep.mubr.f32.mxu1 %v8244_v7 }
 0x2fe   : > { %v1685_v39 = vrot.slane %v1684_v35, 4  ;;  %v1836_v40 = vadd.f32 %v1835_v36, %v1763_v34  ;;  %v1691_v25 = vadd.f32 %v8827_v26, %v8831_v38  ;;  %v1764_v42 = vmul.f32 %v8831_v38, %v8831_v38 }
 0x2ff   : > { %v7856_v44 = vpop.eup %7855 }
 0x300   : > { %v1889_v46 = vmul.f32 %v7856_v44, %v8779_v43  ;;  %v1686_v47 = vadd.f32 %v1685_v39, %v1684_v35  ;;  %v1837_v48 = vrot.slane %v1836_v40, 4  ;;  %v1843_v51 = vadd.f32 %v1765_v37, %v1764_v42  ;;  %v8839_v52 = vpop.f32.mrb[82].mxu0  ;;  %6997 = vmatmul.mubr.f32.gmra.mrb[42].mxu1 %v8244_v7 }
 0x301   : > { %v8842_v53 = vpop.f32.mrb[83].mxu0  ;;  %6999 = vmatprep.mubr.f32.mxu1 %v8244_v7 }
 0x302   : > { %v1893_v54 = vmul.f32 %v1889_v46, %v8817_v41  ;;  %v1687_v56 = vrot.slane %v1686_v47, 2  ;;  %v1838_v57 = vadd.f32 %v1837_v48, %v1836_v40  ;;  %v1692_v59 = vadd.f32 %v1691_v25, %v8842_v53 }
 0x303   : > { %v1766_v60 = vmul.f32 %v8842_v53, %v8842_v53  ;;  %v1907_v62 = vrot.slane %v1889_v46, %v8787_v50  ;;  %v1767_v41 = vmul.f32 %v8839_v52, %v8839_v52 }
 0x304   : > { %v1897_v63 = vsub.f32 %v8797_v58, %v1893_v54  ;;  %v1688_v1 = vadd.f32 %v1687_v56, %v1686_v47  ;;  %v1839_v2 = vrot.slane %v1838_v57, 2  ;;  %v6933_v3 = vpop.f32.mrb[84].mxu0  ;;  %7000 = vmatmul.mubr.f32.gmra.mrb[44].mxu1 %v8244_v7  ;;  %v1693_v4 = vadd.f32 %v8839_v52, %v1692_v59 }
 0x305   : > { %v1844_v5 = vadd.f32 %v1843_v51, %v1766_v60  ;;  %v1569_v6 = vpop.f32.mrb[85].mxu0  ;;  %7002 = vmatprep.mubr.f32.mxu1 %v8244_v7  ;;  %v1932_v9 = vmul.f32 %v1907_v62, %v8756_v18  ;;  %v1933_v55 = vmul.f32 %v8752_v16, %v1907_v62  ;;  %v1934_v15 = vmul.f32 %v1907_v62, %v8764_v31 }
 0x306   : > { %v1689_v8 = vrot.slane %v1688_v1, 1  ;;  %v1840_v10 = vadd.f32 %v1839_v2, %v1838_v57  ;;  %v1694_v11 = vadd.f32 %v1693_v4, %v1569_v6  ;;  %v1768_v12 = vmul.f32 %v1569_v6, %v1569_v6 }
 0x307   : > { %v1845_v13 = vadd.f32 %v1844_v5, %v1767_v41  ;;  %v1987_v14 = vrot.slane %v1897_v63, %v8787_v50  ;;  %v1935_v17 = vmul.f32 %v8762_v30, %v1907_v62  ;;  %v1769_v18 = vmul.f32 %v6933_v3, %v6933_v3 }
 0x308   : > { %v1690_v20 = vadd.f32 %v1689_v8, %v1688_v1  ;;  %v1841_v22 = vrot.slane %v1840_v10, 1  ;;  %v6936_v23 = vpop.f32.mrb[86].mxu0  ;;  %7003 = vmatmul.mubr.f32.gmra.mrb[46].mxu1 %v8244_v7  ;;  %v1695_v24 = vadd.f32 %v6933_v3, %v1694_v11 }
 0x309   : > { %v1846_v27 = vadd.f32 %v1845_v13, %v1768_v12  ;;  %v1579_v16 = vpop.f32.mrb[87].mxu0  ;;  %v2012_v21 = vadd.f32 %v1987_v14, %v1932_v9  ;;  %v2013_v28 = vadd.f32 %v1987_v14, %v1933_v55  ;;  %v2014_v30 = vadd.f32 %v1987_v14, %v1934_v15 }
 0x30a   : > { %v8862_v19 = vmul.f32 0.03125, %v1690_v20  ;;  %v1842_v29 = vadd.f32 %v1841_v22, %v1840_v10  ;;  %v1696_v32 = vadd.f32 %v1695_v24, %v1579_v16  ;;  %v1770_v33 = vmul.f32 %v1579_v16, %v1579_v16 }
 0x30b   : > { %v1847_v34 = vadd.f32 %v1846_v27, %v1769_v18  ;;  %v2076_v31 = vmax.f32 %v2012_v21, 0.0  ;;  %v2077_v35 = vmax.f32 %v2013_v28, 0.0  ;;  %v2015_v25 = vadd.f32 %v1987_v14, %v1935_v17 }
 0x30c   : > { %v1866_v36 = vmul.f32 0.03125, %v1842_v29  ;;  %v1870_v37 = vmul.f32 %v8862_v19, %v8862_v19  ;;  %v6939_v39 = vpop.f32.mrb[88].mxu0  ;;  %v1697_v40 = vadd.f32 %v6936_v23, %v1696_v32  ;;  %v1771_v42 = vmul.f32 %v6936_v23, %v6936_v23 }
 0x30d   : > { %v1848_v44 = vadd.f32 %v1847_v34, %v1770_v33  ;;  %7005 = vmatprep.mubr.f32.mxu1 %v2076_v31  ;;  %v1589_v46 = vpop.f32.mrb[89].mxu0  ;;  %v2078_v47 = vmax.f32 %v2014_v30, 0.0  ;;  %v2079_v60 = vmax.f32 %v2015_v25, 0.0  ;;  %v1773_v63 = vmul.f32 %v6939_v39, %v6939_v39 }
 0x30e   : > { %v1874_v48 = vsub.f32 %v1866_v36, %v1870_v37  ;;  %7006 = vmatmul.mubr.f32.gmra.mrb[48].mxu1 %v2077_v35  ;;  %v1698_v51 = vadd.f32 %v1697_v40, %v1589_v46  ;;  %v1772_v54 = vmul.f32 %v1589_v46, %v1589_v46 }
 0x30f   : > { %v1849_v56 = vadd.f32 %v1848_v44, %v1771_v42  ;;  %7008 = vmatprep.mubr.f32.mxu1 %v2078_v47 }
 0x310   : > { %v1878_v57 = vmax.f32 %v1874_v48, 0.0  ;;  %v6942_v59 = vpop.f32.mrb[90].mxu0  ;;  %v1699_v62 = vadd.f32 %v6939_v39, %v1698_v51 }
 0x311   : > { %v1850_v1 = vadd.f32 %v1849_v56, %v1772_v54  ;;  %v1599_v2 = vpop.f32.mrb[91].mxu0  ;;  %v1775_v55 = vmul.f32 %v6942_v59, %v6942_v59 }
 0x312   : > { %v1882_v3 = vadd.f32 1e-05, %v1878_v57  ;;  %7009 = vmatmul.mubr.f32.gmra.mrb[50].mxu1 %v2079_v60  ;;  %v1700_v4 = vadd.f32 %v1699_v62, %v1599_v2  ;;  %v1774_v41 = vmul.f32 %v1599_v2, %v1599_v2 }
 0x313   : > { %v1851_v5 = vadd.f32 %v1850_v1, %v1773_v63  ;;  %7011 = vmatprep.mubr.f32.mxu1 %v8244_v7 }
 0x314   : > { %7857 = vrsqrt.f32 %v1882_v3  ;;  %v6945_v6 = vpop.f32.mrb[92].mxu0  ;;  %v1701_v9 = vadd.f32 %v6942_v59, %v1700_v4 }
 0x315   : > { %v1852_v8 = vadd.f32 %v1851_v5, %v1774_v41  ;;  %v1609_v10 = vpop.f32.mrb[93].mxu0  ;;  %v1777_v17 = vmul.f32 %v6945_v6, %v6945_v6 }
 0x316   : > { %7012 = vmatmul.mubr.f32.gmra.mrb[52].mxu1 %v8244_v7  ;;  %v1702_v11 = vadd.f32 %v1701_v9, %v1609_v10  ;;  %v1776_v12 = vmul.f32 %v1609_v10, %v1609_v10 }
 0x317   : > { %v1853_v13 = vadd.f32 %v1852_v8, %v1775_v55  ;;  %7014 = vmatprep.mubr.f32.mxu1 %v8244_v7 }
 0x318   : > { %v6948_v14 = vpop.f32.mrb[94].mxu0  ;;  %v1703_v15 = vadd.f32 %v6945_v6, %v1702_v11 }
 0x319   : > { %v1854_v20 = vadd.f32 %v1853_v13, %v1776_v12  ;;  %v1619_v22 = vpop.f32.mrb[95].mxu0  ;;  %v1779_v16 = vmul.f32 %v6948_v14, %v6948_v14 }
 0x31a   : > { %7015 = vmatmul.mubr.f32.gmra.mrb[54].mxu1 %v8244_v7  ;;  %v1704_v23 = vadd.f32 %v1703_v15, %v1619_v22  ;;  %v1778_v24 = vmul.f32 %v1619_v22, %v1619_v22 }
 0x31b   : > { %v1855_v18 = vadd.f32 %v1854_v20, %v1777_v17  ;;  %7017 = vmatprep.mubr.f32.mxu1 %v8244_v7 }
 0x31c   : > { %v1705_v27 = vadd.f32 %v6948_v14, %v1704_v23 }
 0x31d   : > { %v1856_v21 = vadd.f32 %v1855_v18, %v1778_v24 }
 0x31e   : > { %v7858_v28 = vpop.eup %7857  ;;  %v1706_v29 = vrot.slane %v1705_v27, 4  ;;  %7018 = vmatmul.mubr.f32.gmra.mrb[56].mxu1 %v8244_v7 }
 0x31f   : > { %v1890_v32 = vmul.f32 %v7858_v28, %v8779_v43  ;;  %v1857_v33 = vadd.f32 %v1856_v21, %v1779_v16  ;;  %7020 = vmatprep.mubr.f32.mxu1 %v8244_v7 }
 0x320   : > { %v1707_v34 = vadd.f32 %v1706_v29, %v1705_v27 }
 0x321   : > { %v1894_v31 = vmul.f32 %v1890_v32, %v8862_v19  ;;  %v1858_v35 = vrot.slane %v1857_v33, 4  ;;  %v1911_v30 = vrot.slane %v1890_v32, %v8787_v50 }
 0x322   : > { %v1708_v36 = vrot.slane %v1707_v34, 2  ;;  %7021 = vmatmul.mubr.f32.gmra.mrb[58].mxu1 %v8244_v7 }
 0x323   : > { %v1898_v37 = vsub.f32 %v8797_v58, %v1894_v31  ;;  %v1859_v39 = vadd.f32 %v1858_v35, %v1857_v33  ;;  %7023 = vmatprep.mubr.f32.mxu1 %v8244_v7  ;;  %v1948_v40 = vmul.f32 %v1911_v30, %v8785_v49  ;;  %v1949_v25 = vmul.f32 %v8781_v45, %v1911_v30 }
 0x324   : > { %v1709_v42 = vadd.f32 %v1708_v36, %v1707_v34  ;;  %v1950_v44 = vmul.f32 %v1911_v30, %v8802_v0  ;;  %v1951_v19 = vmul.f32 %v8799_v61, %v1911_v30 }
 0x325   : > { %v1860_v46 = vrot.slane %v1859_v39, 2  ;;  %v1991_v47 = vrot.slane %v1898_v37, %v8787_v50 }
 0x326   : > { %v1710_v48 = vrot.slane %v1709_v42, 1  ;;  %7024 = vmatmul.mubr.f32.gmra.mrb[60].mxu1 %v8244_v7 }
 0x327   : > { %v1861_v51 = vadd.f32 %v1860_v46, %v1859_v39  ;;  %7026 = vmatprep.mubr.f32.mxu1 %v8244_v7  ;;  %v2028_v54 = vadd.f32 %v1991_v47, %v1948_v40  ;;  %v2029_v56 = vadd.f32 %v1991_v47, %v1949_v25  ;;  %v2030_v57 = vadd.f32 %v1991_v47, %v1950_v44 }
 0x328   : > { %v1711_v49 = vadd.f32 %v1710_v48, %v1709_v42  ;;  %v2031_v59 = vadd.f32 %v1991_v47, %v1951_v19 }
 0x329   : > { %v1862_v45 = vrot.slane %v1861_v51, 1  ;;  %v2092_v60 = vmax.f32 %v2028_v54, 0.0  ;;  %v2093_v61 = vmax.f32 %v2029_v56, 0.0  ;;  %v2094_v2 = vmax.f32 %v2030_v57, 0.0 }
 0x32a   : > { %v1715_v62 = vmul.f32 0.03125, %v1711_v49  ;;  %7027 = vmatmul.mubr.f32.gmra.mrb[62].mxu1 %v8244_v7  ;;  %v2095_v4 = vmax.f32 %v2031_v59, 0.0 }
 0x32b   : > { %v1863_v0 = vadd.f32 %v1862_v45, %v1861_v51  ;;  %7029 = vmatprep.mubr.f32.mxu1 %v2092_v60 }
 0x32c   : > { %v1871_v63 = vmul.f32 %v1715_v62, %v1715_v62 }
 0x32d   : > { %v1867_v1 = vmul.f32 0.03125, %v1863_v0 }
 0x32e   : > { %7030 = vmatmul.mubr.f32.gmra.mrb[64].mxu1 %v2093_v61 }
 0x32f   : > { %v1875_v3 = vsub.f32 %v1867_v1, %v1871_v63  ;;  %7032 = vmatprep.mubr.f32.mxu1 %v2094_v2 }
 0x331   : > { %v1879_v41 = vmax.f32 %v1875_v3, 0.0 }
 0x332   : > { %7033 = vmatmul.mubr.f32.gmra.mrb[66].mxu1 %v2095_v4 }
 0x333   : > { %v1883_v5 = vadd.f32 1e-05, %v1879_v41  ;;  %7035 = vmatprep.mubr.f32.mxu1 %v8244_v7 }
 0x335   : > { %7859 = vrsqrt.f32 %v1883_v5 }
 0x336   : > { %7036 = vmatmul.mubr.f32.gmra.mrb[68].mxu1 %v8244_v7 }
 0x337   : > { %7038 = vmatprep.mubr.f32.mxu1 %v8244_v7 }
 0x33a   : > { %7039 = vmatmul.mubr.f32.gmra.mrb[70].mxu1 %v8244_v7 }
 0x33b   : > { %7041 = vmatprep.mubr.f32.mxu1 %v8244_v7 }
 0x33e   : > { %7042 = vmatmul.mubr.f32.gmra.mrb[72].mxu1 %v8244_v7 }
 0x33f   : > { %v7860_v6 = vpop.eup %7859  ;;  %7044 = vmatprep.mubr.f32.mxu1 %v8244_v7 }
 0x340   : > { %v1891_v9 = vmul.f32 %v7860_v6, %v8779_v43 }
 0x342   : > { %v1895_v55 = vmul.f32 %v1891_v9, %v1715_v62  ;;  %7045 = vmatmul.mubr.f32.gmra.mrb[74].mxu1 %v8244_v7  ;;  %v1915_v8 = vrot.slane %v1891_v9, %v8787_v50 }
 0x343   : > { %7047 = vmatprep.mubr.f32.mxu1 %v8244_v7 }
 0x344   : > { %v1899_v10 = vsub.f32 %v8797_v58, %v1895_v55  ;;  %v1964_v11 = vmul.f32 %v1915_v8, %v8831_v38  ;;  %v1965_v12 = vmul.f32 %v8827_v26, %v1915_v8  ;;  %v1966_v13 = vmul.f32 %v1915_v8, %v8842_v53  ;;  %v7885_v53 = vld [vmem:[%s8574_s29 + $0x80] sm:$0xff] }
 0x345   : > { %v1967_v14 = vmul.f32 %v8839_v52, %v1915_v8 }
 0x346   : > { %7048 = vmatmul.mubr.f32.gmra.mrb[76].mxu1 %v8244_v7  ;;  %v1995_v43 = vrot.slane %v1899_v10, %v8787_v50 }
 0x347   : > { %7050 = vmatprep.mubr.f32.mxu1 %v8244_v7 }
 0x348   : > { %v2044_v15 = vadd.f32 %v1995_v43, %v1964_v11  ;;  %v2045_v17 = vadd.f32 %v1995_v43, %v1965_v12  ;;  %v2046_v20 = vadd.f32 %v1995_v43, %v1966_v13  ;;  %v2047_v22 = vadd.f32 %v1995_v43, %v1967_v14 }
 0x34a   : > { %7051 = vmatmul.mubr.f32.gmra.mrb[78].mxu1 %v8244_v7  ;;  %v2108_v58 = vmax.f32 %v2044_v15, 0.0  ;;  %v2109_v38 = vmax.f32 %v2045_v17, 0.0  ;;  %v2110_v26 = vmax.f32 %v2046_v20, 0.0  ;;  %v2111_v52 = vmax.f32 %v2047_v22, 0.0 }
 0x34c   : > { %7053 = vmatprep.mubr.f32.mxu1 %v2108_v58 }
 0x34e   : > { %7054 = vmatmul.mubr.f32.gmra.mrb[80].mxu1 %v2109_v38 }
 0x34f   : > { %7056 = vmatprep.mubr.f32.mxu1 %v2110_v26 }
 0x352   : > { %7057 = vmatmul.mubr.f32.gmra.mrb[82].mxu1 %v2111_v52 }
 0x353   : > { %7059 = vmatprep.mubr.f32.mxu1 %v8244_v7 }
 0x356   : > { %7060 = vmatmul.mubr.f32.gmra.mrb[84].mxu1 %v8244_v7 }
 0x357   : > { %7062 = vmatprep.mubr.f32.mxu1 %v8244_v7 }
 0x35a   : > { %7063 = vmatmul.mubr.f32.gmra.mrb[86].mxu1 %v8244_v7 }
 0x35b   : > { %7065 = vmatprep.mubr.f32.mxu1 %v8244_v7 }
 0x35e   : > { %7066 = vmatmul.mubr.f32.gmra.mrb[88].mxu1 %v8244_v7 }
 0x35f   : > { %7068 = vmatprep.mubr.f32.mxu1 %v8244_v7 }
 0x362   : > { %7069 = vmatmul.mubr.f32.gmra.mrb[90].mxu1 %v8244_v7 }
 0x363   : > { %7071 = vmatprep.mubr.f32.mxu1 %v8244_v7 }
 0x366   : > { %7072 = vmatmul.mubr.f32.gmra.mrb[92].mxu1 %v8244_v7 }
 0x367   : > { %7074 = vmatprep.mubr.f32.mxu1 %v8244_v7 }
 0x36a   : > { %7075 = vmatmul.mubr.f32.gmra.mrb[94].mxu1 %v8244_v7 }
 0x36b   : > { %7117 = vmatprep.mubr.f32.mxu1 %v7885_v53 }
 0x3bf   : > { %v8920_v23 = vpop.f32.mrb[32].mxu1 }
 0x3c0   : > { %v2694_v24 = vmul.f32 %v8920_v23, %v8920_v23  ;;  %v8924_v18 = vpop.f32.mrb[33].mxu1 }
 0x3c1   : > { %v2605_v27 = vadd.f32 %v8920_v23, %v8924_v18  ;;  %v2693_v16 = vmul.f32 %v8924_v18, %v8924_v18 }
 0x3c3   : > { %v2757_v21 = vadd.f32 %v2694_v24, %v2693_v16  ;;  %v8930_v28 = vpop.f32.mrb[34].mxu1 }
 0x3c4   : > { %v8932_v29 = vpop.f32.mrb[35].mxu1  ;;  %v2696_v34 = vmul.f32 %v8930_v28, %v8930_v28 }
 0x3c5   : > { %v2606_v32 = vadd.f32 %v2605_v27, %v8932_v29  ;;  %v2695_v33 = vmul.f32 %v8932_v29, %v8932_v29 }
 0x3c7   : > { %v2758_v31 = vadd.f32 %v2757_v21, %v2695_v33  ;;  %v6989_v35 = vpop.f32.mrb[36].mxu1  ;;  %v2607_v30 = vadd.f32 %v8930_v28, %v2606_v32 }
 0x3c8   : > { %v2306_v36 = vpop.f32.mrb[37].mxu1  ;;  %v2698_v25 = vmul.f32 %v6989_v35, %v6989_v35 }
 0x3c9   : > { %v2608_v37 = vadd.f32 %v2607_v30, %v2306_v36  ;;  %v2697_v39 = vmul.f32 %v2306_v36, %v2306_v36  ;;  %v2759_v40 = vadd.f32 %v2758_v31, %v2696_v34 }
 0x3cb   : > { %v2760_v42 = vadd.f32 %v2759_v40, %v2697_v39  ;;  %v6992_v44 = vpop.f32.mrb[38].mxu1  ;;  %v2609_v19 = vadd.f32 %v6989_v35, %v2608_v37 }
 0x3cc   : > { %v2316_v46 = vpop.f32.mrb[39].mxu1  ;;  %v2700_v54 = vmul.f32 %v6992_v44, %v6992_v44 }
 0x3cd   : > { %v2610_v47 = vadd.f32 %v2609_v19, %v2316_v46  ;;  %v2699_v48 = vmul.f32 %v2316_v46, %v2316_v46  ;;  %v2761_v51 = vadd.f32 %v2760_v42, %v2698_v25 }
 0x3cf   : > { %v2762_v56 = vadd.f32 %v2761_v51, %v2699_v48  ;;  %v6995_v57 = vpop.f32.mrb[40].mxu1  ;;  %v2611_v49 = vadd.f32 %v6992_v44, %v2610_v47 }
 0x3d0   : > { %v2326_v59 = vpop.f32.mrb[41].mxu1  ;;  %v2702_v61 = vmul.f32 %v6995_v57, %v6995_v57 }
 0x3d1   : > { %v2612_v45 = vadd.f32 %v2611_v49, %v2326_v59  ;;  %v2701_v60 = vmul.f32 %v2326_v59, %v2326_v59  ;;  %v2763_v62 = vadd.f32 %v2762_v56, %v2700_v54 }
 0x3d3   : > { %v2764_v0 = vadd.f32 %v2763_v62, %v2701_v60  ;;  %v6998_v63 = vpop.f32.mrb[42].mxu1  ;;  %v2613_v1 = vadd.f32 %v6995_v57, %v2612_v45 }
 0x3d4   : > { %v2336_v2 = vpop.f32.mrb[43].mxu1  ;;  %v2704_v5 = vmul.f32 %v6998_v63, %v6998_v63 }
 0x3d5   : > { %v2614_v3 = vadd.f32 %v2613_v1, %v2336_v2  ;;  %v2703_v4 = vmul.f32 %v2336_v2, %v2336_v2  ;;  %v2765_v41 = vadd.f32 %v2764_v0, %v2702_v61 }
 0x3d7   : > { %v2766_v6 = vadd.f32 %v2765_v41, %v2703_v4  ;;  %v7001_v9 = vpop.f32.mrb[44].mxu1  ;;  %v2615_v55 = vadd.f32 %v6998_v63, %v2614_v3 }
 0x3d8   : > { %v2346_v8 = vpop.f32.mrb[45].mxu1  ;;  %v2706_v13 = vmul.f32 %v7001_v9, %v7001_v9 }
 0x3d9   : > { %v2616_v10 = vadd.f32 %v2615_v55, %v2346_v8  ;;  %v2705_v11 = vmul.f32 %v2346_v8, %v2346_v8  ;;  %v2767_v12 = vadd.f32 %v2766_v6, %v2704_v5 }
 0x3db   : > { %v2768_v14 = vadd.f32 %v2767_v12, %v2705_v11  ;;  %v7004_v43 = vpop.f32.mrb[46].mxu1  ;;  %v2617_v15 = vadd.f32 %v7001_v9, %v2616_v10 }
 0x3dc   : > { %v2356_v17 = vpop.f32.mrb[47].mxu1  ;;  %v2708_v38 = vmul.f32 %v7004_v43, %v7004_v43 }
 0x3dd   : > { %v2618_v20 = vadd.f32 %v2617_v15, %v2356_v17  ;;  %v2707_v22 = vmul.f32 %v2356_v17, %v2356_v17  ;;  %v2769_v58 = vadd.f32 %v2768_v14, %v2706_v13 }
 0x3df   : > { %v2619_v26 = vadd.f32 %v7004_v43, %v2618_v20  ;;  %v2770_v52 = vadd.f32 %v2769_v58, %v2707_v22 }
 0x3e1   : > { %v2620_v53 = vrot.slane %v2619_v26, 4  ;;  %v2771_v24 = vadd.f32 %v2770_v52, %v2708_v38  ;;  %v8940_v27 = vpop.f32.mrb[48].mxu1 }
 0x3e2   : > { %v2710_v16 = vmul.f32 %v8940_v27, %v8940_v27  ;;  %v8944_v21 = vpop.f32.mrb[49].mxu1 }
 0x3e3   : > { %v2621_v32 = vadd.f32 %v2620_v53, %v2619_v26  ;;  %v2772_v33 = vrot.slane %v2771_v24, 4  ;;  %v2626_v34 = vadd.f32 %v8940_v27, %v8944_v21  ;;  %v2709_v31 = vmul.f32 %v8944_v21, %v8944_v21 }
 0x3e5   : > { %v2622_v35 = vrot.slane %v2621_v32, 2  ;;  %v2773_v30 = vadd.f32 %v2772_v33, %v2771_v24  ;;  %v2778_v36 = vadd.f32 %v2710_v16, %v2709_v31  ;;  %v8950_v37 = vpop.f32.mrb[50].mxu1 }
 0x3e6   : > { %v8952_v39 = vpop.f32.mrb[51].mxu1  ;;  %v2712_v54 = vmul.f32 %v8950_v37, %v8950_v37 }
 0x3e7   : > { %v2623_v40 = vadd.f32 %v2622_v35, %v2621_v32  ;;  %v2774_v25 = vrot.slane %v2773_v30, 2  ;;  %v2627_v42 = vadd.f32 %v2626_v34, %v8952_v39  ;;  %v2711_v44 = vmul.f32 %v8952_v39, %v8952_v39 }
 0x3e9   : > { %v2624_v19 = vrot.slane %v2623_v40, 1  ;;  %v2775_v46 = vadd.f32 %v2774_v25, %v2773_v30  ;;  %v2779_v47 = vadd.f32 %v2778_v36, %v2711_v44  ;;  %v7013_v48 = vpop.f32.mrb[52].mxu1  ;;  %v2628_v51 = vadd.f32 %v8950_v37, %v2627_v42 }
 0x3ea   : > { %v2386_v56 = vpop.f32.mrb[53].mxu1  ;;  %v2714_v1 = vmul.f32 %v7013_v48, %v7013_v48 }
 0x3eb   : > { %v2625_v57 = vadd.f32 %v2624_v19, %v2623_v40  ;;  %v2776_v49 = vrot.slane %v2775_v46, 1  ;;  %v2629_v59 = vadd.f32 %v2628_v51, %v2386_v56  ;;  %v2713_v45 = vmul.f32 %v2386_v56, %v2386_v56 }
 0x3ec   : > { %v2780_v60 = vadd.f32 %v2779_v47, %v2712_v54  ;;  %v8963_v47 = vld [vmem:[%s9643_s6 + $0x2] sm:$0x1] }
 0x3ed   : > { %v2689_v62 = vmul.f32 0.03125, %v2625_v57  ;;  %v2777_v61 = vadd.f32 %v2776_v49, %v2775_v46  ;;  %v7016_v0 = vpop.f32.mrb[54].mxu1  ;;  %v2630_v63 = vadd.f32 %v7013_v48, %v2629_v59 }
 0x3ee   : > { %v2781_v2 = vadd.f32 %v2780_v60, %v2713_v45  ;;  %v2396_v3 = vpop.f32.mrb[55].mxu1  ;;  %v2716_v11 = vmul.f32 %v7016_v0, %v7016_v0 }
 0x3ef   : > { %v2841_v4 = vmul.f32 0.03125, %v2777_v61  ;;  %v2845_v41 = vmul.f32 %v2689_v62, %v2689_v62  ;;  %v2631_v5 = vadd.f32 %v2630_v63, %v2396_v3  ;;  %v2715_v6 = vmul.f32 %v2396_v3, %v2396_v3  ;;  %v8975_v63 = vld [vmem:[%s9643_s6 + $0x3] sm:$0x1] }
 0x3f0   : > { %v2782_v9 = vadd.f32 %v2781_v2, %v2714_v1 }
 0x3f1   : > { %v2849_v55 = vsub.f32 %v2841_v4, %v2845_v41  ;;  %v7019_v8 = vpop.f32.mrb[56].mxu1  ;;  %v2632_v10 = vadd.f32 %v7016_v0, %v2631_v5 }
 0x3f2   : > { %v2783_v12 = vadd.f32 %v2782_v9, %v2715_v6  ;;  %v2406_v13 = vpop.f32.mrb[57].mxu1  ;;  %v2718_v38 = vmul.f32 %v7019_v8, %v7019_v8 }
 0x3f3   : > { %v2853_v14 = vmax.f32 %v2849_v55, 0.0  ;;  %v2633_v43 = vadd.f32 %v2632_v10, %v2406_v13  ;;  %v2717_v15 = vmul.f32 %v2406_v13, %v2406_v13 }
 0x3f4   : > { %v2784_v17 = vadd.f32 %v2783_v12, %v2716_v11 }
 0x3f5   : > { %v2857_v20 = vadd.f32 1e-05, %v2853_v14  ;;  %v7022_v22 = vpop.f32.mrb[58].mxu1  ;;  %v2634_v58 = vadd.f32 %v7019_v8, %v2633_v43 }
 0x3f6   : > { %v2785_v26 = vadd.f32 %v2784_v17, %v2717_v15  ;;  %v2416_v52 = vpop.f32.mrb[59].mxu1  ;;  %v2720_v34 = vmul.f32 %v7022_v22, %v7022_v22 }
 0x3f7   : > { %7861 = vrsqrt.f32 %v2857_v20  ;;  %v2635_v53 = vadd.f32 %v2634_v58, %v2416_v52  ;;  %v2719_v24 = vmul.f32 %v2416_v52, %v2416_v52 }
 0x3f8   : > { %v2786_v16 = vadd.f32 %v2785_v26, %v2718_v38 }
 0x3f9   : > { %v7025_v32 = vpop.f32.mrb[60].mxu1  ;;  %v2636_v33 = vadd.f32 %v7022_v22, %v2635_v53 }
 0x3fa   : > { %v2787_v31 = vadd.f32 %v2786_v16, %v2719_v24  ;;  %v2426_v35 = vpop.f32.mrb[61].mxu1  ;;  %v2722_v44 = vmul.f32 %v7025_v32, %v7025_v32 }
 0x3fb   : > { %v2637_v30 = vadd.f32 %v2636_v33, %v2426_v35  ;;  %v2721_v36 = vmul.f32 %v2426_v35, %v2426_v35 }
 0x3fc   : > { %v2788_v40 = vadd.f32 %v2787_v31, %v2720_v34 }
 0x3fd   : > { %v7028_v25 = vpop.f32.mrb[62].mxu1  ;;  %v2638_v42 = vadd.f32 %v7025_v32, %v2637_v30 }
 0x3fe   : > { %v2789_v19 = vadd.f32 %v2788_v40, %v2721_v36  ;;  %v2436_v46 = vpop.f32.mrb[63].mxu1  ;;  %v2724_v45 = vmul.f32 %v7028_v25, %v7028_v25 }
 0x3ff   : > { %v2639_v48 = vadd.f32 %v2638_v42, %v2436_v46  ;;  %v2723_v51 = vmul.f32 %v2436_v46, %v2436_v46 }
 0x400   : > { %v2790_v54 = vadd.f32 %v2789_v19, %v2722_v44 }
 0x401   : > { %v7862_v56 = vpop.eup %7861  ;;  %v2640_v57 = vadd.f32 %v7028_v25, %v2639_v48  ;;  %v8965_v49 = vpop.f32.mrb[64].mxu1 }
 0x402   : > { %v2865_v59 = vmul.f32 %v7862_v56, %v8963_v47  ;;  %v2791_v60 = vadd.f32 %v2790_v54, %v2723_v51  ;;  %v2726_v61 = vmul.f32 %v8965_v49, %v8965_v49  ;;  %v8970_v0 = vpop.f32.mrb[65].mxu1 }
 0x403   : > { %v2641_v1 = vrot.slane %v2640_v57, 4  ;;  %v2647_v2 = vadd.f32 %v8965_v49, %v8970_v0  ;;  %v2725_v3 = vmul.f32 %v8970_v0, %v8970_v0 }
 0x404   : > { %v2869_v4 = vmul.f32 %v2865_v59, %v2689_v62  ;;  %v2880_v41 = vrot.slane %v2865_v59, %v8787_v50  ;;  %v2792_v5 = vadd.f32 %v2791_v60, %v2724_v45 }
 0x405   : > { %v2642_v6 = vadd.f32 %v2641_v1, %v2640_v57  ;;  %v2799_v9 = vadd.f32 %v2726_v61, %v2725_v3  ;;  %v8982_v55 = vpop.f32.mrb[66].mxu1 }
 0x406   : > { %v2873_v8 = vsub.f32 %v8975_v63, %v2869_v4  ;;  %v2793_v10 = vrot.slane %v2792_v5, 4  ;;  %v8985_v11 = vpop.f32.mrb[67].mxu1  ;;  %v2893_v12 = vmul.f32 %v2880_v41, %v8924_v18  ;;  %v2894_v43 = vmul.f32 %v8920_v23, %v2880_v41 }
 0x407   : > { %v2643_v13 = vrot.slane %v2642_v6, 2  ;;  %v2648_v14 = vadd.f32 %v2647_v2, %v8985_v11  ;;  %v2727_v62 = vmul.f32 %v8985_v11, %v8985_v11  ;;  %v2895_v20 = vmul.f32 %v2880_v41, %v8932_v29 }
 0x408   : > { %v2794_v15 = vadd.f32 %v2793_v10, %v2792_v5  ;;  %v2960_v17 = vrot.slane %v2873_v8, %v8787_v50  ;;  %v2896_v22 = vmul.f32 %v8930_v28, %v2880_v41  ;;  %v2728_v38 = vmul.f32 %v8982_v55, %v8982_v55 }
 0x409   : > { %v2644_v58 = vadd.f32 %v2643_v13, %v2642_v6  ;;  %v2800_v18 = vadd.f32 %v2799_v9, %v2727_v62  ;;  %v7037_v26 = vpop.f32.mrb[68].mxu1  ;;  %v2649_v52 = vadd.f32 %v8982_v55, %v2648_v14 }
 0x40a   : > { %v2795_v53 = vrot.slane %v2794_v15, 2  ;;  %v2730_v24 = vmul.f32 %v7037_v26, %v7037_v26  ;;  %v2466_v16 = vpop.f32.mrb[69].mxu1  ;;  %v2973_v32 = vadd.f32 %v2960_v17, %v2893_v12  ;;  %v2974_v23 = vadd.f32 %v2960_v17, %v2894_v43 }
 0x40b   : > { %v2645_v33 = vrot.slane %v2644_v58, 1  ;;  %v2650_v34 = vadd.f32 %v2649_v52, %v2466_v16  ;;  %v2729_v31 = vmul.f32 %v2466_v16, %v2466_v16  ;;  %v2801_v35 = vadd.f32 %v2800_v18, %v2728_v38 }
 0x40c   : > { %v2796_v29 = vadd.f32 %v2795_v53, %v2794_v15  ;;  %v3037_v30 = vmax.f32 %v2973_v32, 0.0  ;;  %v3038_v28 = vmax.f32 %v2974_v23, 0.0  ;;  %v2975_v36 = vadd.f32 %v2960_v17, %v2895_v20  ;;  %v7887_v32 = vld [vmem:[%s8574_s29 + $0x10] sm:$0xff] }
 0x40d   : > { %v2646_v40 = vadd.f32 %v2645_v33, %v2644_v58  ;;  %v2802_v25 = vadd.f32 %v2801_v35, %v2729_v31  ;;  %v7040_v42 = vpop.f32.mrb[70].mxu1  ;;  %v2651_v44 = vadd.f32 %v7037_v26, %v2650_v34  ;;  %v2976_v19 = vadd.f32 %v2960_v17, %v2896_v22  ;;  %v7886_v26 = vld [vmem:[%s8574_s29 + $0x8] sm:$0xff]  ;;  %v7888_v35 = vld [vmem:[%s8574_s29 + $0x18] sm:$0xff] }
 0x40e   : > { %v2797_v46 = vrot.slane %v2796_v29, 1  ;;  %v2476_v48 = vpop.f32.mrb[71].mxu1  ;;  %v7653_v51 = vpack.c.bf16 %v3038_v28, %v3037_v30  ;;  %v3039_v54 = vmax.f32 %v2975_v36, 0.0  ;;  %v2732_v2 = vmul.f32 %v7040_v42, %v7040_v42 }
 0x40f   : > { %v8998_v56 = vmul.f32 0.03125, %v2646_v40  ;;  %v2652_v57 = vadd.f32 %v2651_v44, %v2476_v48  ;;  %v2731_v59 = vmul.f32 %v2476_v48, %v2476_v48  ;;  %v2803_v45 = vadd.f32 %v2802_v25, %v2730_v24  ;;  %v7889_v40 = vld [vmem:[%s8574_s29 + $0x20] sm:$0xff] }
 0x410   : > { %v2798_v60 = vadd.f32 %v2797_v46, %v2796_v29  ;;  %7654 = vmatprep.subr.bf16.mxu0 %v7653_v51  ;;  %v3040_v61 = vmax.f32 %v2976_v19, 0.0  ;;  %v7890_v46 = vld [vmem:[%s8574_s29 + $0x28] sm:$0xff] }
 0x411   : > { %v2846_v1 = vmul.f32 %v8998_v56, %v8998_v56  ;;  %v2804_v3 = vadd.f32 %v2803_v45, %v2731_v59  ;;  %v7043_v4 = vpop.f32.mrb[72].mxu1  ;;  %v2653_v41 = vadd.f32 %v7040_v42, %v2652_v57  ;;  %7656 = vmatpush3.bf16.msra.mxu0 %v7653_v51  ;;  %v7891_v59 = vld [vmem:[%s8574_s29 + $0x30] sm:$0xff] }
 0x412   : > { %v2842_v5 = vmul.f32 0.03125, %v2798_v60  ;;  %v2486_v6 = vpop.f32.mrb[73].mxu1  ;;  %v7657_v9 = vpack.c.bf16 %v3040_v61, %v3039_v54  ;;  %v2734_v14 = vmul.f32 %v7043_v4, %v7043_v4 }
 0x413   : > { %v2654_v8 = vadd.f32 %v2653_v41, %v2486_v6  ;;  %v2733_v10 = vmul.f32 %v2486_v6, %v2486_v6  ;;  %v2805_v12 = vadd.f32 %v2804_v3, %v2732_v2  ;;  %v7892_v41 = vld [vmem:[%s8574_s29 + $0x38] sm:$0xff] }
 0x414   : > { %v2850_v13 = vsub.f32 %v2842_v5, %v2846_v1  ;;  %7658 = vmatprep.subr.bf16.mxu0 %v7657_v9 }
 0x415   : > { %v2806_v62 = vadd.f32 %v2805_v12, %v2733_v10  ;;  %v7046_v43 = vpop.f32.mrb[74].mxu1  ;;  %v2655_v15 = vadd.f32 %v7043_v4, %v2654_v8  ;;  %7660 = vmatpush3.bf16.msra.mxu0 %v7657_v9  ;;  %v7893_v12 = vld [vmem:[%s8574_s29 + $0x40] sm:$0xff] }
 0x416   : > { %v2854_v17 = vmax.f32 %v2850_v13, 0.0  ;;  %v2496_v20 = vpop.f32.mrb[75].mxu1  ;;  %v2736_v52 = vmul.f32 %v7046_v43, %v7046_v43 }
 0x417   : > { %v2656_v22 = vadd.f32 %v2655_v15, %v2496_v20  ;;  %v2735_v58 = vmul.f32 %v2496_v20, %v2496_v20  ;;  %v2807_v38 = vadd.f32 %v2806_v62, %v2734_v14 }
 0x418   : > { %v2858_v18 = vadd.f32 1e-05, %v2854_v17  ;;  %7086 = vmatmul.mubr.f32.vlgmr.msra.gmra.mrb[96].mxu0 %v7886_v26 }
 0x419   : > { %v2808_v53 = vadd.f32 %v2807_v38, %v2735_v58  ;;  %v7049_v24 = vpop.f32.mrb[76].mxu1  ;;  %v2657_v16 = vadd.f32 %v7046_v43, %v2656_v22  ;;  %7088 = vmatprep.mubr.f32.mxu0 %v7887_v32  ;;  %v7894_v22 = vld [vmem:[%s8574_s29 + $0x48] sm:$0xff] }
 0x41a   : > { %7863 = vrsqrt.f32 %v2858_v18  ;;  %v2506_v23 = vpop.f32.mrb[77].mxu1  ;;  %v2738_v29 = vmul.f32 %v7049_v24, %v7049_v24 }
 0x41b   : > { %v2658_v33 = vadd.f32 %v2657_v16, %v2506_v23  ;;  %v2737_v34 = vmul.f32 %v2506_v23, %v2506_v23  ;;  %v2809_v31 = vadd.f32 %v2808_v53, %v2736_v52  ;;  %v7895_v52 = vld [vmem:[%s8574_s29 + $0x50] sm:$0xff] }
 0x41c   : > { %7089 = vmatmul.mubr.f32.gmra.mrb[98].mxu0 %v7888_v35 }
 0x41d   : > { %v2810_v30 = vadd.f32 %v2809_v31, %v2737_v34  ;;  %v7052_v28 = vpop.f32.mrb[78].mxu1  ;;  %v2659_v36 = vadd.f32 %v7049_v24, %v2658_v33  ;;  %7091 = vmatprep.mubr.f32.mxu0 %v7889_v40 }
 0x41e   : > { %v2516_v25 = vpop.f32.mrb[79].mxu1  ;;  %v2740_v48 = vmul.f32 %v7052_v28, %v7052_v28 }
 0x41f   : > { %v2660_v42 = vadd.f32 %v2659_v36, %v2516_v25  ;;  %v2739_v44 = vmul.f32 %v2516_v25, %v2516_v25  ;;  %v2811_v19 = vadd.f32 %v2810_v30, %v2738_v29 }
 0x420   : > { %7092 = vmatmul.mubr.f32.gmra.mrb[100].mxu0 %v7890_v46 }
 0x421   : > { %v2661_v51 = vadd.f32 %v7052_v28, %v2660_v42  ;;  %v2812_v54 = vadd.f32 %v2811_v19, %v2739_v44  ;;  %v9007_v57 = vpop.f32.mrb[80].mxu1  ;;  %7094 = vmatprep.mubr.f32.mxu0 %v7891_v59  ;;  %v7896_v28 = vld [vmem:[%s8574_s29 + $0x58] sm:$0xff]  ;;  %v7897_v44 = vld [vmem:[%s8574_s29 + $0x60] sm:$0xff] }
 0x422   : > { %v2742_v45 = vmul.f32 %v9007_v57, %v9007_v57  ;;  %v9012_v60 = vpop.f32.mrb[81].mxu1 }
 0x423   : > { %v2662_v61 = vrot.slane %v2661_v51, 4  ;;  %v2813_v1 = vadd.f32 %v2812_v54, %v2740_v48  ;;  %v2668_v2 = vadd.f32 %v9007_v57, %v9012_v60  ;;  %v2741_v3 = vmul.f32 %v9012_v60, %v9012_v60 }
 0x424   : > { %v7864_v4 = vpop.eup %7863  ;;  %7095 = vmatmul.mubr.f32.gmra.mrb[102].mxu0 %v7892_v41 }
 0x425   : > { %v2866_v5 = vmul.f32 %v7864_v4, %v8963_v47  ;;  %v2663_v6 = vadd.f32 %v2662_v61, %v2661_v51  ;;  %v2814_v9 = vrot.slane %v2813_v1, 4  ;;  %v2820_v8 = vadd.f32 %v2742_v45, %v2741_v3  ;;  %v9020_v10 = vpop.f32.mrb[82].mxu1  ;;  %7097 = vmatprep.mubr.f32.mxu0 %v7893_v12  ;;  %v7898_v3 = vld [vmem:[%s8574_s29 + $0x68] sm:$0xff]  ;;  %v7899_v12 = vld [vmem:[%s8574_s29 + $0x70] sm:$0xff] }
 0x426   : > { %v9023_v13 = vpop.f32.mrb[83].mxu1  ;;  %v2744_v53 = vmul.f32 %v9020_v10, %v9020_v10 }
 0x427   : > { %v2870_v14 = vmul.f32 %v2866_v5, %v8998_v56  ;;  %v2884_v62 = vrot.slane %v2866_v5, %v8787_v50  ;;  %v2664_v43 = vrot.slane %v2663_v6, 2  ;;  %v2815_v15 = vadd.f32 %v2814_v9, %v2813_v1 }
 0x428   : > { %v2669_v17 = vadd.f32 %v2668_v2, %v9023_v13  ;;  %v2743_v20 = vmul.f32 %v9023_v13, %v9023_v13  ;;  %7098 = vmatmul.mubr.f32.gmra.mrb[104].mxu0 %v7894_v22 }
 0x429   : > { %v2874_v58 = vsub.f32 %v8975_v63, %v2870_v14  ;;  %v2665_v38 = vadd.f32 %v2664_v43, %v2663_v6  ;;  %v2816_v18 = vrot.slane %v2815_v15, 2  ;;  %v7061_v26 = vpop.f32.mrb[84].mxu1  ;;  %7100 = vmatprep.mubr.f32.mxu0 %v7895_v52  ;;  %v2909_v56 = vmul.f32 %v2884_v62, %v8944_v21 }
 0x42a   : > { %v2821_v24 = vadd.f32 %v2820_v8, %v2743_v20  ;;  %v2546_v16 = vpop.f32.mrb[85].mxu1  ;;  %v2670_v32 = vadd.f32 %v9020_v10, %v2669_v17  ;;  %v2910_v23 = vmul.f32 %v8940_v27, %v2884_v62  ;;  %v2911_v21 = vmul.f32 %v2884_v62, %v8952_v39 }
 0x42b   : > { %v2666_v33 = vrot.slane %v2665_v38, 1  ;;  %v2817_v34 = vadd.f32 %v2816_v18, %v2815_v15  ;;  %v2745_v31 = vmul.f32 %v2546_v16, %v2546_v16  ;;  %v2964_v35 = vrot.slane %v2874_v58, %v8787_v50 }
 0x42c   : > { %v2671_v29 = vadd.f32 %v2670_v32, %v2546_v16  ;;  %v2822_v30 = vadd.f32 %v2821_v24, %v2744_v53  ;;  %7101 = vmatmul.mubr.f32.gmra.mrb[106].mxu0 %v7896_v28  ;;  %v2912_v36 = vmul.f32 %v8950_v37, %v2884_v62  ;;  %v2746_v46 = vmul.f32 %v7061_v26, %v7061_v26  ;;  %v7901_v24 = vld [vmem:[%s8574_s29 + $0x100] sm:$0xff] }
 0x42d   : > { %v2667_v40 = vadd.f32 %v2666_v33, %v2665_v38  ;;  %v2818_v25 = vrot.slane %v2817_v34, 1  ;;  %v7064_v42 = vpop.f32.mrb[86].mxu1  ;;  %7103 = vmatprep.mubr.f32.mxu0 %v7897_v44  ;;  %v2989_v27 = vadd.f32 %v2964_v35, %v2909_v56  ;;  %v2990_v19 = vadd.f32 %v2964_v35, %v2910_v23 }
 0x42e   : > { %v2823_v48 = vadd.f32 %v2822_v30, %v2745_v31  ;;  %v2556_v51 = vpop.f32.mrb[87].mxu1  ;;  %v2672_v54 = vadd.f32 %v7061_v26, %v2671_v29  ;;  %v2991_v59 = vadd.f32 %v2964_v35, %v2911_v21  ;;  %v2992_v41 = vadd.f32 %v2964_v35, %v2912_v36  ;;  %v7900_v26 = vld [vmem:[%s8574_s29 + $0x78] sm:$0xff] }
 0x42f   : > { %v9043_v45 = vmul.f32 0.03125, %v2667_v40  ;;  %v2819_v61 = vadd.f32 %v2818_v25, %v2817_v34  ;;  %v2747_v39 = vmul.f32 %v2556_v51, %v2556_v51  ;;  %v3053_v1 = vmax.f32 %v2989_v27, 0.0  ;;  %v7902_v27 = vld [vmem:[%s8574_s29 + $0x88] sm:$0xff] }
 0x430   : > { %v2673_v37 = vadd.f32 %v2672_v54, %v2556_v51  ;;  %v2824_v2 = vadd.f32 %v2823_v48, %v2746_v46  ;;  %7104 = vmatmul.mubr.f32.gmra.mrb[108].mxu0 %v7898_v3  ;;  %v3054_v4 = vmax.f32 %v2990_v19, 0.0  ;;  %v3055_v8 = vmax.f32 %v2991_v59, 0.0  ;;  %v7903_v46 = vld [vmem:[%s8574_s29 + $0x90] sm:$0xff] }
 0x431   : > { %v2843_v5 = vmul.f32 0.03125, %v2819_v61  ;;  %v2847_v6 = vmul.f32 %v9043_v45, %v9043_v45  ;;  %v7067_v9 = vpop.f32.mrb[88].mxu1  ;;  %7106 = vmatprep.mubr.f32.mxu0 %v7899_v12  ;;  %v2748_v14 = vmul.f32 %v7064_v42, %v7064_v42  ;;  %v3056_v58 = vmax.f32 %v2992_v41, 0.0  ;;  %v7906_v12 = vld [vmem:[%s8574_s29 + $0xa8] sm:$0xff] }
 0x432   : > { %v2825_v62 = vadd.f32 %v2824_v2, %v2747_v39  ;;  %v2566_v43 = vpop.f32.mrb[89].mxu1  ;;  %v2674_v15 = vadd.f32 %v7064_v42, %v2673_v37  ;;  %v7661_v17 = vpack.c.bf16 %v3054_v4, %v3053_v1  ;;  %v2750_v16 = vmul.f32 %v7067_v9, %v7067_v9  ;;  %v7904_v37 = vld [vmem:[%s8574_s29 + $0x98] sm:$0xff]  ;;  %v7905_v2 = vld [vmem:[%s8574_s29 + $0xa0] sm:$0xff] }
 0x433   : > { %v2851_v20 = vsub.f32 %v2843_v5, %v2847_v6  ;;  %v2749_v22 = vmul.f32 %v2566_v43, %v2566_v43  ;;  %v7665_v56 = vpack.c.bf16 %v3056_v58, %v3055_v8 }
 0x434   : > { %v2675_v38 = vadd.f32 %v2674_v15, %v2566_v43  ;;  %v2826_v18 = vadd.f32 %v2825_v62, %v2748_v14  ;;  %7662 = vmatprep.subr.bf16.mxu1 %v7661_v17  ;;  %7107 = vmatmul.mubr.f32.gmra.mrb[110].mxu0 %v7900_v26  ;;  %v7907_v14 = vld [vmem:[%s8574_s29 + $0xb0] sm:$0xff]  ;;  %v7909_v26 = vld [vmem:[%s8574_s29 + $0xc0] sm:$0xff] }
 0x435   : > { %v2855_v52 = vmax.f32 %v2851_v20, 0.0  ;;  %7664 = vmatpush3.bf16.msra.mxu1 %v7661_v17  ;;  %v7070_v53 = vpop.f32.mrb[90].mxu1  ;;  %7149 = vmatprep.mubr.f32.mxu0 %v7901_v24 }
 0x436   : > { %v2827_v32 = vadd.f32 %v2826_v18, %v2749_v22  ;;  %v2576_v23 = vpop.f32.mrb[91].mxu1  ;;  %v2676_v33 = vadd.f32 %v7067_v9, %v2675_v38  ;;  %7666 = vmatprep.subr.bf16.mxu1 %v7665_v56  ;;  %v2752_v28 = vmul.f32 %v7070_v53, %v7070_v53  ;;  %v7908_v38 = vld [vmem:[%s8574_s29 + $0xb8] sm:$0xff] }
 0x437   : > { %v2859_v34 = vadd.f32 1e-05, %v2855_v52  ;;  %v2751_v31 = vmul.f32 %v2576_v23, %v2576_v23 }
 0x438   : > { %v2677_v35 = vadd.f32 %v2676_v33, %v2576_v23  ;;  %v2828_v29 = vadd.f32 %v2827_v32, %v2750_v16  ;;  %v7910_v33 = vld [vmem:[%s8574_s29 + $0xc8] sm:$0xff] }
 0x439   : > { %7865 = vrsqrt.f32 %v2859_v34  ;;  %7668 = vmatpush3.bf16.msra.mxu1 %v7665_v56  ;;  %v7073_v30 = vpop.f32.mrb[92].mxu1 }
 0x43a   : > { %v2829_v21 = vadd.f32 %v2828_v29, %v2751_v31  ;;  %v2586_v36 = vpop.f32.mrb[93].mxu1  ;;  %v2678_v40 = vadd.f32 %v7070_v53, %v2677_v35  ;;  %v2754_v48 = vmul.f32 %v7073_v30, %v7073_v30 }
 0x43b   : > { %v2753_v25 = vmul.f32 %v2586_v36, %v2586_v36 }
 0x43c   : > { %v2679_v42 = vadd.f32 %v2678_v40, %v2586_v36  ;;  %v2830_v44 = vadd.f32 %v2829_v21, %v2752_v28  ;;  %7118 = vmatmul.mubr.f32.vlgmr.msra.gmra.mrb[96].mxu1 %v7902_v27 }
 0x43d   : > { %v7076_v19 = vpop.f32.mrb[94].mxu1  ;;  %7120 = vmatprep.mubr.f32.mxu1 %v7903_v46  ;;  %v3166_v46 = vld [vmem:[#allocation10 + $0x8] sm:$0xff] }
 0x43e   : > { %v2831_v51 = vadd.f32 %v2830_v44, %v2753_v25  ;;  %v2596_v54 = vpop.f32.mrb[95].mxu1  ;;  %v2680_v59 = vadd.f32 %v7073_v30, %v2679_v42  ;;  %v2756_v3 = vmul.f32 %v7076_v19, %v7076_v19  ;;  %v7912_v25 = vld [vmem:[%s8574_s29 + $0xd8] sm:$0xff]  ;;  %v7913_v44 = vld [vmem:[%s8574_s29 + $0xe0] sm:$0xff] }
 0x43f   : > { %v2755_v61 = vmul.f32 %v2596_v54, %v2596_v54 }
 0x440   : > { %v2681_v39 = vadd.f32 %v2680_v59, %v2596_v54  ;;  %v2832_v1 = vadd.f32 %v2831_v51, %v2754_v48  ;;  %7121 = vmatmul.mubr.f32.gmra.mrb[98].mxu1 %v7904_v37  ;;  %v7914_v59 = vld [vmem:[%s8574_s29 + $0xe8] sm:$0xff]  ;;  %v3168_v37 = vld [vmem:[#allocation10 + $0x18] sm:$0xff] }
 0x441   : > { %7123 = vmatprep.mubr.f32.mxu1 %v7905_v2 }
 0x442   : > { %v2682_v4 = vadd.f32 %v7076_v19, %v2681_v39  ;;  %v2833_v41 = vadd.f32 %v2832_v1, %v2755_v61  ;;  %v3165_v19 = vld [vmem:[#allocation10] sm:$0xff]  ;;  %v7915_v39 = vld [vmem:[%s8574_s29 + $0xf0] sm:$0xff] }
 0x443   : > { %v7866_v5 = vpop.eup %7865  ;;  %v7685_v61 = vpack.c.bf16 %v3166_v46, %v3165_v19  ;;  %v3167_v1 = vld [vmem:[#allocation10 + $0x10] sm:$0xff] }
 0x444   : > { %v2867_v6 = vmul.f32 %v7866_v5, %v8963_v47  ;;  %v2683_v9 = vrot.slane %v2682_v4, 4  ;;  %v2834_v8 = vadd.f32 %v2833_v41, %v2756_v3  ;;  %7124 = vmatmul.mubr.f32.gmra.mrb[100].mxu1 %v7906_v12  ;;  %v7689_v41 = vpack.c.bf16 %v3168_v37, %v3167_v1  ;;  %v7917_v5 = vld [vmem:[%s8574_s29 + $0x180] sm:$0xff]  ;;  %v7919_v12 = vld [vmem:[%s8574_s29 + $0x110] sm:$0xff]  ;;  %v7935_v1 = vld [vmem:[%s8574_s29 + $0x198] sm:$0xff] }
 0x445   : > { %7126 = vmatprep.mubr.f32.mxu1 %v7907_v14  ;;  %v7936_v37 = vld [vmem:[%s8574_s29 + $0x1a0] sm:$0xff] }
 0x446   : > { %v2871_v62 = vmul.f32 %v2867_v6, %v9043_v45  ;;  %v2888_v43 = vrot.slane %v2867_v6, %v8787_v50  ;;  %v2684_v15 = vadd.f32 %v2683_v9, %v2682_v4  ;;  %v2835_v17 = vrot.slane %v2834_v8, 4  ;;  %v7916_v4 = vld [vmem:[%s8574_s29 + $0xf8] sm:$0xff]  ;;  %v3169_v6 = vld [vmem:[#allocation10 + $0x20] sm:$0xff]  ;;  %v3170_v9 = vld [vmem:[#allocation10 + $0x28] sm:$0xff] }
 0x447   : > { %v7693_v14 = vpack.c.bf16 %v3170_v9, %v3169_v6  ;;  %v7942_v6 = vld [vmem:[%s8574_s29 + $0x1d0] sm:$0xff]  ;;  %v7943_v9 = vld [vmem:[%s8574_s29 + $0x1d8] sm:$0xff] }
 0x448   : > { %v2875_v20 = vsub.f32 %v8975_v63, %v2871_v62  ;;  %v2685_v22 = vrot.slane %v2684_v15, 2  ;;  %v2836_v58 = vadd.f32 %v2835_v17, %v2834_v8  ;;  %7127 = vmatmul.mubr.f32.gmra.mrb[102].mxu1 %v7908_v38  ;;  %v2925_v18 = vmul.f32 %v2888_v43, %v8970_v0  ;;  %v7911_v0 = vld [vmem:[%s8574_s29 + $0xd0] sm:$0xff]  ;;  %v7918_v8 = vld [vmem:[%s8574_s29 + $0x108] sm:$0xff]  ;;  %v7921_v17 = vld [vmem:[%s8574_s29 + $0x120] sm:$0xff] }
 0x449   : > { %7129 = vmatprep.mubr.f32.mxu1 %v7909_v26  ;;  %v2926_v52 = vmul.f32 %v8965_v49, %v2888_v43  ;;  %v2927_v45 = vmul.f32 %v2888_v43, %v8985_v11  ;;  %v2928_v56 = vmul.f32 %v8982_v55, %v2888_v43  ;;  %v3171_v62 = vld [vmem:[#allocation10 + $0x30] sm:$0xff]  ;;  %v3172_v43 = vld [vmem:[#allocation10 + $0x38] sm:$0xff]  ;;  %v7922_v38 = vld [vmem:[%s8574_s29 + $0x128] sm:$0xff] }
 0x44a   : > { %v2686_v53 = vadd.f32 %v2685_v22, %v2684_v15  ;;  %v2837_v24 = vrot.slane %v2836_v58, 2  ;;  %v2968_v16 = vrot.slane %v2875_v20, %v8787_v50  ;;  %v7920_v15 = vld [vmem:[%s8574_s29 + $0x118] sm:$0xff]  ;;  %v7697_v20 = vpack.c.bf16 %v3172_v43, %v3171_v62  ;;  %v3173_v22 = vld [vmem:[#allocation10 + $0x40] sm:$0xff] }
 0x44b   : > { %v7947_v62 = vld [vmem:[%s8574_s29 + $0x1f8] sm:$0xff] }
 0x44c   : > { %v2687_v32 = vrot.slane %v2686_v53, 1  ;;  %v2838_v23 = vadd.f32 %v2837_v24, %v2836_v58  ;;  %7130 = vmatmul.mubr.f32.gmra.mrb[104].mxu1 %v7910_v33  ;;  %v3005_v34 = vadd.f32 %v2968_v16, %v2925_v18  ;;  %v3006_v31 = vadd.f32 %v2968_v16, %v2926_v52  ;;  %v3174_v58 = vld [vmem:[#allocation10 + $0x48] sm:$0xff]  ;;  %v7923_v18 = vld [vmem:[%s8574_s29 + $0x130] sm:$0xff]  ;;  %v7924_v24 = vld [vmem:[%s8574_s29 + $0x138] sm:$0xff] }
 0x44d   : > { %7132 = vmatprep.mubr.f32.mxu1 %v7911_v0  ;;  %v3007_v35 = vadd.f32 %v2968_v16, %v2927_v45  ;;  %v3008_v49 = vadd.f32 %v2968_v16, %v2928_v56  ;;  %v7701_v52 = vpack.c.bf16 %v3174_v58, %v3173_v22  ;;  %v3175_v56 = vld [vmem:[#allocation10 + $0x50] sm:$0xff] }
 0x44e   : > { %v2688_v29 = vadd.f32 %v2687_v32, %v2686_v53  ;;  %v2839_v11 = vrot.slane %v2838_v23, 1  ;;  %v3069_v30 = vmax.f32 %v3005_v34, 0.0  ;;  %v3070_v55 = vmax.f32 %v3006_v31, 0.0  ;;  %v3176_v53 = vld [vmem:[#allocation10 + $0x58] sm:$0xff] }
 0x44f   : > { %v3071_v28 = vmax.f32 %v3007_v35, 0.0  ;;  %v3072_v21 = vmax.f32 %v3008_v49, 0.0  ;;  %v7705_v33 = vpack.c.bf16 %v3176_v53, %v3175_v56  ;;  %v3177_v35 = vld [vmem:[#allocation10 + $0x60] sm:$0xff]  ;;  %v3178_v49 = vld [vmem:[#allocation10 + $0x68] sm:$0xff] }
 0x450   : > { %v9070_v36 = vmul.f32 0.03125, %v2688_v29  ;;  %v2840_v40 = vadd.f32 %v2839_v11, %v2838_v23  ;;  %7133 = vmatmul.mubr.f32.gmra.mrb[106].mxu1 %v7912_v25  ;;  %v7669_v42 = vpack.c.bf16 %v3070_v55, %v3069_v30  ;;  %v7925_v23 = vld [vmem:[%s8574_s29 + $0x140] sm:$0xff]  ;;  %v7926_v29 = vld [vmem:[%s8574_s29 + $0x148] sm:$0xff]  ;;  %v7927_v30 = vld [vmem:[%s8574_s29 + $0x150] sm:$0xff] }
 0x451   : > { %7135 = vmatprep.mubr.f32.mxu1 %v7913_v44  ;;  %v7673_v27 = vpack.c.bf16 %v3072_v21, %v3071_v28  ;;  %v7929_v25 = vld [vmem:[%s8574_s29 + $0x160] sm:$0xff] }
 0x452   : > { %v2844_v48 = vmul.f32 0.03125, %v2840_v40  ;;  %v2848_v51 = vmul.f32 %v9070_v36, %v9070_v36  ;;  %7670 = vmatprep.subr.bf16.mxu0 %v7669_v42  ;;  %v3180_v40 = vld [vmem:[#allocation10 + $0x78] sm:$0xff] }
 0x453   : > { %7672 = vmatpush3.bf16.msra.mxu0 %v7669_v42 }
 0x454   : > { %v2852_v54 = vsub.f32 %v2844_v48, %v2848_v51  ;;  %7136 = vmatmul.mubr.f32.gmra.mrb[108].mxu1 %v7914_v59  ;;  %7674 = vmatprep.subr.bf16.mxu0 %v7673_v27  ;;  %v7930_v51 = vld [vmem:[%s8574_s29 + $0x168] sm:$0xff]  ;;  %v7932_v59 = vld [vmem:[%s8574_s29 + $0x178] sm:$0xff] }
 0x455   : > { %7138 = vmatprep.mubr.f32.mxu1 %v7915_v39  ;;  %v7934_v39 = vld [vmem:[%s8574_s29 + $0x190] sm:$0xff] }
 0x456   : > { %v2856_v2 = vmax.f32 %v2852_v54, 0.0  ;;  %v7931_v54 = vld [vmem:[%s8574_s29 + $0x170] sm:$0xff] }
 0x457   : > { %7676 = vmatpush3.bf16.msra.mxu0 %v7673_v27 }
 0x458   : > { %v2860_v3 = vadd.f32 1e-05, %v2856_v2  ;;  %7139 = vmatmul.mubr.f32.gmra.mrb[110].mxu1 %v7916_v4  ;;  %7686 = vmatprep.subr.bf16.mxu0 %v7685_v61  ;;  %v7937_v2 = vld [vmem:[%s8574_s29 + $0x1a8] sm:$0xff]  ;;  %v7939_v4 = vld [vmem:[%s8574_s29 + $0x1b8] sm:$0xff] }
 0x459   : > { %7181 = vmatprep.mubr.f32.mxu1 %v7917_v5  ;;  %v7941_v5 = vld [vmem:[%s8574_s29 + $0x1c8] sm:$0xff] }
 0x45a   : > { %7867 = vrsqrt.f32 %v2860_v3  ;;  %7150 = vmatmul.mubr.f32.vlgmr.msra.gmra.mrb[112].mxu0 %v7918_v8  ;;  %v7938_v3 = vld [vmem:[%s8574_s29 + $0x1b0] sm:$0xff]  ;;  %v7944_v8 = vld [vmem:[%s8574_s29 + $0x1e0] sm:$0xff] }
 0x45b   : > { %7152 = vmatprep.mubr.f32.mxu0 %v7919_v12  ;;  %7688 = vmatpush3.bf16.msra.mxu0 %v7685_v61  ;;  %v7933_v61 = vld [vmem:[%s8574_s29 + $0x188] sm:$0xff] }
 0x45c   : > { %7690 = vmatprep.subr.bf16.mxu0 %v7689_v41  ;;  %v7945_v12 = vld [vmem:[%s8574_s29 + $0x1e8] sm:$0xff] }
 0x45e   : > { %7153 = vmatmul.mubr.f32.gmra.mrb[114].mxu0 %v7920_v15 }
 0x45f   : > { %7155 = vmatprep.mubr.f32.mxu0 %v7921_v17  ;;  %7692 = vmatpush3.bf16.msra.mxu0 %v7689_v41  ;;  %v7940_v41 = vld [vmem:[%s8574_s29 + $0x1c0] sm:$0xff] }
 0x460   : > { %7694 = vmatprep.subr.bf16.mxu0 %v7693_v14 }
 0x462   : > { %7156 = vmatmul.mubr.f32.gmra.mrb[116].mxu0 %v7922_v38 }
 0x463   : > { %7158 = vmatprep.mubr.f32.mxu0 %v7923_v18  ;;  %7696 = vmatpush3.bf16.msra.mxu0 %v7693_v14  ;;  %v7946_v14 = vld [vmem:[%s8574_s29 + $0x1f0] sm:$0xff] }
 0x464   : > { %v7868_v26 = vpop.eup %7867  ;;  %7698 = vmatprep.subr.bf16.mxu0 %v7697_v20 }
 0x465   : > { %v2868_v45 = vmul.f32 %v7868_v26, %v8963_v47 }
 0x466   : > { %7159 = vmatmul.mubr.f32.gmra.mrb[118].mxu0 %v7924_v24 }
 0x467   : > { %v2872_v16 = vmul.f32 %v2868_v45, %v9070_v36  ;;  %v2892_v32 = vrot.slane %v2868_v45, %v8787_v50  ;;  %7161 = vmatprep.mubr.f32.mxu0 %v7925_v23  ;;  %7700 = vmatpush3.bf16.msra.mxu0 %v7697_v20  ;;  %v3179_v36 = vld [vmem:[#allocation10 + $0x70] sm:$0xff] }
 0x468   : > { %7702 = vmatprep.subr.bf16.mxu0 %v7701_v52  ;;  %v7713_v48 = vpack.c.bf16 %v3180_v40, %v3179_v36 }
 0x469   : > { %v2876_v34 = vsub.f32 %v8975_v63, %v2872_v16  ;;  %v2941_v31 = vmul.f32 %v2892_v32, %v9012_v60  ;;  %v2942_v47 = vmul.f32 %v9007_v57, %v2892_v32  ;;  %v2943_v0 = vmul.f32 %v2892_v32, %v9023_v13  ;;  %v7928_v13 = vld [vmem:[%s8574_s29 + $0x158] sm:$0xff]  ;;  %s9291_s29 = scalar_lea.vmem [#allocation14], %s8570_s16 }
 0x46a   : > { %7162 = vmatmul.mubr.f32.gmra.mrb[120].mxu0 %v7926_v29  ;;  %v2944_v11 = vmul.f32 %v9020_v10, %v2892_v32  ;;  %v7709_v63 = vpack.c.bf16 %v3178_v49, %v3177_v35  ;;  %5675 = vst [vmem:[%s9291_s29 + $0x20] sm:$0xff] %v8244_v7  ;;  %5676 = vst [vmem:[%s9291_s29 + $0x28] sm:$0xff] %v8244_v7  ;;  %s5863_s30 = sshll.u32 %s9291_s29, 4  ;;  %s9555_s30 = int_to_ptr.vmem [resolvable:$true] %s5863_s30 }
 0x46b   : > { %7164 = vmatprep.mubr.f32.mxu0 %v7927_v30  ;;  %v2972_v55 = vrot.slane %v2876_v34, %v8787_v50  ;;  %7704 = vmatpush3.bf16.msra.mxu0 %v7701_v52  ;;  %5677 = vst [vmem:[%s9291_s29 + $0x30] sm:$0xff] %v8244_v7  ;;  %5678 = vst [vmem:[%s9291_s29 + $0x38] sm:$0xff] %v8244_v7  ;;  %s8120_s19 = scalar_lea.vmem %s9555_s30, 8192  ;;  %p8127_p3 = scmp.lt.s32.totalorder %s9555_s30, %s8125_s0 }
 0x46c   : > { %7706 = vmatprep.subr.bf16.mxu0 %v7705_v33  ;;  %5679 = vst [vmem:[%s9291_s29 + $0x40] sm:$0xff] %v8244_v7  ;;  %5680 = vst [vmem:[%s9291_s29 + $0x48] sm:$0xff] %v8244_v7  ;;  %p8121_p0 = scmp.ne.s32.totalorder %s9555_s30, %s8120_s19  ;;  %p8128_p5 = scmp.lt.s32.totalorder %s8126_s8, %s8120_s19 }
 0x46d   : > { %v3021_v60 = vadd.f32 %v2972_v55, %v2941_v31  ;;  %v3022_v28 = vadd.f32 %v2972_v55, %v2942_v47  ;;  %v3023_v57 = vadd.f32 %v2972_v55, %v2943_v0  ;;  %v3024_v21 = vadd.f32 %v2972_v55, %v2944_v11  ;;  %5681 = vst [vmem:[%s9291_s29 + $0x50] sm:$0xff] %v8244_v7 }
 0x46e   : > { %7165 = vmatmul.mubr.f32.gmra.mrb[122].mxu0 %v7928_v13  ;;  %5682 = vst [vmem:[%s9291_s29 + $0x58] sm:$0xff] %v8244_v7  ;;  %5683 = vst [vmem:[%s9291_s29 + $0x60] sm:$0xff] %v8244_v7  ;;  %p8122_p4 = pnand %p8121_p0, %p8472_p10  ;;  %p8129_p9 = por %p8128_p5, %p8127_p3 }
 0x46f   : > { %7167 = vmatprep.mubr.f32.mxu0 %v7929_v25  ;;  %v3085_v10 = vmax.f32 %v3021_v60, 0.0  ;;  %v3086_v42 = vmax.f32 %v3022_v28, 0.0  ;;  %v3087_v44 = vmax.f32 %v3023_v57, 0.0  ;;  %v3088_v27 = vmax.f32 %v3024_v21, 0.0  ;;  %7708 = vmatpush3.bf16.msra.mxu0 %v7705_v33  ;;  %5684 = vst [vmem:[%s9291_s29 + $0x68] sm:$0xff] %v8244_v7  ;;  %5685 = vst [vmem:[%s9291_s29 + $0x70] sm:$0xff] %v8244_v7 }
 0x470   : > { %7710 = vmatprep.subr.bf16.mxu0 %v7709_v63  ;;  %5686 = vst [vmem:[%s9291_s29 + $0x78] sm:$0xff] %v8244_v7  ;;  %5691 = vst [vmem:[%s9291_s29 + $0xa0] sm:$0xff] %v8244_v7  ;;  %p8123_p6 = pneg %p8122_p4 }
 0x471   : > { %v7677_v19 = vpack.c.bf16 %v3086_v42, %v3085_v10  ;;  %v7681_v46 = vpack.c.bf16 %v3088_v27, %v3087_v44  ;;  %5692 = vst [vmem:[%s9291_s29 + $0xa8] sm:$0xff] %v8244_v7  ;;  %5693 = vst [vmem:[%s9291_s29 + $0xb0] sm:$0xff] %v8244_v7 }
 0x472   : > { %7168 = vmatmul.mubr.f32.gmra.mrb[124].mxu0 %v7930_v51  ;;  %5694 = vst [vmem:[%s9291_s29 + $0xb8] sm:$0xff] %v8244_v7  ;;  %5695 = vst [vmem:[%s9291_s29 + $0xc0] sm:$0xff] %v8244_v7  ;;  %p8130_p8 = pnand %p8129_p9, %p8123_p6 }
 0x473   : > { %7678 = vmatprep.subr.bf16.mxu1 %v7677_v19  ;;  %7170 = vmatprep.mubr.f32.mxu0 %v7931_v54  ;;  %5696 = vst [vmem:[%s9291_s29 + $0xc8] sm:$0xff] %v8244_v7  ;;  %5697 = vst [vmem:[%s9291_s29 + $0xd0] sm:$0xff] %v8244_v7 }
 0x474   : > { %7680 = vmatpush3.bf16.msra.mxu1 %v7677_v19  ;;  %7712 = vmatpush3.bf16.msra.mxu0 %v7709_v63  ;;  %5698 = vst [vmem:[%s9291_s29 + $0xd8] sm:$0xff] %v8244_v7  ;;  %5699 = vst [vmem:[%s9291_s29 + $0xe0] sm:$0xff] %v8244_v7 }
 0x475   : > { %7682 = vmatprep.subr.bf16.mxu1 %v7681_v46  ;;  %7714 = vmatprep.subr.bf16.mxu0 %v7713_v48  ;;  %5700 = vst [vmem:[%s9291_s29 + $0xe8] sm:$0xff] %v8244_v7  ;;  %5701 = vst [vmem:[%s9291_s29 + $0xf0] sm:$0xff] %v8244_v7 }
 0x476   : > { %7171 = vmatmul.mubr.f32.gmra.mrb[126].mxu0 %v7932_v59  ;;  %5702 = vst [vmem:[%s9291_s29 + $0xf8] sm:$0xff] %v8244_v7  ;;  %5707 = vst [vmem:[%s9291_s29 + $0x120] sm:$0xff] %v8244_v7 }
 0x477   : > { %5708 = vst [vmem:[%s9291_s29 + $0x128] sm:$0xff] %v8244_v7  ;;  %5709 = vst [vmem:[%s9291_s29 + $0x130] sm:$0xff] %v8244_v7 }
 0x478   : > { %7684 = vmatpush3.bf16.msra.mxu1 %v7681_v46  ;;  %7716 = vmatpush3.bf16.msra.mxu0 %v7713_v48  ;;  %5710 = vst [vmem:[%s9291_s29 + $0x138] sm:$0xff] %v8244_v7  ;;  %5711 = vst [vmem:[%s9291_s29 + $0x140] sm:$0xff] %v8244_v7 }
 0x479   : > { %5712 = vst [vmem:[%s9291_s29 + $0x148] sm:$0xff] %v8244_v7  ;;  %5713 = vst [vmem:[%s9291_s29 + $0x150] sm:$0xff] %v8244_v7 }
 0x47a   : > { %5714 = vst [vmem:[%s9291_s29 + $0x158] sm:$0xff] %v8244_v7  ;;  %5715 = vst [vmem:[%s9291_s29 + $0x160] sm:$0xff] %v8244_v7 }
 0x47b   : > { %7182 = vmatmul.mubr.f32.vlgmr.msra.gmra.mrb[112].mxu1 %v7933_v61  ;;  %5716 = vst [vmem:[%s9291_s29 + $0x168] sm:$0xff] %v8244_v7  ;;  %5717 = vst [vmem:[%s9291_s29 + $0x170] sm:$0xff] %v8244_v7 }
 0x47c   : > { %7184 = vmatprep.mubr.f32.mxu1 %v7934_v39  ;;  %5718 = vst [vmem:[%s9291_s29 + $0x178] sm:$0xff] %v8244_v7  ;;  %5723 = vst [vmem:[%s9291_s29 + $0x1a0] sm:$0xff] %v8244_v7 }
 0x47d   : > { %5724 = vst [vmem:[%s9291_s29 + $0x1a8] sm:$0xff] %v8244_v7  ;;  %5725 = vst [vmem:[%s9291_s29 + $0x1b0] sm:$0xff] %v8244_v7 }
 0x47e   : > { %5726 = vst [vmem:[%s9291_s29 + $0x1b8] sm:$0xff] %v8244_v7  ;;  %5727 = vst [vmem:[%s9291_s29 + $0x1c0] sm:$0xff] %v8244_v7 }
 0x47f   : > { %7185 = vmatmul.mubr.f32.gmra.mrb[114].mxu1 %v7935_v1  ;;  %5728 = vst [vmem:[%s9291_s29 + $0x1c8] sm:$0xff] %v8244_v7  ;;  %5729 = vst [vmem:[%s9291_s29 + $0x1d0] sm:$0xff] %v8244_v7 }
 0x480   : > { %7187 = vmatprep.mubr.f32.mxu1 %v7936_v37  ;;  %5730 = vst [vmem:[%s9291_s29 + $0x1d8] sm:$0xff] %v8244_v7  ;;  %5731 = vst [vmem:[%s9291_s29 + $0x1e0] sm:$0xff] %v8244_v7 }
 0x481   : > { %5732 = vst [vmem:[%s9291_s29 + $0x1e8] sm:$0xff] %v8244_v7  ;;  %5733 = vst [vmem:[%s9291_s29 + $0x1f0] sm:$0xff] %v8244_v7 }
 0x482   : > { %5734 = vst [vmem:[%s9291_s29 + $0x1f8] sm:$0xff] %v8244_v7 }
 0x483   : > { %7188 = vmatmul.mubr.f32.gmra.mrb[116].mxu1 %v7937_v2 }
 0x484   : > { %7190 = vmatprep.mubr.f32.mxu1 %v7938_v3 }
 0x487   : > { %7191 = vmatmul.mubr.f32.gmra.mrb[118].mxu1 %v7939_v4 }
 0x488   : > { %7193 = vmatprep.mubr.f32.mxu1 %v7940_v41 }
 0x48b   : > { %7194 = vmatmul.mubr.f32.gmra.mrb[120].mxu1 %v7941_v5 }
 0x48c   : > { %7196 = vmatprep.mubr.f32.mxu1 %v7942_v6 }
 0x48f   : > { %7197 = vmatmul.mubr.f32.gmra.mrb[122].mxu1 %v7943_v9 }
 0x490   : > { %7199 = vmatprep.mubr.f32.mxu1 %v7944_v8 }
 0x493   : > { %7200 = vmatmul.mubr.f32.gmra.mrb[124].mxu1 %v7945_v12 }
 0x494   : > { %7202 = vmatprep.mubr.f32.mxu1 %v7946_v14 }
 0x497   : > { %7203 = vmatmul.mubr.f32.gmra.mrb[126].mxu1 %v7947_v62 }
 0x4eb   : > { %v7087_v43 = vpop.f32.mrb[96].mxu0 }
 0x4ec   : > { %v3267_v15 = vpop.f32.mrb[97].mxu0 }
 0x4ed   : > { %7237 = vmatprep.mubr.f32.mxu0 %v3267_v15 }
 0x4ee   : > { %7238 = vmatmul.mubr.f32.vlgmr.msra.gmra.mrb[128].mxu0 %v7087_v43 }
 0x4ef   : > { %v7090_v17 = vpop.f32.mrb[98].mxu0 }
 0x4f0   : > { %v3277_v20 = vpop.f32.mrb[99].mxu0 }
 0x4f1   : > { %7240 = vmatprep.mubr.f32.mxu0 %v3277_v20  ;;  %v3182_v20 = vld [vmem:[#allocation11 + $0x8] sm:$0xff] }
 0x4f2   : > { %7241 = vmatmul.mubr.f32.gmra.mrb[130].mxu0 %v7090_v17  ;;  %v3181_v17 = vld [vmem:[#allocation11] sm:$0xff] }
 0x4f3   : > { %v7093_v22 = vpop.f32.mrb[100].mxu0 }
 0x4f4   : > { %v3287_v58 = vpop.f32.mrb[101].mxu0 }
 0x4f5   : > { %7243 = vmatprep.mubr.f32.mxu0 %v3287_v58  ;;  %v3183_v58 = vld [vmem:[#allocation11 + $0x10] sm:$0xff] }
 0x4f6   : > { %7244 = vmatmul.mubr.f32.gmra.mrb[132].mxu0 %v7093_v22  ;;  %v7717_v22 = vpack.c.bf16 %v3182_v20, %v3181_v17 }
 0x4f7   : > { %v7096_v38 = vpop.f32.mrb[102].mxu0 }
 0x4f8   : > { %v3297_v18 = vpop.f32.mrb[103].mxu0  ;;  %7718 = vmatprep.subr.bf16.mxu1 %v7717_v22 }
 0x4f9   : > { %7246 = vmatprep.mubr.f32.mxu0 %v3297_v18  ;;  %7720 = vmatpush3.bf16.msra.mxu1 %v7717_v22 }
 0x4fa   : > { %7247 = vmatmul.mubr.f32.gmra.mrb[134].mxu0 %v7096_v38  ;;  %v3184_v38 = vld [vmem:[#allocation11 + $0x18] sm:$0xff] }
 0x4fb   : > { %v7099_v26 = vpop.f32.mrb[104].mxu0  ;;  %v7721_v18 = vpack.c.bf16 %v3184_v38, %v3183_v58 }
 0x4fc   : > { %v3307_v52 = vpop.f32.mrb[105].mxu0 }
 0x4fd   : > { %7249 = vmatprep.mubr.f32.mxu0 %v3307_v52  ;;  %7722 = vmatprep.subr.bf16.mxu1 %v7721_v18  ;;  %v3186_v52 = vld [vmem:[#allocation11 + $0x28] sm:$0xff] }
 0x4fe   : > { %7250 = vmatmul.mubr.f32.gmra.mrb[136].mxu0 %v7099_v26  ;;  %7724 = vmatpush3.bf16.msra.mxu1 %v7721_v18  ;;  %v3185_v26 = vld [vmem:[#allocation11 + $0x20] sm:$0xff] }
 0x4ff   : > { %v7102_v45 = vpop.f32.mrb[106].mxu0 }
 0x500   : > { %v3317_v56 = vpop.f32.mrb[107].mxu0 }
 0x501   : > { %7252 = vmatprep.mubr.f32.mxu0 %v3317_v56  ;;  %v3187_v56 = vld [vmem:[#allocation11 + $0x30] sm:$0xff] }
 0x502   : > { %7253 = vmatmul.mubr.f32.gmra.mrb[138].mxu0 %v7102_v45  ;;  %v7725_v45 = vpack.c.bf16 %v3186_v52, %v3185_v26 }
 0x503   : > { %v7105_v53 = vpop.f32.mrb[108].mxu0 }
 0x504   : > { %v3327_v24 = vpop.f32.mrb[109].mxu0  ;;  %7726 = vmatprep.subr.bf16.mxu1 %v7725_v45 }
 0x505   : > { %7255 = vmatprep.mubr.f32.mxu0 %v3327_v24  ;;  %7728 = vmatpush3.bf16.msra.mxu1 %v7725_v45 }
 0x506   : > { %7256 = vmatmul.mubr.f32.gmra.mrb[140].mxu0 %v7105_v53  ;;  %v3188_v53 = vld [vmem:[#allocation11 + $0x38] sm:$0xff] }
 0x507   : > { %v7108_v16 = vpop.f32.mrb[110].mxu0  ;;  %v7729_v24 = vpack.c.bf16 %v3188_v53, %v3187_v56 }
 0x508   : > { %v3337_v32 = vpop.f32.mrb[111].mxu0 }
 0x509   : > { %7258 = vmatprep.mubr.f32.mxu0 %v3337_v32  ;;  %7730 = vmatprep.subr.bf16.mxu1 %v7729_v24  ;;  %v3190_v32 = vld [vmem:[#allocation11 + $0x48] sm:$0xff] }
 0x50a   : > { %7259 = vmatmul.mubr.f32.gmra.mrb[142].mxu0 %v7108_v16  ;;  %7732 = vmatpush3.bf16.msra.mxu1 %v7729_v24  ;;  %v3189_v16 = vld [vmem:[#allocation11 + $0x40] sm:$0xff] }
 0x50f   : > { %v7119_v23 = vpop.f32.mrb[96].mxu1 }
 0x510   : > { %v3412_v33 = vpop.f32.mrb[97].mxu1 }
 0x511   : > { %7261 = vmatprep.mubr.f32.mxu0 %v3412_v33  ;;  %v3191_v33 = vld [vmem:[#allocation11 + $0x50] sm:$0xff] }
 0x512   : > { %7262 = vmatmul.mubr.f32.gmra.mrb[144].mxu0 %v7119_v23  ;;  %v7733_v23 = vpack.c.bf16 %v3190_v32, %v3189_v16 }
 0x513   : > { %v7122_v34 = vpop.f32.mrb[98].mxu1 }
 0x514   : > { %v3422_v31 = vpop.f32.mrb[99].mxu1  ;;  %7734 = vmatprep.subr.bf16.mxu1 %v7733_v23 }
 0x515   : > { %7264 = vmatprep.mubr.f32.mxu0 %v3422_v31  ;;  %7736 = vmatpush3.bf16.msra.mxu1 %v7733_v23 }
 0x516   : > { %7265 = vmatmul.mubr.f32.gmra.mrb[146].mxu0 %v7122_v34  ;;  %v3192_v34 = vld [vmem:[#allocation11 + $0x58] sm:$0xff] }
 0x517   : > { %v7125_v47 = vpop.f32.mrb[100].mxu1  ;;  %v7737_v31 = vpack.c.bf16 %v3192_v34, %v3191_v33 }
 0x518   : > { %v3432_v0 = vpop.f32.mrb[101].mxu1 }
 0x519   : > { %7267 = vmatprep.mubr.f32.mxu0 %v3432_v0  ;;  %7738 = vmatprep.subr.bf16.mxu1 %v7737_v31  ;;  %v3194_v0 = vld [vmem:[#allocation11 + $0x68] sm:$0xff] }
 0x51a   : > { %7268 = vmatmul.mubr.f32.gmra.mrb[148].mxu0 %v7125_v47  ;;  %7740 = vmatpush3.bf16.msra.mxu1 %v7737_v31  ;;  %v3193_v47 = vld [vmem:[#allocation11 + $0x60] sm:$0xff] }
 0x51b   : > { %v7128_v35 = vpop.f32.mrb[102].mxu1 }
 0x51c   : > { %v3442_v49 = vpop.f32.mrb[103].mxu1 }
 0x51d   : > { %7270 = vmatprep.mubr.f32.mxu0 %v3442_v49  ;;  %v3195_v49 = vld [vmem:[#allocation11 + $0x70] sm:$0xff] }
 0x51e   : > { %7271 = vmatmul.mubr.f32.gmra.mrb[150].mxu0 %v7128_v35  ;;  %v7741_v35 = vpack.c.bf16 %v3194_v0, %v3193_v47 }
 0x51f   : > { %v7131_v29 = vpop.f32.mrb[104].mxu1 }
 0x520   : > { %v3452_v11 = vpop.f32.mrb[105].mxu1  ;;  %7742 = vmatprep.subr.bf16.mxu1 %v7741_v35 }
 0x521   : > { %7273 = vmatprep.mubr.f32.mxu0 %v3452_v11  ;;  %7744 = vmatpush3.bf16.msra.mxu1 %v7741_v35 }
 0x522   : > { %7274 = vmatmul.mubr.f32.gmra.mrb[152].mxu0 %v7131_v29  ;;  %v3196_v29 = vld [vmem:[#allocation11 + $0x78] sm:$0xff] }
 0x523   : > { %v7134_v30 = vpop.f32.mrb[106].mxu1  ;;  %v7745_v11 = vpack.c.bf16 %v3196_v29, %v3195_v49 }
 0x524   : > { %v3462_v55 = vpop.f32.mrb[107].mxu1 }
 0x525   : > { %7276 = vmatprep.mubr.f32.mxu0 %v3462_v55  ;;  %7746 = vmatprep.subr.bf16.mxu1 %v7745_v11 }
 0x526   : > { %7277 = vmatmul.mubr.f32.gmra.mrb[154].mxu0 %v7134_v30  ;;  %7748 = vmatpush3.bf16.msra.mxu1 %v7745_v11 }
 0x527   : > { %v7137_v63 = vpop.f32.mrb[108].mxu1 }
 0x528   : > { %v3472_v60 = vpop.f32.mrb[109].mxu1 }
 0x529   : > { %7279 = vmatprep.mubr.f32.mxu0 %v3472_v60 }
 0x52a   : > { %7280 = vmatmul.mubr.f32.gmra.mrb[156].mxu0 %v7137_v63 }
 0x52b   : > { %v7140_v28 = vpop.f32.mrb[110].mxu1 }
 0x52c   : > { %v3482_v57 = vpop.f32.mrb[111].mxu1 }
 0x52d   : > { %7282 = vmatprep.mubr.f32.mxu0 %v3482_v57  ;;  %v7151_v21 = vpop.f32.mrb[112].mxu0 }
 0x52e   : > { %7283 = vmatmul.mubr.f32.gmra.mrb[158].mxu0 %v7140_v28  ;;  %v3557_v13 = vpop.f32.mrb[113].mxu0 }
 0x52f   : > { %7285 = vmatprep.mubr.f32.mxu0 %v3557_v13 }
 0x531   : > { %v7154_v36 = vpop.f32.mrb[114].mxu0 }
 0x532   : > { %7286 = vmatmul.mubr.f32.gmra.mrb[160].mxu0 %v7151_v21  ;;  %v3567_v40 = vpop.f32.mrb[115].mxu0 }
 0x533   : > { %7288 = vmatprep.mubr.f32.mxu0 %v3567_v40 }
 0x535   : > { %v7157_v25 = vpop.f32.mrb[116].mxu0 }
 0x536   : > { %7289 = vmatmul.mubr.f32.gmra.mrb[162].mxu0 %v7154_v36  ;;  %v3577_v10 = vpop.f32.mrb[117].mxu0 }
 0x537   : > { %7291 = vmatprep.mubr.f32.mxu0 %v3577_v10 }
 0x539   : > { %v7160_v42 = vpop.f32.mrb[118].mxu0 }
 0x53a   : > { %7292 = vmatmul.mubr.f32.gmra.mrb[164].mxu0 %v7157_v25  ;;  %v3587_v44 = vpop.f32.mrb[119].mxu0 }
 0x53b   : > { %7294 = vmatprep.mubr.f32.mxu0 %v3587_v44 }
 0x53d   : > { %v7163_v27 = vpop.f32.mrb[120].mxu0 }
 0x53e   : > { %7295 = vmatmul.mubr.f32.gmra.mrb[166].mxu0 %v7160_v42  ;;  %v3597_v19 = vpop.f32.mrb[121].mxu0 }
 0x53f   : > { %7297 = vmatprep.mubr.f32.mxu0 %v3597_v19 }
 0x541   : > { %v7166_v46 = vpop.f32.mrb[122].mxu0 }
 0x542   : > { %7298 = vmatmul.mubr.f32.gmra.mrb[168].mxu0 %v7163_v27  ;;  %v3607_v48 = vpop.f32.mrb[123].mxu0 }
 0x543   : > { %7300 = vmatprep.mubr.f32.mxu0 %v3607_v48 }
 0x545   : > { %v7169_v51 = vpop.f32.mrb[124].mxu0 }
 0x546   : > { %7301 = vmatmul.mubr.f32.gmra.mrb[170].mxu0 %v7166_v46  ;;  %v3617_v54 = vpop.f32.mrb[125].mxu0 }
 0x547   : > { %7303 = vmatprep.mubr.f32.mxu0 %v3617_v54 }
 0x549   : > { %v7172_v59 = vpop.f32.mrb[126].mxu0 }
 0x54a   : > { %7304 = vmatmul.mubr.f32.gmra.mrb[172].mxu0 %v7169_v51  ;;  %v3627_v61 = vpop.f32.mrb[127].mxu0 }
 0x54b   : > { %7306 = vmatprep.mubr.f32.mxu0 %v3627_v61 }
 0x54e   : > { %7307 = vmatmul.mubr.f32.gmra.mrb[174].mxu0 %v7172_v59  ;;  %v7183_v39 = vpop.f32.mrb[112].mxu1 }
 0x54f   : > { %v3702_v1 = vpop.f32.mrb[113].mxu1 }
 0x550   : > { %7309 = vmatprep.mubr.f32.mxu0 %v3702_v1 }
 0x552   : > { %7310 = vmatmul.mubr.f32.gmra.mrb[176].mxu0 %v7183_v39  ;;  %v7186_v37 = vpop.f32.mrb[114].mxu1 }
 0x553   : > { %v3712_v2 = vpop.f32.mrb[115].mxu1 }
 0x554   : > { %7312 = vmatprep.mubr.f32.mxu0 %v3712_v2 }
 0x556   : > { %7313 = vmatmul.mubr.f32.gmra.mrb[178].mxu0 %v7186_v37  ;;  %v7189_v3 = vpop.f32.mrb[116].mxu1 }
 0x557   : > { %v3722_v4 = vpop.f32.mrb[117].mxu1 }
 0x558   : > { %7315 = vmatprep.mubr.f32.mxu0 %v3722_v4 }
 0x55a   : > { %7316 = vmatmul.mubr.f32.gmra.mrb[180].mxu0 %v7189_v3  ;;  %v7192_v41 = vpop.f32.mrb[118].mxu1 }
 0x55b   : > { %v3732_v5 = vpop.f32.mrb[119].mxu1 }
 0x55c   : > { %7318 = vmatprep.mubr.f32.mxu0 %v3732_v5 }
 0x55e   : > { %7319 = vmatmul.mubr.f32.gmra.mrb[182].mxu0 %v7192_v41  ;;  %v7195_v6 = vpop.f32.mrb[120].mxu1 }
 0x55f   : > { %v3742_v9 = vpop.f32.mrb[121].mxu1 }
 0x560   : > { %7321 = vmatprep.mubr.f32.mxu0 %v3742_v9 }
 0x562   : > { %7322 = vmatmul.mubr.f32.gmra.mrb[184].mxu0 %v7195_v6  ;;  %v7198_v8 = vpop.f32.mrb[122].mxu1 }
 0x563   : > { %v3752_v12 = vpop.f32.mrb[123].mxu1 }
 0x564   : > { %7324 = vmatprep.mubr.f32.mxu0 %v3752_v12 }
 0x566   : > { %7325 = vmatmul.mubr.f32.gmra.mrb[186].mxu0 %v7198_v8  ;;  %v7201_v14 = vpop.f32.mrb[124].mxu1 }
 0x567   : > { %v3762_v62 = vpop.f32.mrb[125].mxu1 }
 0x568   : > { %7327 = vmatprep.mubr.f32.mxu0 %v3762_v62 }
 0x56a   : > { %7328 = vmatmul.mubr.f32.gmra.mrb[188].mxu0 %v7201_v14  ;;  %v7204_v43 = vpop.f32.mrb[126].mxu1 }
 0x56b   : > { %v3772_v15 = vpop.f32.mrb[127].mxu1 }
 0x56c   : > { %7330 = vmatprep.mubr.f32.mxu0 %v3772_v15 }
 0x56e   : > { %7331 = vmatmul.mubr.f32.gmra.mrb[190].mxu0 %v7204_v43 }
 0x5c1   : > { %v9119_v30 = vpop.f32.mrb[128].mxu0 }
 0x5c2   : > { %v4255_v55 = vmul.f32 %v9119_v30, %v9119_v30  ;;  %v9123_v63 = vpop.f32.mrb[129].mxu0 }
 0x5c3   : > { %v4166_v60 = vadd.f32 %v9119_v30, %v9123_v63  ;;  %v4254_v28 = vmul.f32 %v9123_v63, %v9123_v63 }
 0x5c5   : > { %v4318_v57 = vadd.f32 %v4255_v55, %v4254_v28  ;;  %v9129_v21 = vpop.f32.mrb[130].mxu0 }
 0x5c6   : > { %v9131_v13 = vpop.f32.mrb[131].mxu0  ;;  %v4257_v25 = vmul.f32 %v9129_v21, %v9129_v21 }
 0x5c7   : > { %v4167_v36 = vadd.f32 %v4166_v60, %v9131_v13  ;;  %v4256_v40 = vmul.f32 %v9131_v13, %v9131_v13 }
 0x5c9   : > { %v4319_v10 = vadd.f32 %v4318_v57, %v4256_v40  ;;  %v7245_v42 = vpop.f32.mrb[132].mxu0  ;;  %v4168_v44 = vadd.f32 %v9129_v21, %v4167_v36 }
 0x5ca   : > { %v3867_v27 = vpop.f32.mrb[133].mxu0  ;;  %v4259_v51 = vmul.f32 %v7245_v42, %v7245_v42 }
 0x5cb   : > { %v4169_v19 = vadd.f32 %v4168_v44, %v3867_v27  ;;  %v4258_v46 = vmul.f32 %v3867_v27, %v3867_v27  ;;  %v4320_v48 = vadd.f32 %v4319_v10, %v4257_v25 }
 0x5cd   : > { %v4321_v54 = vadd.f32 %v4320_v48, %v4258_v46  ;;  %v7248_v59 = vpop.f32.mrb[134].mxu0  ;;  %v4170_v61 = vadd.f32 %v7245_v42, %v4169_v19 }
 0x5ce   : > { %v3877_v39 = vpop.f32.mrb[135].mxu0  ;;  %v4261_v3 = vmul.f32 %v7248_v59, %v7248_v59 }
 0x5cf   : > { %v4171_v1 = vadd.f32 %v4170_v61, %v3877_v39  ;;  %v4260_v37 = vmul.f32 %v3877_v39, %v3877_v39  ;;  %v4322_v2 = vadd.f32 %v4321_v54, %v4259_v51 }
 0x5d1   : > { %v4323_v4 = vadd.f32 %v4322_v2, %v4260_v37  ;;  %v7251_v41 = vpop.f32.mrb[136].mxu0  ;;  %v4172_v5 = vadd.f32 %v7248_v59, %v4171_v1 }
 0x5d2   : > { %v3887_v6 = vpop.f32.mrb[137].mxu0  ;;  %v4263_v14 = vmul.f32 %v7251_v41, %v7251_v41 }
 0x5d3   : > { %v4173_v9 = vadd.f32 %v4172_v5, %v3887_v6  ;;  %v4262_v8 = vmul.f32 %v3887_v6, %v3887_v6  ;;  %v4324_v12 = vadd.f32 %v4323_v4, %v4261_v3 }
 0x5d5   : > { %v4325_v62 = vadd.f32 %v4324_v12, %v4262_v8  ;;  %v7254_v43 = vpop.f32.mrb[138].mxu0  ;;  %v4174_v15 = vadd.f32 %v7251_v41, %v4173_v9 }
 0x5d6   : > { %v3897_v17 = vpop.f32.mrb[139].mxu0  ;;  %v4265_v38 = vmul.f32 %v7254_v43, %v7254_v43 }
 0x5d7   : > { %v4175_v20 = vadd.f32 %v4174_v15, %v3897_v17  ;;  %v4264_v22 = vmul.f32 %v3897_v17, %v3897_v17  ;;  %v4326_v58 = vadd.f32 %v4325_v62, %v4263_v14 }
 0x5d9   : > { %v4327_v18 = vadd.f32 %v4326_v58, %v4264_v22  ;;  %v7257_v26 = vpop.f32.mrb[140].mxu0  ;;  %v4176_v52 = vadd.f32 %v7254_v43, %v4175_v20 }
 0x5da   : > { %v3907_v45 = vpop.f32.mrb[141].mxu0  ;;  %v4267_v16 = vmul.f32 %v7257_v26, %v7257_v26 }
 0x5db   : > { %v4177_v56 = vadd.f32 %v4176_v52, %v3907_v45  ;;  %v4266_v53 = vmul.f32 %v3907_v45, %v3907_v45  ;;  %v4328_v24 = vadd.f32 %v4327_v18, %v4265_v38 }
 0x5dd   : > { %v4329_v32 = vadd.f32 %v4328_v24, %v4266_v53  ;;  %v7260_v23 = vpop.f32.mrb[142].mxu0  ;;  %v4178_v33 = vadd.f32 %v7257_v26, %v4177_v56 }
 0x5de   : > { %v3917_v34 = vpop.f32.mrb[143].mxu0  ;;  %v4269_v35 = vmul.f32 %v7260_v23, %v7260_v23 }
 0x5df   : > { %v4179_v31 = vadd.f32 %v4178_v33, %v3917_v34  ;;  %v4268_v47 = vmul.f32 %v3917_v34, %v3917_v34  ;;  %v4330_v0 = vadd.f32 %v4329_v32, %v4267_v16 }
 0x5e1   : > { %v4180_v49 = vadd.f32 %v7260_v23, %v4179_v31  ;;  %v4331_v29 = vadd.f32 %v4330_v0, %v4268_v47 }
 0x5e3   : > { %v4181_v11 = vrot.slane %v4180_v49, 4  ;;  %v4332_v55 = vadd.f32 %v4331_v29, %v4269_v35 }
 0x5e5   : > { %v4182_v60 = vadd.f32 %v4181_v11, %v4180_v49  ;;  %v4333_v28 = vrot.slane %v4332_v55, 4  ;;  %v9139_v57 = vpop.f32.mrb[144].mxu0 }
 0x5e6   : > { %v4271_v36 = vmul.f32 %v9139_v57, %v9139_v57  ;;  %v9143_v40 = vpop.f32.mrb[145].mxu0 }
 0x5e7   : > { %v4183_v25 = vrot.slane %v4182_v60, 2  ;;  %v4334_v10 = vadd.f32 %v4333_v28, %v4332_v55  ;;  %v4187_v42 = vadd.f32 %v9139_v57, %v9143_v40  ;;  %v4270_v44 = vmul.f32 %v9143_v40, %v9143_v40 }
 0x5e9   : > { %v4184_v27 = vadd.f32 %v4183_v25, %v4182_v60  ;;  %v4335_v19 = vrot.slane %v4334_v10, 2  ;;  %v4339_v46 = vadd.f32 %v4271_v36, %v4270_v44  ;;  %v9149_v48 = vpop.f32.mrb[146].mxu0 }
 0x5ea   : > { %v9151_v51 = vpop.f32.mrb[147].mxu0  ;;  %v4273_v41 = vmul.f32 %v9149_v48, %v9149_v48 }
 0x5eb   : > { %v4185_v54 = vrot.slane %v4184_v27, 1  ;;  %v4336_v59 = vadd.f32 %v4335_v19, %v4334_v10  ;;  %v4188_v61 = vadd.f32 %v4187_v42, %v9151_v51  ;;  %v4272_v39 = vmul.f32 %v9151_v51, %v9151_v51 }
 0x5ed   : > { %v4186_v1 = vadd.f32 %v4185_v54, %v4184_v27  ;;  %v4337_v37 = vrot.slane %v4336_v59, 1  ;;  %v4340_v2 = vadd.f32 %v4339_v46, %v4272_v39  ;;  %v7269_v3 = vpop.f32.mrb[148].mxu0  ;;  %v4189_v4 = vadd.f32 %v9149_v48, %v4188_v61  ;;  %v9162_v46 = vld [vmem:[%s9643_s6 + $0x4] sm:$0x1] }
 0x5ee   : > { %v3947_v5 = vpop.f32.mrb[149].mxu0  ;;  %v4275_v20 = vmul.f32 %v7269_v3, %v7269_v3 }
 0x5ef   : > { %v4250_v6 = vmul.f32 0.03125, %v4186_v1  ;;  %v4338_v9 = vadd.f32 %v4337_v37, %v4336_v59  ;;  %v4190_v8 = vadd.f32 %v4189_v4, %v3947_v5  ;;  %v4274_v12 = vmul.f32 %v3947_v5, %v3947_v5  ;;  %v9168_v5 = vld [vmem:[%s9643_s6 + $0x5] sm:$0x1] }
 0x5f0   : > { %v4341_v14 = vadd.f32 %v4340_v2, %v4273_v41 }
 0x5f1   : > { %v4402_v62 = vmul.f32 0.03125, %v4338_v9  ;;  %v4406_v43 = vmul.f32 %v4250_v6, %v4250_v6  ;;  %v7272_v15 = vpop.f32.mrb[150].mxu0  ;;  %v4191_v17 = vadd.f32 %v7269_v3, %v4190_v8 }
 0x5f2   : > { %v4342_v22 = vadd.f32 %v4341_v14, %v4274_v12  ;;  %v3957_v58 = vpop.f32.mrb[151].mxu0  ;;  %v4277_v24 = vmul.f32 %v7272_v15, %v7272_v15 }
 0x5f3   : > { %v4410_v38 = vsub.f32 %v4402_v62, %v4406_v43  ;;  %v4192_v18 = vadd.f32 %v4191_v17, %v3957_v58  ;;  %v4276_v26 = vmul.f32 %v3957_v58, %v3957_v58 }
 0x5f4   : > { %v4343_v52 = vadd.f32 %v4342_v22, %v4275_v20 }
 0x5f5   : > { %v4414_v45 = vmax.f32 %v4410_v38, 0.0  ;;  %v7275_v56 = vpop.f32.mrb[152].mxu0  ;;  %v4193_v53 = vadd.f32 %v7272_v15, %v4192_v18 }
 0x5f6   : > { %v4344_v16 = vadd.f32 %v4343_v52, %v4276_v26  ;;  %v3967_v32 = vpop.f32.mrb[153].mxu0  ;;  %v4279_v35 = vmul.f32 %v7275_v56, %v7275_v56 }
 0x5f7   : > { %v4418_v23 = vadd.f32 1e-05, %v4414_v45  ;;  %v4194_v33 = vadd.f32 %v4193_v53, %v3967_v32  ;;  %v4278_v34 = vmul.f32 %v3967_v32, %v3967_v32 }
 0x5f8   : > { %v4345_v31 = vadd.f32 %v4344_v16, %v4277_v24 }
 0x5f9   : > { %7869 = vrsqrt.f32 %v4418_v23  ;;  %v7278_v47 = vpop.f32.mrb[154].mxu0  ;;  %v4195_v0 = vadd.f32 %v7275_v56, %v4194_v33 }
 0x5fa   : > { %v4346_v49 = vadd.f32 %v4345_v31, %v4278_v34  ;;  %v3977_v29 = vpop.f32.mrb[155].mxu0  ;;  %v4281_v25 = vmul.f32 %v7278_v47, %v7278_v47 }
 0x5fb   : > { %v4196_v11 = vadd.f32 %v4195_v0, %v3977_v29  ;;  %v4280_v55 = vmul.f32 %v3977_v29, %v3977_v29 }
 0x5fc   : > { %v4347_v60 = vadd.f32 %v4346_v49, %v4279_v35 }
 0x5fd   : > { %v7281_v28 = vpop.f32.mrb[156].mxu0  ;;  %v4197_v36 = vadd.f32 %v7278_v47, %v4196_v11 }
 0x5fe   : > { %v4348_v10 = vadd.f32 %v4347_v60, %v4280_v55  ;;  %v3987_v42 = vpop.f32.mrb[157].mxu0  ;;  %v4283_v61 = vmul.f32 %v7281_v28, %v7281_v28 }
 0x5ff   : > { %v4198_v44 = vadd.f32 %v4197_v36, %v3987_v42  ;;  %v4282_v27 = vmul.f32 %v3987_v42, %v3987_v42 }
 0x600   : > { %v4349_v19 = vadd.f32 %v4348_v10, %v4281_v25 }
 0x601   : > { %v7284_v54 = vpop.f32.mrb[158].mxu0  ;;  %v4199_v59 = vadd.f32 %v7281_v28, %v4198_v44 }
 0x602   : > { %v4350_v39 = vadd.f32 %v4349_v19, %v4282_v27  ;;  %v3997_v1 = vpop.f32.mrb[159].mxu0  ;;  %v4285_v9 = vmul.f32 %v7284_v54, %v7284_v54 }
 0x603   : > { %v7870_v37 = vpop.eup %7869  ;;  %v4200_v2 = vadd.f32 %v4199_v59, %v3997_v1  ;;  %v4284_v3 = vmul.f32 %v3997_v1, %v3997_v1 }
 0x604   : > { %v4426_v4 = vmul.f32 %v7870_v37, %v9162_v46  ;;  %v4351_v41 = vadd.f32 %v4350_v39, %v4283_v61 }
 0x605   : > { %v4201_v8 = vadd.f32 %v7284_v54, %v4200_v2  ;;  %v9170_v12 = vpop.f32.mrb[160].mxu0 }
 0x606   : > { %v4430_v14 = vmul.f32 %v4426_v4, %v4250_v6  ;;  %v4352_v62 = vadd.f32 %v4351_v41, %v4284_v3  ;;  %v4287_v43 = vmul.f32 %v9170_v12, %v9170_v12  ;;  %v9174_v15 = vpop.f32.mrb[161].mxu0  ;;  %v4441_v17 = vrot.slane %v4426_v4, %v8787_v50 }
 0x607   : > { %v4202_v20 = vrot.slane %v4201_v8, 4  ;;  %v4208_v22 = vadd.f32 %v9170_v12, %v9174_v15  ;;  %v4286_v58 = vmul.f32 %v9174_v15, %v9174_v15 }
 0x608   : > { %v4434_v38 = vsub.f32 %v9168_v5, %v4430_v14  ;;  %v4353_v18 = vadd.f32 %v4352_v62, %v4285_v9  ;;  %v4454_v6 = vmul.f32 %v4441_v17, %v9123_v63  ;;  %v4455_v26 = vmul.f32 %v9119_v30, %v4441_v17 }
 0x609   : > { %v4203_v52 = vadd.f32 %v4202_v20, %v4201_v8  ;;  %v4360_v45 = vadd.f32 %v4287_v43, %v4286_v58  ;;  %v9184_v56 = vpop.f32.mrb[162].mxu0  ;;  %v4456_v53 = vmul.f32 %v4441_v17, %v9131_v13  ;;  %v4457_v24 = vmul.f32 %v9129_v21, %v4441_v17 }
 0x60a   : > { %v4354_v16 = vrot.slane %v4353_v18, 4  ;;  %v9188_v32 = vpop.f32.mrb[163].mxu0  ;;  %v4521_v23 = vrot.slane %v4434_v38, %v8787_v50  ;;  %v4289_v34 = vmul.f32 %v9184_v56, %v9184_v56 }
 0x60b   : > { %v4204_v33 = vrot.slane %v4203_v52, 2  ;;  %v4209_v63 = vadd.f32 %v4208_v22, %v9188_v32  ;;  %v4288_v30 = vmul.f32 %v9188_v32, %v9188_v32 }
 0x60c   : > { %v4355_v31 = vadd.f32 %v4354_v16, %v4353_v18  ;;  %v4534_v47 = vadd.f32 %v4521_v23, %v4454_v6  ;;  %v4535_v0 = vadd.f32 %v4521_v23, %v4455_v26  ;;  %v4536_v13 = vadd.f32 %v4521_v23, %v4456_v53 }
 0x60d   : > { %v4205_v35 = vadd.f32 %v4204_v33, %v4203_v52  ;;  %v4361_v21 = vadd.f32 %v4360_v45, %v4288_v30  ;;  %v7293_v49 = vpop.f32.mrb[164].mxu0  ;;  %v4210_v29 = vadd.f32 %v9184_v56, %v4209_v63  ;;  %v4537_v11 = vadd.f32 %v4521_v23, %v4457_v24 }
 0x60e   : > { %v4356_v55 = vrot.slane %v4355_v31, 2  ;;  %v4027_v60 = vpop.f32.mrb[165].mxu0  ;;  %v4598_v28 = vmax.f32 %v4534_v47, 0.0  ;;  %v4599_v36 = vmax.f32 %v4535_v0, 0.0  ;;  %v4600_v19 = vmax.f32 %v4536_v13, 0.0 }
 0x60f   : > { %v4206_v25 = vrot.slane %v4205_v35, 1  ;;  %v4211_v10 = vadd.f32 %v4210_v29, %v4027_v60  ;;  %v4290_v42 = vmul.f32 %v4027_v60, %v4027_v60  ;;  %v4362_v44 = vadd.f32 %v4361_v21, %v4289_v34 }
 0x610   : > { %v4357_v27 = vadd.f32 %v4356_v55, %v4355_v31  ;;  %7365 = vmatprep.mubr.f32.mxu1 %v4598_v28  ;;  %v4291_v59 = vmul.f32 %v7293_v49, %v7293_v49  ;;  %v4601_v3 = vmax.f32 %v4537_v11, 0.0 }
 0x611   : > { %v4207_v54 = vadd.f32 %v4206_v25, %v4205_v35  ;;  %v4363_v61 = vadd.f32 %v4362_v44, %v4290_v42  ;;  %v7296_v39 = vpop.f32.mrb[166].mxu0  ;;  %v4212_v1 = vadd.f32 %v7293_v49, %v4211_v10  ;;  %7366 = vmatmul.mubr.f32.vlgmr.msra.gmra.mrb[128].mxu1 %v4599_v36 }
 0x612   : > { %v4358_v37 = vrot.slane %v4357_v27, 1  ;;  %v4037_v2 = vpop.f32.mrb[167].mxu0  ;;  %7368 = vmatprep.mubr.f32.mxu1 %v4600_v19  ;;  %v4293_v43 = vmul.f32 %v7296_v39, %v7296_v39 }
 0x613   : > { %v9197_v4 = vmul.f32 0.03125, %v4207_v54  ;;  %v4213_v41 = vadd.f32 %v4212_v1, %v4037_v2  ;;  %v4292_v9 = vmul.f32 %v4037_v2, %v4037_v2  ;;  %v4364_v8 = vadd.f32 %v4363_v61, %v4291_v59 }
 0x614   : > { %v4359_v14 = vadd.f32 %v4358_v37, %v4357_v27 }
 0x615   : > { %v4407_v62 = vmul.f32 %v9197_v4, %v9197_v4  ;;  %v4365_v17 = vadd.f32 %v4364_v8, %v4292_v9  ;;  %v7299_v20 = vpop.f32.mrb[168].mxu0  ;;  %v4214_v22 = vadd.f32 %v7296_v39, %v4213_v41  ;;  %7369 = vmatmul.mubr.f32.gmra.mrb[130].mxu1 %v4601_v3 }
 0x616   : > { %v4403_v58 = vmul.f32 0.03125, %v4359_v14  ;;  %v4047_v38 = vpop.f32.mrb[169].mxu0  ;;  %7371 = vmatprep.mubr.f32.mxu1 %v8244_v7  ;;  %v4295_v45 = vmul.f32 %v7299_v20, %v7299_v20 }
 0x617   : > { %v4215_v18 = vadd.f32 %v4214_v22, %v4047_v38  ;;  %v4294_v6 = vmul.f32 %v4047_v38, %v4047_v38  ;;  %v4366_v26 = vadd.f32 %v4365_v17, %v4293_v43 }
 0x618   : > { %v4411_v52 = vsub.f32 %v4403_v58, %v4407_v62 }
 0x619   : > { %v4367_v53 = vadd.f32 %v4366_v26, %v4294_v6  ;;  %v7302_v24 = vpop.f32.mrb[170].mxu0  ;;  %v4216_v16 = vadd.f32 %v7299_v20, %v4215_v18  ;;  %7372 = vmatmul.mubr.f32.gmra.mrb[132].mxu1 %v8244_v7 }
 0x61a   : > { %v4415_v23 = vmax.f32 %v4411_v52, 0.0  ;;  %v4057_v33 = vpop.f32.mrb[171].mxu0  ;;  %7374 = vmatprep.mubr.f32.mxu1 %v8244_v7  ;;  %v4297_v47 = vmul.f32 %v7302_v24, %v7302_v24 }
 0x61b   : > { %v4217_v34 = vadd.f32 %v4216_v16, %v4057_v33  ;;  %v4296_v63 = vmul.f32 %v4057_v33, %v4057_v33  ;;  %v4368_v30 = vadd.f32 %v4367_v53, %v4295_v45 }
 0x61c   : > { %v4419_v31 = vadd.f32 1e-05, %v4415_v23 }
 0x61d   : > { %v4369_v0 = vadd.f32 %v4368_v30, %v4296_v63  ;;  %v7305_v13 = vpop.f32.mrb[172].mxu0  ;;  %v4218_v35 = vadd.f32 %v7302_v24, %v4217_v34  ;;  %7375 = vmatmul.mubr.f32.gmra.mrb[134].mxu1 %v8244_v7 }
 0x61e   : > { %7871 = vrsqrt.f32 %v4419_v31  ;;  %v4067_v21 = vpop.f32.mrb[173].mxu0  ;;  %7377 = vmatprep.mubr.f32.mxu1 %v8244_v7  ;;  %v4299_v55 = vmul.f32 %v7305_v13, %v7305_v13 }
 0x61f   : > { %v4219_v49 = vadd.f32 %v4218_v35, %v4067_v21  ;;  %v4298_v29 = vmul.f32 %v4067_v21, %v4067_v21  ;;  %v4370_v11 = vadd.f32 %v4369_v0, %v4297_v47 }
 0x621   : > { %v4371_v60 = vadd.f32 %v4370_v11, %v4298_v29  ;;  %v7308_v28 = vpop.f32.mrb[174].mxu0  ;;  %v4220_v36 = vadd.f32 %v7305_v13, %v4219_v49  ;;  %7378 = vmatmul.mubr.f32.gmra.mrb[136].mxu1 %v8244_v7 }
 0x622   : > { %v4077_v25 = vpop.f32.mrb[175].mxu0  ;;  %7380 = vmatprep.mubr.f32.mxu1 %v8244_v7  ;;  %v4301_v27 = vmul.f32 %v7308_v28, %v7308_v28 }
 0x623   : > { %v4221_v10 = vadd.f32 %v4220_v36, %v4077_v25  ;;  %v4300_v42 = vmul.f32 %v4077_v25, %v4077_v25  ;;  %v4372_v44 = vadd.f32 %v4371_v60, %v4299_v55 }
 0x625   : > { %v4222_v19 = vadd.f32 %v7308_v28, %v4221_v10  ;;  %v4373_v54 = vadd.f32 %v4372_v44, %v4300_v42  ;;  %v9208_v59 = vpop.f32.mrb[176].mxu0  ;;  %7381 = vmatmul.mubr.f32.gmra.mrb[138].mxu1 %v8244_v7 }
 0x626   : > { %v4303_v61 = vmul.f32 %v9208_v59, %v9208_v59  ;;  %v9213_v39 = vpop.f32.mrb[177].mxu0  ;;  %7383 = vmatprep.mubr.f32.mxu1 %v8244_v7 }
 0x627   : > { %v4223_v1 = vrot.slane %v4222_v19, 4  ;;  %v4374_v37 = vadd.f32 %v4373_v54, %v4301_v27  ;;  %v4229_v2 = vadd.f32 %v9208_v59, %v9213_v39  ;;  %v4302_v3 = vmul.f32 %v9213_v39, %v9213_v39 }
 0x628   : > { %v7872_v41 = vpop.eup %7871 }
 0x629   : > { %v4427_v9 = vmul.f32 %v7872_v41, %v9162_v46  ;;  %v4224_v8 = vadd.f32 %v4223_v1, %v4222_v19  ;;  %v4375_v14 = vrot.slane %v4374_v37, 4  ;;  %v4381_v62 = vadd.f32 %v4303_v61, %v4302_v3  ;;  %v9221_v43 = vpop.f32.mrb[178].mxu0  ;;  %7384 = vmatmul.mubr.f32.gmra.mrb[140].mxu1 %v8244_v7 }
 0x62a   : > { %v9224_v17 = vpop.f32.mrb[179].mxu0  ;;  %7386 = vmatprep.mubr.f32.mxu1 %v8244_v7 }
 0x62b   : > { %v4431_v20 = vmul.f32 %v4427_v9, %v9197_v4  ;;  %v4225_v22 = vrot.slane %v4224_v8, 2  ;;  %v4376_v58 = vadd.f32 %v4375_v14, %v4374_v37  ;;  %v4230_v38 = vadd.f32 %v4229_v2, %v9224_v17 }
 0x62c   : > { %v4304_v18 = vmul.f32 %v9224_v17, %v9224_v17  ;;  %v4445_v6 = vrot.slane %v4427_v9, %v8787_v50  ;;  %v4305_v4 = vmul.f32 %v9221_v43, %v9221_v43 }
 0x62d   : > { %v4435_v26 = vsub.f32 %v9168_v5, %v4431_v20  ;;  %v4226_v52 = vadd.f32 %v4225_v22, %v4224_v8  ;;  %v4377_v45 = vrot.slane %v4376_v58, 2  ;;  %v7317_v53 = vpop.f32.mrb[180].mxu0  ;;  %v4231_v24 = vadd.f32 %v9221_v43, %v4230_v38  ;;  %7387 = vmatmul.mubr.f32.gmra.mrb[142].mxu1 %v8244_v7 }
 0x62e   : > { %v4382_v16 = vadd.f32 %v4381_v62, %v4304_v18  ;;  %v4107_v23 = vpop.f32.mrb[181].mxu0  ;;  %v4470_v33 = vmul.f32 %v4445_v6, %v9143_v40  ;;  %v4471_v34 = vmul.f32 %v9139_v57, %v4445_v6  ;;  %v4472_v35 = vmul.f32 %v4445_v6, %v9151_v51 }
 0x62f   : > { %v4227_v63 = vrot.slane %v4226_v52, 1  ;;  %v4378_v30 = vadd.f32 %v4377_v45, %v4376_v58  ;;  %v4232_v31 = vadd.f32 %v4231_v24, %v4107_v23  ;;  %v4306_v47 = vmul.f32 %v4107_v23, %v4107_v23 }
 0x630   : > { %v4383_v0 = vadd.f32 %v4382_v16, %v4305_v4  ;;  %v4525_v13 = vrot.slane %v4435_v26, %v8787_v50  ;;  %v4473_v21 = vmul.f32 %v9149_v48, %v4445_v6  ;;  %v4307_v60 = vmul.f32 %v7317_v53, %v7317_v53 }
 0x631   : > { %v4228_v49 = vadd.f32 %v4227_v63, %v4226_v52  ;;  %v4379_v29 = vrot.slane %v4378_v30, 1  ;;  %v7320_v11 = vpop.f32.mrb[182].mxu0  ;;  %v4233_v55 = vadd.f32 %v7317_v53, %v4232_v31 }
 0x632   : > { %v4384_v28 = vadd.f32 %v4383_v0, %v4306_v47  ;;  %v4117_v40 = vpop.f32.mrb[183].mxu0  ;;  %v4550_v36 = vadd.f32 %v4525_v13, %v4470_v33  ;;  %v4551_v57 = vadd.f32 %v4525_v13, %v4471_v34  ;;  %v4552_v51 = vadd.f32 %v4525_v13, %v4472_v35 }
 0x633   : > { %v9242_v25 = vmul.f32 0.03125, %v4228_v49  ;;  %v4380_v10 = vadd.f32 %v4379_v29, %v4378_v30  ;;  %v4234_v42 = vadd.f32 %v4233_v55, %v4117_v40  ;;  %v4308_v44 = vmul.f32 %v4117_v40, %v4117_v40 }
 0x634   : > { %v4385_v27 = vadd.f32 %v4384_v28, %v4307_v60  ;;  %v4614_v19 = vmax.f32 %v4550_v36, 0.0  ;;  %v4615_v54 = vmax.f32 %v4551_v57, 0.0  ;;  %v4553_v2 = vadd.f32 %v4525_v13, %v4473_v21 }
 0x635   : > { %v4404_v61 = vmul.f32 0.03125, %v4380_v10  ;;  %v4408_v48 = vmul.f32 %v9242_v25, %v9242_v25  ;;  %v7323_v1 = vpop.f32.mrb[184].mxu0  ;;  %v4235_v37 = vadd.f32 %v7320_v11, %v4234_v42  ;;  %v4309_v3 = vmul.f32 %v7320_v11, %v7320_v11 }
 0x636   : > { %v4386_v41 = vadd.f32 %v4385_v27, %v4308_v44  ;;  %7389 = vmatprep.mubr.f32.mxu1 %v4614_v19  ;;  %v4127_v9 = vpop.f32.mrb[185].mxu0  ;;  %v4616_v8 = vmax.f32 %v4552_v51, 0.0  ;;  %v4617_v18 = vmax.f32 %v4553_v2, 0.0  ;;  %v4311_v26 = vmul.f32 %v7323_v1, %v7323_v1 }
 0x637   : > { %v4412_v14 = vsub.f32 %v4404_v61, %v4408_v48  ;;  %7390 = vmatmul.mubr.f32.gmra.mrb[144].mxu1 %v4615_v54  ;;  %v4236_v62 = vadd.f32 %v4235_v37, %v4127_v9  ;;  %v4310_v20 = vmul.f32 %v4127_v9, %v4127_v9 }
 0x638   : > { %v4387_v22 = vadd.f32 %v4386_v41, %v4309_v3  ;;  %7392 = vmatprep.mubr.f32.mxu1 %v4616_v8 }
 0x639   : > { %v4416_v58 = vmax.f32 %v4412_v14, 0.0  ;;  %v7326_v38 = vpop.f32.mrb[186].mxu0  ;;  %v4237_v6 = vadd.f32 %v7323_v1, %v4236_v62 }
 0x63a   : > { %v4388_v52 = vadd.f32 %v4387_v22, %v4310_v20  ;;  %v4137_v45 = vpop.f32.mrb[187].mxu0  ;;  %v4313_v34 = vmul.f32 %v7326_v38, %v7326_v38 }
 0x63b   : > { %v4420_v53 = vadd.f32 1e-05, %v4416_v58  ;;  %7393 = vmatmul.mubr.f32.gmra.mrb[146].mxu1 %v4617_v18  ;;  %v4238_v24 = vadd.f32 %v4237_v6, %v4137_v45  ;;  %v4312_v4 = vmul.f32 %v4137_v45, %v4137_v45 }
 0x63c   : > { %v4389_v16 = vadd.f32 %v4388_v52, %v4311_v26  ;;  %7395 = vmatprep.mubr.f32.mxu1 %v8244_v7 }
 0x63d   : > { %7873 = vrsqrt.f32 %v4420_v53  ;;  %v7329_v23 = vpop.f32.mrb[188].mxu0  ;;  %v4239_v33 = vadd.f32 %v7326_v38, %v4238_v24 }
 0x63e   : > { %v4390_v63 = vadd.f32 %v4389_v16, %v4312_v4  ;;  %v4147_v30 = vpop.f32.mrb[189].mxu0  ;;  %v4315_v21 = vmul.f32 %v7329_v23, %v7329_v23 }
 0x63f   : > { %7396 = vmatmul.mubr.f32.gmra.mrb[148].mxu1 %v8244_v7  ;;  %v4240_v31 = vadd.f32 %v4239_v33, %v4147_v30  ;;  %v4314_v47 = vmul.f32 %v4147_v30, %v4147_v30 }
 0x640   : > { %v4391_v0 = vadd.f32 %v4390_v63, %v4313_v34  ;;  %7398 = vmatprep.mubr.f32.mxu1 %v8244_v7 }
 0x641   : > { %v7332_v13 = vpop.f32.mrb[190].mxu0  ;;  %v4241_v35 = vadd.f32 %v7329_v23, %v4240_v31 }
 0x642   : > { %v4392_v49 = vadd.f32 %v4391_v0, %v4314_v47  ;;  %v4157_v29 = vpop.f32.mrb[191].mxu0  ;;  %v4317_v40 = vmul.f32 %v7332_v13, %v7332_v13 }
 0x643   : > { %7399 = vmatmul.mubr.f32.gmra.mrb[150].mxu1 %v8244_v7  ;;  %v4242_v11 = vadd.f32 %v4241_v35, %v4157_v29  ;;  %v4316_v55 = vmul.f32 %v4157_v29, %v4157_v29 }
 0x644   : > { %v4393_v60 = vadd.f32 %v4392_v49, %v4315_v21  ;;  %7401 = vmatprep.mubr.f32.mxu1 %v8244_v7 }
 0x645   : > { %v4243_v28 = vadd.f32 %v7332_v13, %v4242_v11 }
 0x646   : > { %v4394_v36 = vadd.f32 %v4393_v60, %v4316_v55 }
 0x647   : > { %v7874_v57 = vpop.eup %7873  ;;  %v4244_v10 = vrot.slane %v4243_v28, 4  ;;  %7402 = vmatmul.mubr.f32.gmra.mrb[152].mxu1 %v8244_v7 }
 0x648   : > { %v4428_v42 = vmul.f32 %v7874_v57, %v9162_v46  ;;  %v4395_v44 = vadd.f32 %v4394_v36, %v4317_v40  ;;  %7404 = vmatprep.mubr.f32.mxu1 %v8244_v7 }
 0x649   : > { %v4245_v27 = vadd.f32 %v4244_v10, %v4243_v28 }
 0x64a   : > { %v4432_v19 = vmul.f32 %v4428_v42, %v9242_v25  ;;  %v4396_v54 = vrot.slane %v4395_v44, 4  ;;  %v4449_v51 = vrot.slane %v4428_v42, %v8787_v50 }
 0x64b   : > { %v4246_v61 = vrot.slane %v4245_v27, 2  ;;  %7405 = vmatmul.mubr.f32.gmra.mrb[154].mxu1 %v8244_v7 }
 0x64c   : > { %v4436_v48 = vsub.f32 %v9168_v5, %v4432_v19  ;;  %v4397_v1 = vadd.f32 %v4396_v54, %v4395_v44  ;;  %7407 = vmatprep.mubr.f32.mxu1 %v8244_v7  ;;  %v4486_v37 = vmul.f32 %v4449_v51, %v9174_v15  ;;  %v4487_v2 = vmul.f32 %v9170_v12, %v4449_v51 }
 0x64d   : > { %v4247_v3 = vadd.f32 %v4246_v61, %v4245_v27  ;;  %v4488_v41 = vmul.f32 %v4449_v51, %v9188_v32  ;;  %v4489_v25 = vmul.f32 %v9184_v56, %v4449_v51 }
 0x64e   : > { %v4398_v9 = vrot.slane %v4397_v1, 2  ;;  %v4529_v8 = vrot.slane %v4436_v48, %v8787_v50 }
 0x64f   : > { %v4248_v14 = vrot.slane %v4247_v3, 1  ;;  %7408 = vmatmul.mubr.f32.gmra.mrb[156].mxu1 %v8244_v7 }
 0x650   : > { %v4399_v62 = vadd.f32 %v4398_v9, %v4397_v1  ;;  %7410 = vmatprep.mubr.f32.mxu1 %v8244_v7  ;;  %v4566_v20 = vadd.f32 %v4529_v8, %v4486_v37  ;;  %v4567_v22 = vadd.f32 %v4529_v8, %v4487_v2  ;;  %v4568_v58 = vadd.f32 %v4529_v8, %v4488_v41 }
 0x651   : > { %v4249_v15 = vadd.f32 %v4248_v14, %v4247_v3  ;;  %v4569_v38 = vadd.f32 %v4529_v8, %v4489_v25 }
 0x652   : > { %v4400_v12 = vrot.slane %v4399_v62, 1  ;;  %v4630_v18 = vmax.f32 %v4566_v20, 0.0  ;;  %v4631_v56 = vmax.f32 %v4567_v22, 0.0  ;;  %v4632_v45 = vmax.f32 %v4568_v58, 0.0 }
 0x653   : > { %v4253_v6 = vmul.f32 0.03125, %v4249_v15  ;;  %7411 = vmatmul.mubr.f32.gmra.mrb[158].mxu1 %v8244_v7  ;;  %v4633_v24 = vmax.f32 %v4569_v38, 0.0 }
 0x654   : > { %v4401_v32 = vadd.f32 %v4400_v12, %v4399_v62  ;;  %7413 = vmatprep.mubr.f32.mxu1 %v4630_v18 }
 0x655   : > { %v4409_v26 = vmul.f32 %v4253_v6, %v4253_v6 }
 0x656   : > { %v4405_v52 = vmul.f32 0.03125, %v4401_v32 }
 0x657   : > { %7414 = vmatmul.mubr.f32.gmra.mrb[160].mxu1 %v4631_v56 }
 0x658   : > { %v4413_v53 = vsub.f32 %v4405_v52, %v4409_v26  ;;  %7416 = vmatprep.mubr.f32.mxu1 %v4632_v45 }
 0x65a   : > { %v4417_v4 = vmax.f32 %v4413_v53, 0.0 }
 0x65b   : > { %7417 = vmatmul.mubr.f32.gmra.mrb[162].mxu1 %v4633_v24 }
 0x65c   : > { %v4421_v16 = vadd.f32 1e-05, %v4417_v4  ;;  %7419 = vmatprep.mubr.f32.mxu1 %v8244_v7 }
 0x65e   : > { %7875 = vrsqrt.f32 %v4421_v16 }
 0x65f   : > { %7420 = vmatmul.mubr.f32.gmra.mrb[164].mxu1 %v8244_v7 }
 0x660   : > { %7422 = vmatprep.mubr.f32.mxu1 %v8244_v7 }
 0x663   : > { %7423 = vmatmul.mubr.f32.gmra.mrb[166].mxu1 %v8244_v7 }
 0x664   : > { %7425 = vmatprep.mubr.f32.mxu1 %v8244_v7 }
 0x667   : > { %7426 = vmatmul.mubr.f32.gmra.mrb[168].mxu1 %v8244_v7 }
 0x668   : > { %v7876_v23 = vpop.eup %7875  ;;  %7428 = vmatprep.mubr.f32.mxu1 %v8244_v7 }
 0x669   : > { %v4429_v33 = vmul.f32 %v7876_v23, %v9162_v46 }
 0x66b   : > { %v4433_v34 = vmul.f32 %v4429_v33, %v4253_v6  ;;  %7429 = vmatmul.mubr.f32.gmra.mrb[170].mxu1 %v8244_v7  ;;  %v4453_v63 = vrot.slane %v4429_v33, %v8787_v50 }
 0x66c   : > { %7431 = vmatprep.mubr.f32.mxu1 %v8244_v7 }
 0x66d   : > { %v4437_v30 = vsub.f32 %v9168_v5, %v4433_v34  ;;  %v4502_v31 = vmul.f32 %v4453_v63, %v9213_v39  ;;  %v4503_v47 = vmul.f32 %v9208_v59, %v4453_v63  ;;  %v4504_v0 = vmul.f32 %v4453_v63, %v9224_v17 }
 0x66e   : > { %v4505_v13 = vmul.f32 %v9221_v43, %v4453_v63 }
 0x66f   : > { %7432 = vmatmul.mubr.f32.gmra.mrb[172].mxu1 %v8244_v7  ;;  %v4533_v46 = vrot.slane %v4437_v30, %v8787_v50 }
 0x670   : > { %7434 = vmatprep.mubr.f32.mxu1 %v8244_v7 }
 0x671   : > { %v4582_v35 = vadd.f32 %v4533_v46, %v4502_v31  ;;  %v4583_v21 = vadd.f32 %v4533_v46, %v4503_v47  ;;  %v4584_v49 = vadd.f32 %v4533_v46, %v4504_v0  ;;  %v4585_v29 = vadd.f32 %v4533_v46, %v4505_v13 }
 0x673   : > { %7435 = vmatmul.mubr.f32.gmra.mrb[174].mxu1 %v8244_v7  ;;  %v4646_v5 = vmax.f32 %v4582_v35, 0.0  ;;  %v4647_v39 = vmax.f32 %v4583_v21, 0.0  ;;  %v4648_v59 = vmax.f32 %v4584_v49, 0.0  ;;  %v4649_v43 = vmax.f32 %v4585_v29, 0.0 }
 0x675   : > { %7437 = vmatprep.mubr.f32.mxu1 %v4646_v5 }
 0x677   : > { %7438 = vmatmul.mubr.f32.gmra.mrb[176].mxu1 %v4647_v39 }
 0x678   : > { %7440 = vmatprep.mubr.f32.mxu1 %v4648_v59 }
 0x67b   : > { %7441 = vmatmul.mubr.f32.gmra.mrb[178].mxu1 %v4649_v43 }
 0x67c   : > { %7443 = vmatprep.mubr.f32.mxu1 %v8244_v7 }
 0x67f   : > { %7444 = vmatmul.mubr.f32.gmra.mrb[180].mxu1 %v8244_v7 }
 0x680   : > { %7446 = vmatprep.mubr.f32.mxu1 %v8244_v7 }
 0x683   : > { %7447 = vmatmul.mubr.f32.gmra.mrb[182].mxu1 %v8244_v7 }
 0x684   : > { %7449 = vmatprep.mubr.f32.mxu1 %v8244_v7 }
 0x687   : > { %7450 = vmatmul.mubr.f32.gmra.mrb[184].mxu1 %v8244_v7 }
 0x688   : > { %7452 = vmatprep.mubr.f32.mxu1 %v8244_v7 }
 0x68b   : > { %7453 = vmatmul.mubr.f32.gmra.mrb[186].mxu1 %v8244_v7 }
 0x68c   : > { %7455 = vmatprep.mubr.f32.mxu1 %v8244_v7 }
 0x68f   : > { %7456 = vmatmul.mubr.f32.gmra.mrb[188].mxu1 %v8244_v7 }
 0x690   : > { %7458 = vmatprep.mubr.f32.mxu1 %v8244_v7 }
 0x693   : > { %7459 = vmatmul.mubr.f32.gmra.mrb[190].mxu1 %v8244_v7 }
 0x6e4   : > { %v9398_v17 = vpop.f32.mrb[128].mxu1 }
 0x6e5   : > { %v5200_v11 = vmul.f32 %v9398_v17, %v9398_v17  ;;  %v9402_v55 = vpop.f32.mrb[129].mxu1 }
 0x6e6   : > { %v5111_v60 = vadd.f32 %v9398_v17, %v9402_v55  ;;  %v5199_v28 = vmul.f32 %v9402_v55, %v9402_v55 }
 0x6e8   : > { %v5263_v40 = vadd.f32 %v5200_v11, %v5199_v28  ;;  %v9408_v36 = vpop.f32.mrb[130].mxu1 }
 0x6e9   : > { %v9410_v57 = vpop.f32.mrb[131].mxu1  ;;  %v5202_v42 = vmul.f32 %v9408_v36, %v9408_v36 }
 0x6ea   : > { %v5112_v7 = vadd.f32 %v5111_v60, %v9410_v57  ;;  %v5201_v10 = vmul.f32 %v9410_v57, %v9410_v57 }
 0x6ec   : > { %v5264_v44 = vadd.f32 %v5263_v40, %v5201_v10  ;;  %v7373_v27 = vpop.f32.mrb[132].mxu1  ;;  %v5113_v19 = vadd.f32 %v9408_v36, %v5112_v7 }
 0x6ed   : > { %v4812_v54 = vpop.f32.mrb[133].mxu1  ;;  %v5204_v1 = vmul.f32 %v7373_v27, %v7373_v27 }
 0x6ee   : > { %v5114_v51 = vadd.f32 %v5113_v19, %v4812_v54  ;;  %v5203_v61 = vmul.f32 %v4812_v54, %v4812_v54  ;;  %v5265_v48 = vadd.f32 %v5264_v44, %v5202_v42 }
 0x6f0   : > { %v5266_v37 = vadd.f32 %v5265_v48, %v5203_v61  ;;  %v7376_v2 = vpop.f32.mrb[134].mxu1  ;;  %v5115_v3 = vadd.f32 %v7373_v27, %v5114_v51 }
 0x6f1   : > { %v4822_v41 = vpop.f32.mrb[135].mxu1  ;;  %v5206_v14 = vmul.f32 %v7376_v2, %v7376_v2 }
 0x6f2   : > { %v5116_v25 = vadd.f32 %v5115_v3, %v4822_v41  ;;  %v5205_v9 = vmul.f32 %v4822_v41, %v4822_v41  ;;  %v5267_v8 = vadd.f32 %v5266_v37, %v5204_v1 }
 0x6f4   : > { %v5268_v62 = vadd.f32 %v5267_v8, %v5205_v9  ;;  %v7379_v20 = vpop.f32.mrb[136].mxu1  ;;  %v5117_v22 = vadd.f32 %v7376_v2, %v5116_v25 }
 0x6f5   : > { %v4832_v58 = vpop.f32.mrb[137].mxu1  ;;  %v5208_v18 = vmul.f32 %v7379_v20, %v7379_v20 }
 0x6f6   : > { %v5118_v15 = vadd.f32 %v5117_v22, %v4832_v58  ;;  %v5207_v38 = vmul.f32 %v4832_v58, %v4832_v58  ;;  %v5269_v12 = vadd.f32 %v5268_v62, %v5206_v14 }
 0x6f8   : > { %v5270_v6 = vadd.f32 %v5269_v12, %v5207_v38  ;;  %v7382_v56 = vpop.f32.mrb[138].mxu1  ;;  %v5119_v32 = vadd.f32 %v7379_v20, %v5118_v15 }
 0x6f9   : > { %v4842_v26 = vpop.f32.mrb[139].mxu1  ;;  %v5210_v24 = vmul.f32 %v7382_v56, %v7382_v56 }
 0x6fa   : > { %v5120_v52 = vadd.f32 %v5119_v32, %v4842_v26  ;;  %v5209_v45 = vmul.f32 %v4842_v26, %v4842_v26  ;;  %v5271_v53 = vadd.f32 %v5270_v6, %v5208_v18 }
 0x6fc   : > { %v5272_v4 = vadd.f32 %v5271_v53, %v5209_v45  ;;  %v7385_v16 = vpop.f32.mrb[140].mxu1  ;;  %v5121_v23 = vadd.f32 %v7382_v56, %v5120_v52 }
 0x6fd   : > { %v4852_v33 = vpop.f32.mrb[141].mxu1  ;;  %v5212_v31 = vmul.f32 %v7385_v16, %v7385_v16 }
 0x6fe   : > { %v5122_v34 = vadd.f32 %v5121_v23, %v4852_v33  ;;  %v5211_v63 = vmul.f32 %v4852_v33, %v4852_v33  ;;  %v5273_v30 = vadd.f32 %v5272_v4, %v5210_v24 }
 0x700   : > { %v5274_v47 = vadd.f32 %v5273_v30, %v5211_v63  ;;  %v7388_v0 = vpop.f32.mrb[142].mxu1  ;;  %v5123_v13 = vadd.f32 %v7385_v16, %v5122_v34 }
 0x701   : > { %v4862_v46 = vpop.f32.mrb[143].mxu1  ;;  %v5214_v29 = vmul.f32 %v7388_v0, %v7388_v0 }
 0x702   : > { %v5124_v35 = vadd.f32 %v5123_v13, %v4862_v46  ;;  %v5213_v21 = vmul.f32 %v4862_v46, %v4862_v46  ;;  %v5275_v49 = vadd.f32 %v5274_v47, %v5212_v31 }
 0x704   : > { %v5125_v5 = vadd.f32 %v7388_v0, %v5124_v35  ;;  %v5276_v39 = vadd.f32 %v5275_v49, %v5213_v21 }
 0x706   : > { %v5126_v59 = vrot.slane %v5125_v5, 4  ;;  %v5277_v43 = vadd.f32 %v5276_v39, %v5214_v29 }
 0x708   : > { %v5127_v11 = vadd.f32 %v5126_v59, %v5125_v5  ;;  %v5278_v60 = vrot.slane %v5277_v43, 4 }
 0x70a   : > { %v5128_v28 = vrot.slane %v5127_v11, 2  ;;  %v5279_v40 = vadd.f32 %v5278_v60, %v5277_v43  ;;  %v9418_v7 = vpop.f32.mrb[144].mxu1 }
 0x70b   : > { %v5216_v10 = vmul.f32 %v9418_v7, %v9418_v7  ;;  %v9422_v42 = vpop.f32.mrb[145].mxu1 }
 0x70c   : > { %v5129_v44 = vadd.f32 %v5128_v28, %v5127_v11  ;;  %v5280_v27 = vrot.slane %v5279_v40, 2  ;;  %v5132_v19 = vadd.f32 %v9418_v7, %v9422_v42  ;;  %v5215_v54 = vmul.f32 %v9422_v42, %v9422_v42 }
 0x70e   : > { %v5130_v51 = vrot.slane %v5129_v44, 1  ;;  %v5281_v61 = vadd.f32 %v5280_v27, %v5279_v40  ;;  %v5284_v48 = vadd.f32 %v5216_v10, %v5215_v54  ;;  %v9428_v1 = vpop.f32.mrb[146].mxu1 }
 0x70f   : > { %v9430_v37 = vpop.f32.mrb[147].mxu1  ;;  %v5218_v22 = vmul.f32 %v9428_v1, %v9428_v1 }
 0x710   : > { %v5131_v2 = vadd.f32 %v5130_v51, %v5129_v44  ;;  %v5282_v3 = vrot.slane %v5281_v61, 1  ;;  %v5133_v41 = vadd.f32 %v5132_v19, %v9430_v37  ;;  %v5217_v25 = vmul.f32 %v9430_v37, %v9430_v37  ;;  %v9441_v44 = vld [vmem:[%s9644_s7] sm:$0x1] }
 0x712   : > { %v5195_v9 = vmul.f32 0.03125, %v5131_v2  ;;  %v5283_v8 = vadd.f32 %v5282_v3, %v5281_v61  ;;  %v5285_v14 = vadd.f32 %v5284_v48, %v5217_v25  ;;  %v7397_v62 = vpop.f32.mrb[148].mxu1  ;;  %v5134_v20 = vadd.f32 %v9428_v1, %v5133_v41 }
 0x713   : > { %v4892_v58 = vpop.f32.mrb[149].mxu1  ;;  %v5220_v52 = vmul.f32 %v7397_v62, %v7397_v62 }
 0x714   : > { %v5347_v15 = vmul.f32 0.03125, %v5283_v8  ;;  %v5351_v38 = vmul.f32 %v5195_v9, %v5195_v9  ;;  %v5135_v12 = vadd.f32 %v5134_v20, %v4892_v58  ;;  %v5219_v18 = vmul.f32 %v4892_v58, %v4892_v58  ;;  %v9447_v8 = vld [vmem:[%s9644_s7 + $0x1] sm:$0x1] }
 0x715   : > { %v5286_v6 = vadd.f32 %v5285_v14, %v5218_v22 }
 0x716   : > { %v5355_v56 = vsub.f32 %v5347_v15, %v5351_v38  ;;  %v7400_v32 = vpop.f32.mrb[150].mxu1  ;;  %v5136_v26 = vadd.f32 %v7397_v62, %v5135_v12 }
 0x717   : > { %v5287_v45 = vadd.f32 %v5286_v6, %v5219_v18  ;;  %v4902_v53 = vpop.f32.mrb[151].mxu1  ;;  %v5222_v30 = vmul.f32 %v7400_v32, %v7400_v32 }
 0x718   : > { %v5359_v24 = vmax.f32 %v5355_v56, 0.0  ;;  %v5137_v4 = vadd.f32 %v5136_v26, %v4902_v53  ;;  %v5221_v16 = vmul.f32 %v4902_v53, %v4902_v53 }
 0x719   : > { %v5288_v23 = vadd.f32 %v5287_v45, %v5220_v52 }
 0x71a   : > { %v5363_v33 = vadd.f32 1e-05, %v5359_v24  ;;  %v7403_v34 = vpop.f32.mrb[152].mxu1  ;;  %v5138_v63 = vadd.f32 %v7400_v32, %v5137_v4 }
 0x71b   : > { %v5289_v31 = vadd.f32 %v5288_v23, %v5221_v16  ;;  %v4912_v47 = vpop.f32.mrb[153].mxu1  ;;  %v5224_v49 = vmul.f32 %v7403_v34, %v7403_v34 }
 0x71c   : > { %7877 = vrsqrt.f32 %v5363_v33  ;;  %v5139_v0 = vadd.f32 %v5138_v63, %v4912_v47  ;;  %v5223_v13 = vmul.f32 %v4912_v47, %v4912_v47 }
 0x71d   : > { %v5290_v46 = vadd.f32 %v5289_v31, %v5222_v30 }
 0x71e   : > { %v7406_v35 = vpop.f32.mrb[154].mxu1  ;;  %v5140_v21 = vadd.f32 %v7403_v34, %v5139_v0 }
 0x71f   : > { %v5291_v29 = vadd.f32 %v5290_v46, %v5223_v13  ;;  %v4922_v5 = vpop.f32.mrb[155].mxu1  ;;  %v5226_v28 = vmul.f32 %v7406_v35, %v7406_v35 }
 0x720   : > { %v5141_v39 = vadd.f32 %v5140_v21, %v4922_v5  ;;  %v5225_v59 = vmul.f32 %v4922_v5, %v4922_v5 }
 0x721   : > { %v5292_v43 = vadd.f32 %v5291_v29, %v5224_v49 }
 0x722   : > { %v7409_v11 = vpop.f32.mrb[156].mxu1  ;;  %v5142_v60 = vadd.f32 %v7406_v35, %v5141_v39 }
 0x723   : > { %v5293_v40 = vadd.f32 %v5292_v43, %v5225_v59  ;;  %v4932_v10 = vpop.f32.mrb[157].mxu1  ;;  %v5228_v3 = vmul.f32 %v7409_v11, %v7409_v11 }
 0x724   : > { %v5143_v27 = vadd.f32 %v5142_v60, %v4932_v10  ;;  %v5227_v19 = vmul.f32 %v4932_v10, %v4932_v10 }
 0x725   : > { %v5294_v54 = vadd.f32 %v5293_v40, %v5226_v28 }
 0x726   : > { %v7878_v51 = vpop.eup %7877  ;;  %v7412_v61 = vpop.f32.mrb[158].mxu1  ;;  %v5144_v48 = vadd.f32 %v7409_v11, %v5143_v27 }
 0x727   : > { %v5371_v2 = vmul.f32 %v7878_v51, %v9441_v44  ;;  %v5295_v41 = vadd.f32 %v5294_v54, %v5227_v19  ;;  %v4942_v25 = vpop.f32.mrb[159].mxu1  ;;  %v5230_v15 = vmul.f32 %v7412_v61, %v7412_v61 }
 0x728   : > { %v5145_v14 = vadd.f32 %v5144_v48, %v4942_v25  ;;  %v5229_v62 = vmul.f32 %v4942_v25, %v4942_v25 }
 0x729   : > { %v5375_v20 = vmul.f32 %v5371_v2, %v5195_v9  ;;  %v5386_v22 = vrot.slane %v5371_v2, %v8787_v50  ;;  %v5296_v58 = vadd.f32 %v5295_v41, %v5228_v3 }
 0x72a   : > { %v5146_v38 = vadd.f32 %v7412_v61, %v5145_v14  ;;  %v9450_v12 = vpop.f32.mrb[160].mxu1 }
 0x72b   : > { %v5379_v18 = vsub.f32 %v9447_v8, %v5375_v20  ;;  %v5399_v6 = vmul.f32 %v5386_v22, %v9402_v55  ;;  %v5400_v56 = vmul.f32 %v9398_v17, %v5386_v22  ;;  %v5401_v32 = vmul.f32 %v5386_v22, %v9410_v57  ;;  %v9456_v26 = vpop.f32.mrb[161].mxu1 }
 0x72c   : > { %v5402_v52 = vmul.f32 %v9408_v36, %v5386_v22  ;;  %v5147_v9 = vrot.slane %v5146_v38, 4  ;;  %v5297_v45 = vadd.f32 %v5296_v58, %v5229_v62  ;;  %v5232_v53 = vmul.f32 %v9450_v12, %v9450_v12 }
 0x72d   : > { %v5466_v24 = vrot.slane %v5379_v18, %v8787_v50  ;;  %v5153_v4 = vadd.f32 %v9450_v12, %v9456_v26  ;;  %v5231_v55 = vmul.f32 %v9456_v26, %v9456_v26 }
 0x72e   : > { %v5148_v17 = vadd.f32 %v5147_v9, %v5146_v38  ;;  %v5298_v16 = vadd.f32 %v5297_v45, %v5230_v15  ;;  %v9466_v57 = vpop.f32.mrb[162].mxu1 }
 0x72f   : > { %v5479_v23 = vadd.f32 %v5466_v24, %v5399_v6  ;;  %v5480_v33 = vadd.f32 %v5466_v24, %v5400_v56  ;;  %v5481_v36 = vadd.f32 %v5466_v24, %v5401_v32  ;;  %v5482_v34 = vadd.f32 %v5466_v24, %v5402_v52  ;;  %v9468_v63 = vpop.f32.mrb[163].mxu1 }
 0x730   : > { %v5149_v30 = vrot.slane %v5148_v17, 2  ;;  %v5299_v31 = vrot.slane %v5298_v16, 4  ;;  %v5305_v47 = vadd.f32 %v5232_v53, %v5231_v55  ;;  %v5154_v29 = vadd.f32 %v5153_v4, %v9468_v63 }
 0x731   : > { %v5543_v0 = vmax.f32 %v5479_v23, 0.0  ;;  %v5544_v13 = vmax.f32 %v5480_v33, 0.0  ;;  %v5545_v46 = vmax.f32 %v5481_v36, 0.0  ;;  %v5546_v35 = vmax.f32 %v5482_v34, 0.0 }
 0x732   : > { %v5150_v21 = vadd.f32 %v5149_v30, %v5148_v17  ;;  %v5300_v49 = vadd.f32 %v5299_v31, %v5298_v16  ;;  %v5233_v5 = vmul.f32 %v9468_v63, %v9468_v63  ;;  %v7421_v39 = vpop.f32.mrb[164].mxu1  ;;  %v5234_v43 = vmul.f32 %v9466_v57, %v9466_v57 }
 0x733   : > { %5671 = vst [vmem:[%s9291_s29] sm:$0xff] %v5543_v0  ;;  %5672 = vst [vmem:[%s9291_s29 + $0x8] sm:$0xff] %v5544_v13  ;;  %v5735_v59 = vadd.f32 %v5544_v13, %v5543_v0  ;;  %v4972_v11 = vpop.f32.mrb[165].mxu1  ;;  %v5155_v10 = vadd.f32 %v9466_v57, %v5154_v29  ;;  %v5236_v41 = vmul.f32 %v7421_v39, %v7421_v39 }
 0x734   : > { %5673 = vst [vmem:[%s9291_s29 + $0x10] sm:$0xff] %v5545_v46  ;;  %5674 = vst [vmem:[%s9291_s29 + $0x18] sm:$0xff] %v5546_v35  ;;  %v5151_v60 = vrot.slane %v5150_v21, 1  ;;  %v5301_v28 = vrot.slane %v5300_v49, 2  ;;  %v5306_v40 = vadd.f32 %v5305_v47, %v5233_v5  ;;  %v5235_v19 = vmul.f32 %v4972_v11, %v4972_v11 }
 0x735   : > { %v5736_v27 = vadd.f32 %v5735_v59, %v5545_v46  ;;  %v5156_v61 = vadd.f32 %v5155_v10, %v4972_v11 }
 0x736   : > { %v5152_v54 = vadd.f32 %v5151_v60, %v5150_v21  ;;  %v5302_v51 = vadd.f32 %v5301_v28, %v5300_v49  ;;  %v5307_v48 = vadd.f32 %v5306_v40, %v5234_v43  ;;  %v7424_v2 = vpop.f32.mrb[166].mxu1 }
 0x737   : > { %v5737_v3 = vadd.f32 %v5736_v27, %v5546_v35  ;;  %v4982_v25 = vpop.f32.mrb[167].mxu1  ;;  %v5157_v22 = vadd.f32 %v7421_v39, %v5156_v61  ;;  %v5238_v9 = vmul.f32 %v7424_v2, %v7424_v2 }
 0x738   : > { %v9480_v14 = vmul.f32 0.03125, %v5152_v54  ;;  %v5303_v62 = vrot.slane %v5302_v51, 1  ;;  %v5308_v20 = vadd.f32 %v5307_v48, %v5235_v19  ;;  %v5237_v15 = vmul.f32 %v4982_v25, %v4982_v25 }
 0x739   : > { %v5750_v58 = vrot.slane %v5737_v3, 4  ;;  %v5158_v6 = vadd.f32 %v5157_v22, %v4982_v25 }
 0x73a   : > { %v5304_v38 = vadd.f32 %v5303_v62, %v5302_v51  ;;  %v5352_v18 = vmul.f32 %v9480_v14, %v9480_v14  ;;  %v5309_v56 = vadd.f32 %v5308_v20, %v5236_v41  ;;  %v7427_v32 = vpop.f32.mrb[168].mxu1 }
 0x73b   : > { %v5751_v52 = vadd.f32 %v5750_v58, %v5737_v3  ;;  %v4992_v45 = vpop.f32.mrb[169].mxu1  ;;  %v5159_v4 = vadd.f32 %v7424_v2, %v5158_v6  ;;  %v5240_v30 = vmul.f32 %v7427_v32, %v7427_v32 }
 0x73c   : > { %v5348_v53 = vmul.f32 0.03125, %v5304_v38  ;;  %v5310_v24 = vadd.f32 %v5309_v56, %v5237_v15  ;;  %v5239_v55 = vmul.f32 %v4992_v45, %v4992_v45 }
 0x73d   : > { %v5752_v17 = vrot.slane %v5751_v52, 2  ;;  %v5160_v23 = vadd.f32 %v5159_v4, %v4992_v45 }
 0x73e   : > { %v5356_v16 = vsub.f32 %v5348_v53, %v5352_v18  ;;  %v5311_v33 = vadd.f32 %v5310_v24, %v5238_v9  ;;  %v7430_v36 = vpop.f32.mrb[170].mxu1 }
 0x73f   : > { %v5753_v34 = vadd.f32 %v5752_v17, %v5751_v52  ;;  %v5002_v31 = vpop.f32.mrb[171].mxu1  ;;  %v5161_v13 = vadd.f32 %v7427_v32, %v5160_v23  ;;  %v5242_v39 = vmul.f32 %v7430_v36, %v7430_v36 }
 0x740   : > { %v5360_v47 = vmax.f32 %v5356_v16, 0.0  ;;  %v5312_v0 = vadd.f32 %v5311_v33, %v5239_v55  ;;  %v5241_v46 = vmul.f32 %v5002_v31, %v5002_v31 }
 0x741   : > { %v5754_v35 = vrot.slane %v5753_v34, 1  ;;  %v5162_v49 = vadd.f32 %v5161_v13, %v5002_v31 }
 0x742   : > { %v5364_v21 = vadd.f32 1e-05, %v5360_v47  ;;  %v5313_v29 = vadd.f32 %v5312_v0, %v5240_v30  ;;  %v7433_v5 = vpop.f32.mrb[172].mxu1 }
 0x743   : > { %v5012_v59 = vpop.f32.mrb[173].mxu1  ;;  %v5755_v43 = vadd.f32 %v5754_v35, %v5753_v34  ;;  %v5163_v60 = vadd.f32 %v7430_v36, %v5162_v49  ;;  %v5244_v51 = vmul.f32 %v7433_v5, %v7433_v5 }
 0x744   : > { %7879 = vrsqrt.f32 %v5364_v21  ;;  %v5314_v11 = vadd.f32 %v5313_v29, %v5241_v46  ;;  %v5243_v28 = vmul.f32 %v5012_v59, %v5012_v59 }
 0x745   : > { %v5819_v40 = vmul.f32 0.03125, %v5755_v43  ;;  %v5164_v10 = vadd.f32 %v5163_v60, %v5012_v59 }
 0x746   : > { %v5315_v27 = vadd.f32 %v5314_v11, %v5242_v39  ;;  %v7436_v19 = vpop.f32.mrb[174].mxu1 }
 0x747   : > { %v5022_v54 = vpop.f32.mrb[175].mxu1  ;;  %5823 = vst [vmem:[%s9485_s23] sm:$0x1] %v5819_v40  ;;  %v5165_v48 = vadd.f32 %v7433_v5, %v5164_v10  ;;  %v5246_v62 = vmul.f32 %v7436_v19, %v7436_v19 }
 0x748   : > { %v5316_v61 = vadd.f32 %v5315_v27, %v5243_v28  ;;  %v5245_v2 = vmul.f32 %v5022_v54, %v5022_v54 }
 0x749   : > { %v5166_v3 = vadd.f32 %v5165_v48, %v5022_v54 }
 0x74a   : > { %v5317_v41 = vadd.f32 %v5316_v61, %v5244_v51  ;;  %v9488_v25 = vpop.f32.mrb[176].mxu1 }
 0x74b   : > { %v5248_v20 = vmul.f32 %v9488_v25, %v9488_v25  ;;  %v9492_v22 = vpop.f32.mrb[177].mxu1  ;;  %v5167_v58 = vadd.f32 %v7436_v19, %v5166_v3 }
 0x74c   : > { %v5318_v15 = vadd.f32 %v5317_v41, %v5245_v2  ;;  %v5174_v38 = vadd.f32 %v9488_v25, %v9492_v22  ;;  %v5247_v18 = vmul.f32 %v9492_v22, %v9492_v22 }
 0x74d   : > { %v5168_v56 = vrot.slane %v5167_v58, 4 }
 0x74e   : > { %v7880_v6 = vpop.eup %7879  ;;  %v5319_v32 = vadd.f32 %v5318_v15, %v5246_v62  ;;  %v5326_v52 = vadd.f32 %v5248_v20, %v5247_v18  ;;  %v9498_v9 = vpop.f32.mrb[178].mxu1 }
 0x74f   : > { %v5372_v45 = vmul.f32 %v7880_v6, %v9441_v44  ;;  %v9501_v53 = vpop.f32.mrb[179].mxu1  ;;  %v5169_v24 = vadd.f32 %v5168_v56, %v5167_v58  ;;  %v5250_v33 = vmul.f32 %v9498_v9, %v9498_v9 }
 0x750   : > { %v5320_v4 = vrot.slane %v5319_v32, 4  ;;  %v5175_v55 = vadd.f32 %v5174_v38, %v9501_v53  ;;  %v5249_v17 = vmul.f32 %v9501_v53, %v9501_v53 }
 0x751   : > { %v5376_v16 = vmul.f32 %v5372_v45, %v9480_v14  ;;  %v5390_v23 = vrot.slane %v5372_v45, %v8787_v50  ;;  %v5170_v36 = vrot.slane %v5169_v24, 2 }
 0x752   : > { %v5321_v34 = vadd.f32 %v5320_v4, %v5319_v32  ;;  %v5327_v30 = vadd.f32 %v5326_v52, %v5249_v17  ;;  %v7445_v31 = vpop.f32.mrb[180].mxu1  ;;  %v5176_v47 = vadd.f32 %v9498_v9, %v5175_v55 }
 0x753   : > { %v5380_v0 = vsub.f32 %v9447_v8, %v5376_v16  ;;  %v5415_v13 = vmul.f32 %v5390_v23, %v9422_v42  ;;  %v5416_v46 = vmul.f32 %v9418_v7, %v5390_v23  ;;  %v5417_v35 = vmul.f32 %v5390_v23, %v9430_v37  ;;  %v5052_v14 = vpop.f32.mrb[181].mxu1 }
 0x754   : > { %v5418_v21 = vmul.f32 %v9428_v1, %v5390_v23  ;;  %v5171_v49 = vadd.f32 %v5170_v36, %v5169_v24  ;;  %v5322_v29 = vrot.slane %v5321_v34, 2  ;;  %v5177_v39 = vadd.f32 %v5176_v47, %v5052_v14 }
 0x755   : > { %v5470_v5 = vrot.slane %v5380_v0, %v8787_v50  ;;  %v5251_v59 = vmul.f32 %v5052_v14, %v5052_v14  ;;  %v5328_v43 = vadd.f32 %v5327_v30, %v5250_v33  ;;  %v5252_v19 = vmul.f32 %v7445_v31, %v7445_v31 }
 0x756   : > { %v5172_v11 = vrot.slane %v5171_v49, 1  ;;  %v5323_v60 = vadd.f32 %v5322_v29, %v5321_v34  ;;  %v7448_v28 = vpop.f32.mrb[182].mxu1  ;;  %v5178_v62 = vadd.f32 %v7445_v31, %v5177_v39 }
 0x757   : > { %v5495_v40 = vadd.f32 %v5470_v5, %v5415_v13  ;;  %v5496_v10 = vadd.f32 %v5470_v5, %v5416_v46  ;;  %v5497_v42 = vadd.f32 %v5470_v5, %v5417_v35  ;;  %v5498_v7 = vadd.f32 %v5470_v5, %v5418_v21  ;;  %v5062_v37 = vpop.f32.mrb[183].mxu1 }
 0x758   : > { %v5173_v27 = vadd.f32 %v5172_v11, %v5171_v49  ;;  %v5324_v1 = vrot.slane %v5323_v60, 1  ;;  %v5329_v54 = vadd.f32 %v5328_v43, %v5251_v59  ;;  %v5253_v20 = vmul.f32 %v5062_v37, %v5062_v37 }
 0x759   : > { %v5559_v51 = vmax.f32 %v5495_v40, 0.0  ;;  %v5560_v61 = vmax.f32 %v5496_v10, 0.0  ;;  %v5561_v48 = vmax.f32 %v5497_v42, 0.0  ;;  %v5562_v2 = vmax.f32 %v5498_v7, 0.0 }
 0x75a   : > { %v9517_v3 = vmul.f32 0.03125, %v5173_v27  ;;  %v5325_v41 = vadd.f32 %v5324_v1, %v5323_v60  ;;  %v7451_v58 = vpop.f32.mrb[184].mxu1  ;;  %v5330_v38 = vadd.f32 %v5329_v54, %v5252_v19  ;;  %v5179_v32 = vadd.f32 %v5178_v62, %v5062_v37 }
 0x75b   : > { %5687 = vst [vmem:[%s9291_s29 + $0x80] sm:$0xff] %v5559_v51  ;;  %5688 = vst [vmem:[%s9291_s29 + $0x88] sm:$0xff] %v5560_v61  ;;  %v5756_v15 = vadd.f32 %v5560_v61, %v5559_v51  ;;  %v5072_v18 = vpop.f32.mrb[185].mxu1  ;;  %v5254_v45 = vmul.f32 %v7448_v28, %v7448_v28  ;;  %v5256_v47 = vmul.f32 %v7451_v58, %v7451_v58 }
 0x75c   : > { %5689 = vst [vmem:[%s9291_s29 + $0x90] sm:$0xff] %v5561_v48  ;;  %5690 = vst [vmem:[%s9291_s29 + $0x98] sm:$0xff] %v5562_v2  ;;  %v5349_v6 = vmul.f32 0.03125, %v5325_v41  ;;  %v5353_v56 = vmul.f32 %v9517_v3, %v9517_v3  ;;  %v5331_v24 = vadd.f32 %v5330_v38, %v5253_v20  ;;  %v5255_v4 = vmul.f32 %v5072_v18, %v5072_v18 }
 0x75d   : > { %v5757_v52 = vadd.f32 %v5756_v15, %v5561_v48  ;;  %v5180_v17 = vadd.f32 %v7448_v28, %v5179_v32 }
 0x75e   : > { %v5357_v55 = vsub.f32 %v5349_v6, %v5353_v56  ;;  %v7454_v16 = vpop.f32.mrb[186].mxu1  ;;  %v5332_v33 = vadd.f32 %v5331_v24, %v5254_v45 }
 0x75f   : > { %v5758_v23 = vadd.f32 %v5757_v52, %v5562_v2  ;;  %v5082_v36 = vpop.f32.mrb[187].mxu1  ;;  %v5181_v30 = vadd.f32 %v5180_v17, %v5072_v18  ;;  %v5258_v59 = vmul.f32 %v7454_v16, %v7454_v16 }
 0x760   : > { %v5361_v34 = vmax.f32 %v5357_v55, 0.0  ;;  %v5333_v0 = vadd.f32 %v5332_v33, %v5255_v4  ;;  %v5257_v13 = vmul.f32 %v5082_v36, %v5082_v36 }
 0x761   : > { %v5771_v31 = vrot.slane %v5758_v23, 4  ;;  %v5182_v35 = vadd.f32 %v7451_v58, %v5181_v30 }
 0x762   : > { %v5365_v46 = vadd.f32 1e-05, %v5361_v34  ;;  %v7457_v14 = vpop.f32.mrb[188].mxu1  ;;  %v5334_v49 = vadd.f32 %v5333_v0, %v5256_v47 }
 0x763   : > { %v5772_v21 = vadd.f32 %v5771_v31, %v5758_v23  ;;  %v5092_v29 = vpop.f32.mrb[189].mxu1  ;;  %v5183_v5 = vadd.f32 %v5182_v35, %v5082_v36  ;;  %v5260_v37 = vmul.f32 %v7457_v14, %v7457_v14 }
 0x764   : > { %7881 = vrsqrt.f32 %v5365_v46  ;;  %v5335_v43 = vadd.f32 %v5334_v49, %v5257_v13  ;;  %v5259_v11 = vmul.f32 %v5092_v29, %v5092_v29 }
 0x765   : > { %v5773_v39 = vrot.slane %v5772_v21, 2  ;;  %v5184_v60 = vadd.f32 %v7454_v16, %v5183_v5 }
 0x766   : > { %v7460_v28 = vpop.f32.mrb[190].mxu1  ;;  %v5336_v10 = vadd.f32 %v5335_v43, %v5258_v59 }
 0x767   : > { %v5774_v40 = vadd.f32 %v5773_v39, %v5772_v21  ;;  %v5102_v42 = vpop.f32.mrb[191].mxu1  ;;  %v5185_v7 = vadd.f32 %v5184_v60, %v5092_v29  ;;  %v5262_v2 = vmul.f32 %v7460_v28, %v7460_v28 }
 0x768   : > { %v5337_v27 = vadd.f32 %v5336_v10, %v5259_v11  ;;  %v5261_v1 = vmul.f32 %v5102_v42, %v5102_v42 }
 0x769   : > { %v5775_v19 = vrot.slane %v5774_v40, 1  ;;  %v5186_v54 = vadd.f32 %v7457_v14, %v5185_v7 }
 0x76a   : > { %v5338_v51 = vadd.f32 %v5337_v27, %v5260_v37 }
 0x76b   : > { %v5776_v61 = vadd.f32 %v5775_v19, %v5774_v40  ;;  %v5187_v48 = vadd.f32 %v5186_v54, %v5102_v42 }
 0x76c   : > { %v5339_v41 = vadd.f32 %v5338_v51, %v5261_v1 }
 0x76d   : > { %v5820_v62 = vmul.f32 0.03125, %v5776_v61  ;;  %v5188_v58 = vadd.f32 %v7460_v28, %v5187_v48 }
 0x76e   : > { %v7882_v20 = vpop.eup %7881  ;;  %v5340_v38 = vadd.f32 %v5339_v41, %v5262_v2 }
 0x76f   : > { %v5373_v15 = vmul.f32 %v7882_v20, %v9441_v44  ;;  %5824 = vst [vmem:[%s9485_s23 + $0x1] sm:$0x1] %v5820_v62  ;;  %v5189_v18 = vrot.slane %v5188_v58, 4 }
 0x770   : > { %v5341_v32 = vrot.slane %v5340_v38, 4 }
 0x771   : > { %v5377_v6 = vmul.f32 %v5373_v15, %v9517_v3  ;;  %v5394_v56 = vrot.slane %v5373_v15, %v8787_v50  ;;  %v5190_v52 = vadd.f32 %v5189_v18, %v5188_v58 }
 0x772   : > { %v5342_v23 = vadd.f32 %v5341_v32, %v5340_v38 }
 0x773   : > { %v5381_v45 = vsub.f32 %v9447_v8, %v5377_v6  ;;  %v5431_v24 = vmul.f32 %v5394_v56, %v9456_v26  ;;  %v5432_v4 = vmul.f32 %v9450_v12, %v5394_v56  ;;  %v5433_v55 = vmul.f32 %v5394_v56, %v9468_v63 }
 0x774   : > { %v5434_v17 = vmul.f32 %v9466_v57, %v5394_v56  ;;  %v5191_v16 = vrot.slane %v5190_v52, 2  ;;  %v5343_v36 = vrot.slane %v5342_v23, 2 }
 0x775   : > { %v5474_v33 = vrot.slane %v5381_v45, %v8787_v50 }
 0x776   : > { %v5192_v3 = vadd.f32 %v5191_v16, %v5190_v52  ;;  %v5344_v12 = vadd.f32 %v5343_v36, %v5342_v23 }
 0x777   : > { %v5511_v34 = vadd.f32 %v5474_v33, %v5431_v24  ;;  %v5512_v30 = vadd.f32 %v5474_v33, %v5432_v4  ;;  %v5513_v31 = vadd.f32 %v5474_v33, %v5433_v55  ;;  %v5514_v26 = vadd.f32 %v5474_v33, %v5434_v17 }
 0x778   : > { %v5193_v47 = vrot.slane %v5192_v3, 1  ;;  %v5345_v35 = vrot.slane %v5344_v12, 1 }
 0x779   : > { %v5575_v0 = vmax.f32 %v5511_v34, 0.0  ;;  %v5576_v63 = vmax.f32 %v5512_v30, 0.0  ;;  %v5577_v13 = vmax.f32 %v5513_v31, 0.0  ;;  %v5578_v57 = vmax.f32 %v5514_v26, 0.0 }
 0x77a   : > { %v5194_v46 = vadd.f32 %v5193_v47, %v5192_v3  ;;  %v5346_v49 = vadd.f32 %v5345_v35, %v5344_v12 }
 0x77b   : > { %5703 = vst [vmem:[%s9291_s29 + $0x100] sm:$0xff] %v5575_v0  ;;  %5704 = vst [vmem:[%s9291_s29 + $0x108] sm:$0xff] %v5576_v63  ;;  %v5777_v14 = vadd.f32 %v5576_v63, %v5575_v0 }
 0x77c   : > { %5705 = vst [vmem:[%s9291_s29 + $0x110] sm:$0xff] %v5577_v13  ;;  %5706 = vst [vmem:[%s9291_s29 + $0x118] sm:$0xff] %v5578_v57  ;;  %v5198_v21 = vmul.f32 0.03125, %v5194_v46  ;;  %v5350_v5 = vmul.f32 0.03125, %v5346_v49 }
 0x77d   : > { %v5778_v29 = vadd.f32 %v5777_v14, %v5577_v13 }
 0x77e   : > { %v5354_v39 = vmul.f32 %v5198_v21, %v5198_v21 }
 0x77f   : > { %v5779_v59 = vadd.f32 %v5778_v29, %v5578_v57 }
 0x780   : > { %v5358_v43 = vsub.f32 %v5350_v5, %v5354_v39 }
 0x781   : > { %v5792_v11 = vrot.slane %v5779_v59, 4 }
 0x782   : > { %v5362_v60 = vmax.f32 %v5358_v43, 0.0 }
 0x783   : > { %v5793_v28 = vadd.f32 %v5792_v11, %v5779_v59 }
 0x784   : > { %v5366_v40 = vadd.f32 1e-05, %v5362_v60 }
 0x785   : > { %v5794_v10 = vrot.slane %v5793_v28, 2 }
 0x786   : > { %7883 = vrsqrt.f32 %v5366_v40 }
 0x787   : > { %v5795_v42 = vadd.f32 %v5794_v10, %v5793_v28 }
 0x789   : > { %v5796_v7 = vrot.slane %v5795_v42, 1 }
 0x78b   : > { %v5797_v37 = vadd.f32 %v5796_v7, %v5795_v42 }
 0x78d   : > { %v5821_v27 = vmul.f32 0.03125, %v5797_v37 }
 0x78f   : > { %5825 = vst [vmem:[%s9485_s23 + $0x2] sm:$0x1] %v5821_v27 }
 0x790   : > { %v7884_v1 = vpop.eup %7883 }
 0x791   : > { %v5374_v19 = vmul.f32 %v7884_v1, %v9441_v44 }
 0x793   : > { %v5378_v54 = vmul.f32 %v5374_v19, %v5198_v21  ;;  %v5398_v51 = vrot.slane %v5374_v19, %v8787_v50 }
 0x795   : > { %v5382_v61 = vsub.f32 %v9447_v8, %v5378_v54  ;;  %v5447_v48 = vmul.f32 %v5398_v51, %v9492_v22  ;;  %v5448_v2 = vmul.f32 %v9488_v25, %v5398_v51  ;;  %v5449_v41 = vmul.f32 %v5398_v51, %v9501_v53 }
 0x796   : > { %v5450_v62 = vmul.f32 %v9498_v9, %v5398_v51 }
 0x797   : > { %v5478_v20 = vrot.slane %v5382_v61, %v8787_v50 }
 0x799   : > { %v5527_v44 = vadd.f32 %v5478_v20, %v5447_v48  ;;  %v5528_v58 = vadd.f32 %v5478_v20, %v5448_v2  ;;  %v5529_v8 = vadd.f32 %v5478_v20, %v5449_v41  ;;  %v5530_v22 = vadd.f32 %v5478_v20, %v5450_v62 }
 0x79b   : > { %v5591_v25 = vmax.f32 %v5527_v44, 0.0  ;;  %v5592_v50 = vmax.f32 %v5528_v58, 0.0  ;;  %v5593_v9 = vmax.f32 %v5529_v8, 0.0  ;;  %v5594_v53 = vmax.f32 %v5530_v22, 0.0 }
 0x79d   : > { %5719 = vst [vmem:[%s9291_s29 + $0x180] sm:$0xff] %v5591_v25  ;;  %5720 = vst [vmem:[%s9291_s29 + $0x188] sm:$0xff] %v5592_v50  ;;  %v5798_v15 = vadd.f32 %v5592_v50, %v5591_v25 }
 0x79e   : > { %5721 = vst [vmem:[%s9291_s29 + $0x190] sm:$0xff] %v5593_v9  ;;  %5722 = vst [vmem:[%s9291_s29 + $0x198] sm:$0xff] %v5594_v53 }
 0x79f   : > { %8133 = shalt.err (!%p8130_p8)
}
 0x7a0   : > { %s8134_s29 = scalar_lea.hbm %s9553_s18, 8192  ;;  %s8138_s25 = scalar_lea.hbm %s9646_s9, 16384 }
 0x7a1   : > { %p8135_p11 = scmp.ne.s32.totalorder %s9553_s18, %s8134_s29  ;;  %p8139_p1 = scmp.lt.u32.totalorder %s9553_s18, %s9646_s9 }
 0x7a2   : > { %p8140_p2 = scmp.lt.u32.totalorder %s8138_s25, %s8134_s29  ;;  %p8142_p0 = scmp.lt.u32.totalorder %s8134_s29, %s9553_s18 }
 0x7a3   : > { %p8136_p7 = pnand %p8135_p11, %p8472_p10 }
 0x7a4   : > { %p8141_p13 = por %p8140_p2, %p8139_p1 }
 0x7a5   : > { %p8137_p12 = pneg %p8136_p7 }
 0x7a6   : > { %p8143_p4 = por %p8142_p0, %p8141_p13 }
 0x7a8   : > { %p8144_p6 = pnand %p8143_p4, %p8137_p12 }
 0x7aa   : > { %8147 = shalt.err (!%p8144_p6)
}
 0x7ab   : > { %s8246_s24 = smov 128   ;;  %s8247_s2 = smov 8   ;;  %v5799_v38 = vadd.f32 %v5798_v15, %v5593_v9 }
 0x7ac   : > { %7770 = dma.vmem_to_hbm [thread:$0]  (%p8472_p10), %s9555_s30, 8192, %s9553_s18, %s5833_s26, %s8246_s24, %s8246_s24, %s8247_s2  }
 0x7ad   : > { %v5800_v18 = vadd.f32 %v5799_v38, %v5594_v53  ;;  %s6066_s3 = sshll.u32 %s8322_s13, 6  ;;  %s5846_s19 = sshll.u32 %s9485_s23, 4  ;;  %s9592_s19 = int_to_ptr.vmem [resolvable:$true] %s5846_s19 }
 0x7ae   : > { %s9684_s8 = sld [smem:[#allocation28_spill]]  ;;  %s5828_s30 = scalar_lea.sflag [#allocation4], %s8567_s20 }
 0x7af   : > { %v5813_v6 = vrot.slane %v5800_v18, 4  ;;  %s8148_s18 = scalar_lea.vmem %s9592_s19, 64  ;;  %s8248_s13 = smov [#allocation13]  }
 0x7b0   : > { %p8149_p3 = scmp.ne.s32.totalorder %s9592_s19, %s8148_s18  ;;  %s8152_s26 = sshll.u32 %s8248_s13, 4  ;;  %s8153_s26 = int_to_ptr.vmem [resolvable:$false] %s8152_s26 }
 0x7b1   : > { %v5814_v56 = vadd.f32 %v5813_v6, %v5800_v18  ;;  %s8154_s16 = scalar_lea.vmem %s8153_s26, 128  ;;  %p8155_p8 = scmp.lt.s32.totalorder %s9592_s19, %s8153_s26 }
 0x7b2   : > { %p8150_p5 = pnand %p8149_p3, %p8472_p10  ;;  %p8156_p11 = scmp.lt.s32.totalorder %s8154_s16, %s8148_s18 }
 0x7b3   : > { %v5815_v32 = vrot.slane %v5814_v56, 2 }
 0x7b4   : > { %s9590_s29 = scalar_lea.hbm %s9684_s8, %s6066_s3  ;;  %p8151_p9 = pneg %p8150_p5 }
 0x7b5   : > { %v5816_v52 = vadd.f32 %v5815_v32, %v5814_v56  ;;  %p8157_p7 = por %p8156_p11, %p8155_p8 }
 0x7b7   : > { %v5817_v45 = vrot.slane %v5816_v52, 1  ;;  %p8158_p12 = pnand %p8157_p7, %p8151_p9 }
 0x7b9   : > { %v5818_v24 = vadd.f32 %v5817_v45, %v5816_v52 }
 0x7bb   : > { %v5822_v4 = vmul.f32 0.03125, %v5818_v24 }
 0x7bd   : > { %5826 = vst [vmem:[%s9485_s23 + $0x3] sm:$0x1] %v5822_v4 }
 0x7be   : > { %8161 = shalt.err (!%p8158_p12)
}
 0x7bf   : > { %s8162_s23 = scalar_lea.hbm %s9590_s29, 64  ;;  %s8166_s21 = scalar_lea.hbm %s9684_s8, 128 }
 0x7c0   : > { %p8163_p1 = scmp.ne.s32.totalorder %s9590_s29, %s8162_s23  ;;  %p8167_p0 = scmp.lt.u32.totalorder %s9590_s29, %s9684_s8 }
 0x7c1   : > { %p8168_p4 = scmp.lt.u32.totalorder %s8166_s21, %s8162_s23  ;;  %p8170_p3 = scmp.lt.u32.totalorder %s8162_s23, %s9590_s29 }
 0x7c2   : > { %p8164_p2 = pnand %p8163_p1, %p8472_p10 }
 0x7c3   : > { %p8169_p6 = por %p8168_p4, %p8167_p0 }
 0x7c4   : > { %p8165_p13 = pneg %p8164_p2 }
 0x7c5   : > { %p8171_p5 = por %p8170_p3, %p8169_p6 }
 0x7c7   : > { %p8172_p9 = pnand %p8171_p5, %p8165_p13 }
 0x7c9   : > { %8175 = shalt.err (!%p8172_p9)
}
 0x7ca   : > { %s8249_s2 = smov 16   ;;  %s8250_s3 = smov 1  }
 0x7cb   : > { %7769 = dma.vmem_to_hbm [thread:$0]  (%p8472_p10), %s9592_s19, 64, %s9590_s29, %s5828_s30, %s8249_s2, %s8249_s2, %s8250_s3  }
 0x7cc PF: > { %s9685_s22 = sld [smem:[#allocation23_spill]]  ;;  %s9686_s0 = sld [smem:[#allocation24_spill]] }
 0x7cd   : > { %p9688_p11 = scmp.ge.s32.totalorder %s8234_s12, 2 }
 0x7d2   : > { %s5878_s18 = sand.u32 1, %s9685_s22   ;;  %p9687_p8 = scmp.ne.s32.totalorder %s9686_s0, 0 }
 0x7d3   : > { %s5879_s13 = scalar_lea.sflag [#allocation4], %s5878_s18 }
 0x7d4   : > { %p7794_p7 = pnand %p9688_p11, %p9687_p8 }
 0x7d6   : > { %8213 = dma.done.wait (!%p7794_p7), %s5879_s13, 64  }
 0x7d7   : > { %8215 = vsyncadd (!%p7794_p7), %s5879_s13, 4294967232  ;;  %s5888_s26 = scalar_lea.sflag [#allocation15], %s5878_s18 }
 0x7d8   : > { %8217 = dma.done.wait (!%p7794_p7), %s5888_s26, 8192  }
 0x7d9   : > { %8219 = vsyncadd (!%p7794_p7), %s5888_s26, 4294959104  ;;  %p31_p10 = scmp.ge.s32.totalorder %s8462_s14, 4   ;;  %s9689_s30 = smov %s8226_s10 }
 0x7da   : > { %s9690_s10 = smov %s8230_s11  ;;  %s9691_s11 = smov %s8478_s28 }
 0x7db   : > { %s9692_s12 = smov %s8462_s14  ;;  %33 = sbr.rel (!%p31_p10) target bundleno = 16 (0x10), region = 143 }
 0x7e2   :  { %5893 = vsyncpa [#allocation3], 1 }
 0x7e3   :  { %5895 = vsyncpa [#allocation3 + $0x1], 1 }
 0x7e4   :  { %5896 = vsyncpa [#allocation6], 1 }
 0x7e5   :  { %5898 = vsyncpa [#allocation6 + $0x1], 1 }
 0x7e6   :  { %5899 = vsyncpa [#allocation9], 1 }
 0x7e7   :  { %5900 = vsyncpa [#allocation12], 1 }
 0x7e8   :  { %5901 = vsyncpa [#allocation4], 1 }
 0x7e9   :  { %5903 = vsyncpa [#allocation4 + $0x1], 1 }
 0x7ea   :  { %5904 = vsyncpa [#allocation15], 1 }
 0x7eb   :  { %5906 = vsyncpa [#allocation15 + $0x1], 1 }

</bundles_post_ra>
